<compile_context>
chip_gen: v7x
topology: tpu7x:2x2x1
jax: 0.10.0
libtpu: 0.0.40
codegen_flags: <defaults>
</compile_context>

<pallas_src>
import functools

import jax
import jax.numpy as jnp
from jax import lax
from jax.experimental import pallas as pl
from jax.experimental.pallas import tpu as pltpu


# --------------------------- fused forward kernel ---------------------------

def _giaa_fused_kernel(x_ref, w1_ref, b1_ref, w2_ref, b2_ref, wfc_ref, bfc_ref,
                       o_ref, h1p_ref, *, n, h, w, cin, c1, c2):
    """conv3x3+ReLU -> conv3x3+ReLU -> GAP -> Linear(out_dim, 1) -> Sigmoid."""
    m = n * h * w

    def conv3x3(src_ref, w_taps_ref, k_in):
        # Shift-and-accumulate im2col on the MXU: nine static-sliced windows of
        # the halo'd activation, each a (m, k_in) bf16 matmul with f32 accum.
        # Accumulator seeded from the first tap (no zeros + add pass).
        acc = None
        for i in range(3):
            for j in range(3):
                tap = src_ref[:, i:i + h, j:j + w, :]              # (n,h,w,k_in)
                tap = tap.reshape(m, k_in).astype(jnp.bfloat16)    # bf16 MXU input
                contrib = jnp.dot(tap, w_taps_ref[3 * i + j],
                                  preferred_element_type=jnp.float32)
                acc = contrib if acc is None else acc + contrib
        return acc                                                 # (m, cout) f32

    # ---- conv1 (3x3, stride 1, pad 1; halo already present in x_ref) + ReLU.
    h1 = jnp.maximum(conv3x3(x_ref, w1_ref, cin) + b1_ref[...], 0.0)   # (m, c1)

    # Stage conv1's activation in a zero-padded VMEM scratch so conv2 can read
    # its own halo'd 3x3 windows without ever leaving VMEM.
    h1p_ref[...] = jnp.zeros_like(h1p_ref)
    h1p_ref[:, 1:1 + h, 1:1 + w, :] = h1.reshape(n, h, w, c1)

    # ---- conv2 (3x3, stride 1, pad 1) + ReLU, same scheme.
    h2 = jnp.maximum(conv3x3(h1p_ref, w2_ref, c1) + b2_ref[...], 0.0)  # (m, c2)

    # ---- global average pool + regression head (Linear(out_dim, 1) + Sigmoid).
    feat = jnp.mean(h2.reshape(n, h * w, c2), axis=1)              # (n, c2)
    # A (c2, 1) matmul would waste an entire MXU tile and end in a 1-lane
    # masked store; a VPU multiply + lane reduction is cheaper.  Scalar bias
    # comes from SMEM (scalar path).
    z = jnp.sum(feat * wfc_ref[...], axis=-1, keepdims=True) + bfc_ref[0, 0]
    y = 0.5 * (jnp.tanh(0.5 * z) + 1.0)     # stable sigmoid; tanh runs on the EUP
    o_ref[...] = y.astype(o_ref.dtype)


# ------------------------------ forward wrapper ------------------------------

def giaa_forward(x_nchw, params):
    """y = Sigmoid(Linear(backbone(x))) with the entire forward as one Pallas kernel."""
    # TODO(synk): the PyTorch module wraps an arbitrary injected backbone
    # (typically torchvision ResNet-50 with fc stripped, out_dim=2048); a
    # representative small conv->ReLU->conv->ReLU->GAP backbone stands in here.
    n, cin, hh, ww = x_nchw.shape
    w1, b1 = params["w1"], params["b1"]
    w2, b2 = params["w2"], params["b2"]
    c1, c2 = w1.shape[0], w2.shape[0]

    # One-time layout plumbing (XLA side, tiny): NCHW -> NHWC with a 1-pixel
    # halo so the kernel reads all nine 3x3 windows as static slices; conv
    # weights OIHW -> (tap, Cin, Cout) in bf16 for the MXU; fc weight as a
    # (1, C) row for the VPU multiply-reduce head; fc bias as an SMEM scalar.
    x_hal = jnp.pad(jnp.transpose(x_nchw, (0, 2, 3, 1)).astype(jnp.float32),
                    ((0, 0), (1, 1), (1, 1), (0, 0)))              # (n, h+2, w+2, cin)
    w1_t = jnp.transpose(w1, (2, 3, 1, 0)).reshape(9, cin, c1).astype(jnp.bfloat16)
    w2_t = jnp.transpose(w2, (2, 3, 1, 0)).reshape(9, c1, c2).astype(jnp.bfloat16)
    b1_r = b1.reshape(1, c1).astype(jnp.float32)
    b2_r = b2.reshape(1, c2).astype(jnp.float32)
    wfc_r = params["w_fc"].reshape(1, c2).astype(jnp.float32)
    bfc_r = params["b_fc"].reshape(1, 1).astype(jnp.float32)

    kernel = functools.partial(_giaa_fused_kernel,
                               n=n, h=hh, w=ww, cin=cin, c1=c1, c2=c2)

    def full(shape):  # whole-array VMEM block (single fused invocation, no grid)
        return pl.BlockSpec(shape, lambda: (0,) * len(shape))

    return pl.pallas_call(
        kernel,
        out_shape=jax.ShapeDtypeStruct((n, 1), jnp.float32),
        in_specs=[
            full(x_hal.shape),                                     # halo'd input
            full(w1_t.shape), full(b1_r.shape),
            full(w2_t.shape), full(b2_r.shape),
            full(wfc_r.shape),
            pl.BlockSpec(memory_space=pltpu.MemorySpace.SMEM),     # scalar fc bias
        ],
        out_specs=full((n, 1)),
        scratch_shapes=[pltpu.VMEM((n, hh + 2, ww + 2, c1), jnp.float32)],
    )(x_hal, w1_t, b1_r, w2_t, b2_r, wfc_r, bfc_r)


# ------------------------------ pure-JAX reference ------------------------------

def giaa_forward_reference(x_nchw, params):
    """Pure-JAX f32 reference of the same forward pass (for a numerical check)."""
    dn = ("NHWC", "OIHW", "NHWC")
    x = jnp.transpose(x_nchw, (0, 2, 3, 1))
    h = lax.conv_general_dilated(x, params["w1"], (1, 1), "SAME",
                                 dimension_numbers=dn,
                                 precision=lax.Precision.HIGHEST)
    h = jnp.maximum(h + params["b1"], 0.0)
    h = lax.conv_general_dilated(h, params["w2"], (1, 1), "SAME",
                                 dimension_numbers=dn,
                                 precision=lax.Precision.HIGHEST)
    h = jnp.maximum(h + params["b2"], 0.0)
    feat = jnp.mean(h, axis=(1, 2))                                # (n, out_dim)
    z = feat @ params["w_fc"] + params["b_fc"]
    return jax.nn.sigmoid(z)


def init_params(key, c_in=4, c_mid=16, out_dim=32):
    k1, k2, k3, k4, k5, k6 = jax.random.split(key, 6)
    return dict(
        w1=0.1 * jax.random.normal(k1, (c_mid, c_in, 3, 3), jnp.float32),
        b1=0.1 * jax.random.normal(k2, (c_mid,), jnp.float32),
        w2=0.1 * jax.random.normal(k3, (out_dim, c_mid, 3, 3), jnp.float32),
        b2=0.1 * jax.random.normal(k4, (out_dim,), jnp.float32),
        w_fc=0.1 * jax.random.normal(k5, (out_dim, 1), jnp.float32),
        b_fc=0.1 * jax.random.normal(k6, (1,), jnp.float32),
    )


if __name__ == "__main__":
    key = jax.random.PRNGKey(0)
    kx, kp = jax.random.split(key)
    # NCHW input, like the PyTorch module: batch=2, channels=4, spatial=16x16.
    x = jax.random.normal(kx, (2, 4, 16, 16), jnp.float32)
    params = init_params(kp, c_in=4, c_mid=16, out_dim=32)

    y = jax.block_until_ready(jax.jit(giaa_forward)(x, params))
    assert y.shape == (2, 1)
    assert bool(jnp.all((y >= 0.0) & (y <= 1.0)))

    # Numerical check of the fused kernel against a pure-JAX f32 reference
    # (tolerance covers the bf16 MXU inputs used inside the kernel).
    y_ref = giaa_forward_reference(x, params)
    assert bool(jnp.allclose(y, y_ref, rtol=0.0, atol=2e-2)), (y, y_ref)
    print("KERNEL_OK")
</pallas_src>

<mosaic_0001>
module attributes {stable_mosaic.version = 11 : i64} {
  func.func @_giaa_fused_kernel(%arg0: memref<2x18x18x4xf32, #tpu.memory_space<vmem>>, %arg1: memref<9x4x16xbf16, #tpu.memory_space<vmem>>, %arg2: memref<1x16xf32, #tpu.memory_space<vmem>>, %arg3: memref<9x16x32xbf16, #tpu.memory_space<vmem>>, %arg4: memref<1x32xf32, #tpu.memory_space<vmem>>, %arg5: memref<1x32xf32, #tpu.memory_space<vmem>>, %arg6: memref<1x1xf32, #tpu.memory_space<smem>>, %arg7: memref<2x1xf32, #tpu.memory_space<vmem>>, %arg8: memref<2x18x18x16xf32, #tpu.memory_space<vmem>>) attributes {dimension_semantics = [], scalar_prefetch = 0 : i64, scratch_operands = 1 : i64, tpu.core_type = #tpu.core_type<tc>} {
    %c0 = arith.constant 0 : index
    %c0_0 = arith.constant 0 : index
    %c0_1 = arith.constant 0 : index
    %c0_2 = arith.constant 0 : index
    %0 = vector.load %arg0[%c0, %c0_0, %c0_1, %c0_2] : memref<2x18x18x4xf32, #tpu.memory_space<vmem>>, vector<2x16x16x4xf32>
    %1 = vector.shape_cast %0 : vector<2x16x16x4xf32> to vector<512x4xf32>
    %2 = arith.truncf %1 : vector<512x4xf32> to vector<512x4xbf16>
    %c0_3 = arith.constant 0 : index
    %c0_4 = arith.constant 0 : index
    %c0_5 = arith.constant 0 : index
    %3 = vector.load %arg1[%c0_3, %c0_4, %c0_5] : memref<9x4x16xbf16, #tpu.memory_space<vmem>>, vector<1x4x16xbf16>
    %4 = vector.shape_cast %3 : vector<1x4x16xbf16> to vector<4x16xbf16>
    %cst = arith.constant dense<0.000000e+00> : vector<512x16xf32>
    %5 = tpu.matmul %2, %4, %cst {dimension_numbers = #tpu.dot_dimension_numbers<[1], [0], [0], [1], [0, 0, 1, 1], [], []>} : vector<512x4xbf16>, vector<4x16xbf16>, vector<512x16xf32> -> vector<512x16xf32>
    %c0_6 = arith.constant 0 : index
    %c0_7 = arith.constant 0 : index
    %c1 = arith.constant 1 : index
    %c0_8 = arith.constant 0 : index
    %6 = vector.load %arg0[%c0_6, %c0_7, %c1, %c0_8] : memref<2x18x18x4xf32, #tpu.memory_space<vmem>>, vector<2x16x16x4xf32>
    %7 = vector.shape_cast %6 : vector<2x16x16x4xf32> to vector<512x4xf32>
    %8 = arith.truncf %7 : vector<512x4xf32> to vector<512x4xbf16>
    %c1_9 = arith.constant 1 : index
    %c0_10 = arith.constant 0 : index
    %c0_11 = arith.constant 0 : index
    %9 = vector.load %arg1[%c1_9, %c0_10, %c0_11] : memref<9x4x16xbf16, #tpu.memory_space<vmem>>, vector<1x4x16xbf16>
    %10 = vector.shape_cast %9 : vector<1x4x16xbf16> to vector<4x16xbf16>
    %cst_12 = arith.constant dense<0.000000e+00> : vector<512x16xf32>
    %11 = tpu.matmul %8, %10, %cst_12 {dimension_numbers = #tpu.dot_dimension_numbers<[1], [0], [0], [1], [0, 0, 1, 1], [], []>} : vector<512x4xbf16>, vector<4x16xbf16>, vector<512x16xf32> -> vector<512x16xf32>
    %12 = arith.addf %5, %11 : vector<512x16xf32>
    %c0_13 = arith.constant 0 : index
    %c0_14 = arith.constant 0 : index
    %c2 = arith.constant 2 : index
    %c0_15 = arith.constant 0 : index
    %13 = vector.load %arg0[%c0_13, %c0_14, %c2, %c0_15] : memref<2x18x18x4xf32, #tpu.memory_space<vmem>>, vector<2x16x16x4xf32>
    %14 = vector.shape_cast %13 : vector<2x16x16x4xf32> to vector<512x4xf32>
    %15 = arith.truncf %14 : vector<512x4xf32> to vector<512x4xbf16>
    %c2_16 = arith.constant 2 : index
    %c0_17 = arith.constant 0 : index
    %c0_18 = arith.constant 0 : index
    %16 = vector.load %arg1[%c2_16, %c0_17, %c0_18] : memref<9x4x16xbf16, #tpu.memory_space<vmem>>, vector<1x4x16xbf16>
    %17 = vector.shape_cast %16 : vector<1x4x16xbf16> to vector<4x16xbf16>
    %cst_19 = arith.constant dense<0.000000e+00> : vector<512x16xf32>
    %18 = tpu.matmul %15, %17, %cst_19 {dimension_numbers = #tpu.dot_dimension_numbers<[1], [0], [0], [1], [0, 0, 1, 1], [], []>} : vector<512x4xbf16>, vector<4x16xbf16>, vector<512x16xf32> -> vector<512x16xf32>
    %19 = arith.addf %12, %18 : vector<512x16xf32>
    %c0_20 = arith.constant 0 : index
    %c1_21 = arith.constant 1 : index
    %c0_22 = arith.constant 0 : index
    %c0_23 = arith.constant 0 : index
    %20 = vector.load %arg0[%c0_20, %c1_21, %c0_22, %c0_23] : memref<2x18x18x4xf32, #tpu.memory_space<vmem>>, vector<2x16x16x4xf32>
    %21 = vector.shape_cast %20 : vector<2x16x16x4xf32> to vector<512x4xf32>
    %22 = arith.truncf %21 : vector<512x4xf32> to vector<512x4xbf16>
    %c3 = arith.constant 3 : index
    %c0_24 = arith.constant 0 : index
    %c0_25 = arith.constant 0 : index
    %23 = vector.load %arg1[%c3, %c0_24, %c0_25] : memref<9x4x16xbf16, #tpu.memory_space<vmem>>, vector<1x4x16xbf16>
    %24 = vector.shape_cast %23 : vector<1x4x16xbf16> to vector<4x16xbf16>
    %cst_26 = arith.constant dense<0.000000e+00> : vector<512x16xf32>
    %25 = tpu.matmul %22, %24, %cst_26 {dimension_numbers = #tpu.dot_dimension_numbers<[1], [0], [0], [1], [0, 0, 1, 1], [], []>} : vector<512x4xbf16>, vector<4x16xbf16>, vector<512x16xf32> -> vector<512x16xf32>
    %26 = arith.addf %19, %25 : vector<512x16xf32>
    %c0_27 = arith.constant 0 : index
    %c1_28 = arith.constant 1 : index
    %c1_29 = arith.constant 1 : index
    %c0_30 = arith.constant 0 : index
    %27 = vector.load %arg0[%c0_27, %c1_28, %c1_29, %c0_30] : memref<2x18x18x4xf32, #tpu.memory_space<vmem>>, vector<2x16x16x4xf32>
    %28 = vector.shape_cast %27 : vector<2x16x16x4xf32> to vector<512x4xf32>
    %29 = arith.truncf %28 : vector<512x4xf32> to vector<512x4xbf16>
    %c4 = arith.constant 4 : index
    %c0_31 = arith.constant 0 : index
    %c0_32 = arith.constant 0 : index
    %30 = vector.load %arg1[%c4, %c0_31, %c0_32] : memref<9x4x16xbf16, #tpu.memory_space<vmem>>, vector<1x4x16xbf16>
    %31 = vector.shape_cast %30 : vector<1x4x16xbf16> to vector<4x16xbf16>
    %cst_33 = arith.constant dense<0.000000e+00> : vector<512x16xf32>
    %32 = tpu.matmul %29, %31, %cst_33 {dimension_numbers = #tpu.dot_dimension_numbers<[1], [0], [0], [1], [0, 0, 1, 1], [], []>} : vector<512x4xbf16>, vector<4x16xbf16>, vector<512x16xf32> -> vector<512x16xf32>
    %33 = arith.addf %26, %32 : vector<512x16xf32>
    %c0_34 = arith.constant 0 : index
    %c1_35 = arith.constant 1 : index
    %c2_36 = arith.constant 2 : index
    %c0_37 = arith.constant 0 : index
    %34 = vector.load %arg0[%c0_34, %c1_35, %c2_36, %c0_37] : memref<2x18x18x4xf32, #tpu.memory_space<vmem>>, vector<2x16x16x4xf32>
    %35 = vector.shape_cast %34 : vector<2x16x16x4xf32> to vector<512x4xf32>
    %36 = arith.truncf %35 : vector<512x4xf32> to vector<512x4xbf16>
    %c5 = arith.constant 5 : index
    %c0_38 = arith.constant 0 : index
    %c0_39 = arith.constant 0 : index
    %37 = vector.load %arg1[%c5, %c0_38, %c0_39] : memref<9x4x16xbf16, #tpu.memory_space<vmem>>, vector<1x4x16xbf16>
    %38 = vector.shape_cast %37 : vector<1x4x16xbf16> to vector<4x16xbf16>
    %cst_40 = arith.constant dense<0.000000e+00> : vector<512x16xf32>
    %39 = tpu.matmul %36, %38, %cst_40 {dimension_numbers = #tpu.dot_dimension_numbers<[1], [0], [0], [1], [0, 0, 1, 1], [], []>} : vector<512x4xbf16>, vector<4x16xbf16>, vector<512x16xf32> -> vector<512x16xf32>
    %40 = arith.addf %33, %39 : vector<512x16xf32>
    %c0_41 = arith.constant 0 : index
    %c2_42 = arith.constant 2 : index
    %c0_43 = arith.constant 0 : index
    %c0_44 = arith.constant 0 : index
    %41 = vector.load %arg0[%c0_41, %c2_42, %c0_43, %c0_44] : memref<2x18x18x4xf32, #tpu.memory_space<vmem>>, vector<2x16x16x4xf32>
    %42 = vector.shape_cast %41 : vector<2x16x16x4xf32> to vector<512x4xf32>
    %43 = arith.truncf %42 : vector<512x4xf32> to vector<512x4xbf16>
    %c6 = arith.constant 6 : index
    %c0_45 = arith.constant 0 : index
    %c0_46 = arith.constant 0 : index
    %44 = vector.load %arg1[%c6, %c0_45, %c0_46] : memref<9x4x16xbf16, #tpu.memory_space<vmem>>, vector<1x4x16xbf16>
    %45 = vector.shape_cast %44 : vector<1x4x16xbf16> to vector<4x16xbf16>
    %cst_47 = arith.constant dense<0.000000e+00> : vector<512x16xf32>
    %46 = tpu.matmul %43, %45, %cst_47 {dimension_numbers = #tpu.dot_dimension_numbers<[1], [0], [0], [1], [0, 0, 1, 1], [], []>} : vector<512x4xbf16>, vector<4x16xbf16>, vector<512x16xf32> -> vector<512x16xf32>
    %47 = arith.addf %40, %46 : vector<512x16xf32>
    %c0_48 = arith.constant 0 : index
    %c2_49 = arith.constant 2 : index
    %c1_50 = arith.constant 1 : index
    %c0_51 = arith.constant 0 : index
    %48 = vector.load %arg0[%c0_48, %c2_49, %c1_50, %c0_51] : memref<2x18x18x4xf32, #tpu.memory_space<vmem>>, vector<2x16x16x4xf32>
    %49 = vector.shape_cast %48 : vector<2x16x16x4xf32> to vector<512x4xf32>
    %50 = arith.truncf %49 : vector<512x4xf32> to vector<512x4xbf16>
    %c7 = arith.constant 7 : index
    %c0_52 = arith.constant 0 : index
    %c0_53 = arith.constant 0 : index
    %51 = vector.load %arg1[%c7, %c0_52, %c0_53] : memref<9x4x16xbf16, #tpu.memory_space<vmem>>, vector<1x4x16xbf16>
    %52 = vector.shape_cast %51 : vector<1x4x16xbf16> to vector<4x16xbf16>
    %cst_54 = arith.constant dense<0.000000e+00> : vector<512x16xf32>
    %53 = tpu.matmul %50, %52, %cst_54 {dimension_numbers = #tpu.dot_dimension_numbers<[1], [0], [0], [1], [0, 0, 1, 1], [], []>} : vector<512x4xbf16>, vector<4x16xbf16>, vector<512x16xf32> -> vector<512x16xf32>
    %54 = arith.addf %47, %53 : vector<512x16xf32>
    %c0_55 = arith.constant 0 : index
    %c2_56 = arith.constant 2 : index
    %c2_57 = arith.constant 2 : index
    %c0_58 = arith.constant 0 : index
    %55 = vector.load %arg0[%c0_55, %c2_56, %c2_57, %c0_58] : memref<2x18x18x4xf32, #tpu.memory_space<vmem>>, vector<2x16x16x4xf32>
    %56 = vector.shape_cast %55 : vector<2x16x16x4xf32> to vector<512x4xf32>
    %57 = arith.truncf %56 : vector<512x4xf32> to vector<512x4xbf16>
    %c8 = arith.constant 8 : index
    %c0_59 = arith.constant 0 : index
    %c0_60 = arith.constant 0 : index
    %58 = vector.load %arg1[%c8, %c0_59, %c0_60] : memref<9x4x16xbf16, #tpu.memory_space<vmem>>, vector<1x4x16xbf16>
    %59 = vector.shape_cast %58 : vector<1x4x16xbf16> to vector<4x16xbf16>
    %cst_61 = arith.constant dense<0.000000e+00> : vector<512x16xf32>
    %60 = tpu.matmul %57, %59, %cst_61 {dimension_numbers = #tpu.dot_dimension_numbers<[1], [0], [0], [1], [0, 0, 1, 1], [], []>} : vector<512x4xbf16>, vector<4x16xbf16>, vector<512x16xf32> -> vector<512x16xf32>
    %61 = arith.addf %54, %60 : vector<512x16xf32>
    %c0_62 = arith.constant 0 : index
    %c0_63 = arith.constant 0 : index
    %62 = vector.load %arg2[%c0_62, %c0_63] : memref<1x16xf32, #tpu.memory_space<vmem>>, vector<1x16xf32>
    %63 = vector.broadcast %62 : vector<1x16xf32> to vector<512x16xf32>
    %64 = arith.addf %61, %63 : vector<512x16xf32>
    %cst_64 = arith.constant 0.000000e+00 : f32
    %65 = vector.broadcast %cst_64 : f32 to vector<512x16xf32>
    %66 = arith.maximumf %64, %65 : vector<512x16xf32>
    %cst_65 = arith.constant 0.000000e+00 : f32
    %67 = vector.broadcast %cst_65 : f32 to vector<2x18x18x16xf32>
    %c0_66 = arith.constant 0 : index
    %c0_67 = arith.constant 0 : index
    %c0_68 = arith.constant 0 : index
    %c0_69 = arith.constant 0 : index
    %68 = vector.load %arg8[%c0_66, %c0_67, %c0_68, %c0_69] : memref<2x18x18x16xf32, #tpu.memory_space<vmem>>, vector<2x18x18x16xf32>
    tpu.vector_store %arg8[%c0_66, %c0_67, %c0_68, %c0_69], %67 {strides = array<i32>} : memref<2x18x18x16xf32, #tpu.memory_space<vmem>>, vector<2x18x18x16xf32>,
    %69 = vector.shape_cast %66 : vector<512x16xf32> to vector<2x16x16x16xf32>
    %c0_70 = arith.constant 0 : index
    %c1_71 = arith.constant 1 : index
    %c1_72 = arith.constant 1 : index
    %c0_73 = arith.constant 0 : index
    %70 = vector.load %arg8[%c0_70, %c1_71, %c1_72, %c0_73] : memref<2x18x18x16xf32, #tpu.memory_space<vmem>>, vector<2x16x16x16xf32>
    tpu.vector_store %arg8[%c0_70, %c1_71, %c1_72, %c0_73], %69 {strides = array<i32>} : memref<2x18x18x16xf32, #tpu.memory_space<vmem>>, vector<2x16x16x16xf32>,
    %c0_74 = arith.constant 0 : index
    %c0_75 = arith.constant 0 : index
    %c0_76 = arith.constant 0 : index
    %c0_77 = arith.constant 0 : index
    %71 = vector.load %arg8[%c0_74, %c0_75, %c0_76, %c0_77] : memref<2x18x18x16xf32, #tpu.memory_space<vmem>>, vector<2x16x16x16xf32>
    %72 = vector.shape_cast %71 : vector<2x16x16x16xf32> to vector<512x16xf32>
    %73 = arith.truncf %72 : vector<512x16xf32> to vector<512x16xbf16>
    %c0_78 = arith.constant 0 : index
    %c0_79 = arith.constant 0 : index
    %c0_80 = arith.constant 0 : index
    %74 = vector.load %arg3[%c0_78, %c0_79, %c0_80] : memref<9x16x32xbf16, #tpu.memory_space<vmem>>, vector<1x16x32xbf16>
    %75 = vector.shape_cast %74 : vector<1x16x32xbf16> to vector<16x32xbf16>
    %cst_81 = arith.constant dense<0.000000e+00> : vector<512x32xf32>
    %76 = tpu.matmul %73, %75, %cst_81 {dimension_numbers = #tpu.dot_dimension_numbers<[1], [0], [0], [1], [0, 0, 1, 1], [], []>} : vector<512x16xbf16>, vector<16x32xbf16>, vector<512x32xf32> -> vector<512x32xf32>
    %c0_82 = arith.constant 0 : index
    %c0_83 = arith.constant 0 : index
    %c1_84 = arith.constant 1 : index
    %c0_85 = arith.constant 0 : index
    %77 = vector.load %arg8[%c0_82, %c0_83, %c1_84, %c0_85] : memref<2x18x18x16xf32, #tpu.memory_space<vmem>>, vector<2x16x16x16xf32>
    %78 = vector.shape_cast %77 : vector<2x16x16x16xf32> to vector<512x16xf32>
    %79 = arith.truncf %78 : vector<512x16xf32> to vector<512x16xbf16>
    %c1_86 = arith.constant 1 : index
    %c0_87 = arith.constant 0 : index
    %c0_88 = arith.constant 0 : index
    %80 = vector.load %arg3[%c1_86, %c0_87, %c0_88] : memref<9x16x32xbf16, #tpu.memory_space<vmem>>, vector<1x16x32xbf16>
    %81 = vector.shape_cast %80 : vector<1x16x32xbf16> to vector<16x32xbf16>
    %cst_89 = arith.constant dense<0.000000e+00> : vector<512x32xf32>
    %82 = tpu.matmul %79, %81, %cst_89 {dimension_numbers = #tpu.dot_dimension_numbers<[1], [0], [0], [1], [0, 0, 1, 1], [], []>} : vector<512x16xbf16>, vector<16x32xbf16>, vector<512x32xf32> -> vector<512x32xf32>
    %83 = arith.addf %76, %82 : vector<512x32xf32>
    %c0_90 = arith.constant 0 : index
    %c0_91 = arith.constant 0 : index
    %c2_92 = arith.constant 2 : index
    %c0_93 = arith.constant 0 : index
    %84 = vector.load %arg8[%c0_90, %c0_91, %c2_92, %c0_93] : memref<2x18x18x16xf32, #tpu.memory_space<vmem>>, vector<2x16x16x16xf32>
    %85 = vector.shape_cast %84 : vector<2x16x16x16xf32> to vector<512x16xf32>
    %86 = arith.truncf %85 : vector<512x16xf32> to vector<512x16xbf16>
    %c2_94 = arith.constant 2 : index
    %c0_95 = arith.constant 0 : index
    %c0_96 = arith.constant 0 : index
    %87 = vector.load %arg3[%c2_94, %c0_95, %c0_96] : memref<9x16x32xbf16, #tpu.memory_space<vmem>>, vector<1x16x32xbf16>
    %88 = vector.shape_cast %87 : vector<1x16x32xbf16> to vector<16x32xbf16>
    %cst_97 = arith.constant dense<0.000000e+00> : vector<512x32xf32>
    %89 = tpu.matmul %86, %88, %cst_97 {dimension_numbers = #tpu.dot_dimension_numbers<[1], [0], [0], [1], [0, 0, 1, 1], [], []>} : vector<512x16xbf16>, vector<16x32xbf16>, vector<512x32xf32> -> vector<512x32xf32>
    %90 = arith.addf %83, %89 : vector<512x32xf32>
    %c0_98 = arith.constant 0 : index
    %c1_99 = arith.constant 1 : index
    %c0_100 = arith.constant 0 : index
    %c0_101 = arith.constant 0 : index
    %91 = vector.load %arg8[%c0_98, %c1_99, %c0_100, %c0_101] : memref<2x18x18x16xf32, #tpu.memory_space<vmem>>, vector<2x16x16x16xf32>
    %92 = vector.shape_cast %91 : vector<2x16x16x16xf32> to vector<512x16xf32>
    %93 = arith.truncf %92 : vector<512x16xf32> to vector<512x16xbf16>
    %c3_102 = arith.constant 3 : index
    %c0_103 = arith.constant 0 : index
    %c0_104 = arith.constant 0 : index
    %94 = vector.load %arg3[%c3_102, %c0_103, %c0_104] : memref<9x16x32xbf16, #tpu.memory_space<vmem>>, vector<1x16x32xbf16>
    %95 = vector.shape_cast %94 : vector<1x16x32xbf16> to vector<16x32xbf16>
    %cst_105 = arith.constant dense<0.000000e+00> : vector<512x32xf32>
    %96 = tpu.matmul %93, %95, %cst_105 {dimension_numbers = #tpu.dot_dimension_numbers<[1], [0], [0], [1], [0, 0, 1, 1], [], []>} : vector<512x16xbf16>, vector<16x32xbf16>, vector<512x32xf32> -> vector<512x32xf32>
    %97 = arith.addf %90, %96 : vector<512x32xf32>
    %c0_106 = arith.constant 0 : index
    %c1_107 = arith.constant 1 : index
    %c1_108 = arith.constant 1 : index
    %c0_109 = arith.constant 0 : index
    %98 = vector.load %arg8[%c0_106, %c1_107, %c1_108, %c0_109] : memref<2x18x18x16xf32, #tpu.memory_space<vmem>>, vector<2x16x16x16xf32>
    %99 = vector.shape_cast %98 : vector<2x16x16x16xf32> to vector<512x16xf32>
    %100 = arith.truncf %99 : vector<512x16xf32> to vector<512x16xbf16>
    %c4_110 = arith.constant 4 : index
    %c0_111 = arith.constant 0 : index
    %c0_112 = arith.constant 0 : index
    %101 = vector.load %arg3[%c4_110, %c0_111, %c0_112] : memref<9x16x32xbf16, #tpu.memory_space<vmem>>, vector<1x16x32xbf16>
    %102 = vector.shape_cast %101 : vector<1x16x32xbf16> to vector<16x32xbf16>
    %cst_113 = arith.constant dense<0.000000e+00> : vector<512x32xf32>
    %103 = tpu.matmul %100, %102, %cst_113 {dimension_numbers = #tpu.dot_dimension_numbers<[1], [0], [0], [1], [0, 0, 1, 1], [], []>} : vector<512x16xbf16>, vector<16x32xbf16>, vector<512x32xf32> -> vector<512x32xf32>
    %104 = arith.addf %97, %103 : vector<512x32xf32>
    %c0_114 = arith.constant 0 : index
    %c1_115 = arith.constant 1 : index
    %c2_116 = arith.constant 2 : index
    %c0_117 = arith.constant 0 : index
    %105 = vector.load %arg8[%c0_114, %c1_115, %c2_116, %c0_117] : memref<2x18x18x16xf32, #tpu.memory_space<vmem>>, vector<2x16x16x16xf32>
    %106 = vector.shape_cast %105 : vector<2x16x16x16xf32> to vector<512x16xf32>
    %107 = arith.truncf %106 : vector<512x16xf32> to vector<512x16xbf16>
    %c5_118 = arith.constant 5 : index
    %c0_119 = arith.constant 0 : index
    %c0_120 = arith.constant 0 : index
    %108 = vector.load %arg3[%c5_118, %c0_119, %c0_120] : memref<9x16x32xbf16, #tpu.memory_space<vmem>>, vector<1x16x32xbf16>
    %109 = vector.shape_cast %108 : vector<1x16x32xbf16> to vector<16x32xbf16>
    %cst_121 = arith.constant dense<0.000000e+00> : vector<512x32xf32>
    %110 = tpu.matmul %107, %109, %cst_121 {dimension_numbers = #tpu.dot_dimension_numbers<[1], [0], [0], [1], [0, 0, 1, 1], [], []>} : vector<512x16xbf16>, vector<16x32xbf16>, vector<512x32xf32> -> vector<512x32xf32>
    %111 = arith.addf %104, %110 : vector<512x32xf32>
    %c0_122 = arith.constant 0 : index
    %c2_123 = arith.constant 2 : index
    %c0_124 = arith.constant 0 : index
    %c0_125 = arith.constant 0 : index
    %112 = vector.load %arg8[%c0_122, %c2_123, %c0_124, %c0_125] : memref<2x18x18x16xf32, #tpu.memory_space<vmem>>, vector<2x16x16x16xf32>
    %113 = vector.shape_cast %112 : vector<2x16x16x16xf32> to vector<512x16xf32>
    %114 = arith.truncf %113 : vector<512x16xf32> to vector<512x16xbf16>
    %c6_126 = arith.constant 6 : index
    %c0_127 = arith.constant 0 : index
    %c0_128 = arith.constant 0 : index
    %115 = vector.load %arg3[%c6_126, %c0_127, %c0_128] : memref<9x16x32xbf16, #tpu.memory_space<vmem>>, vector<1x16x32xbf16>
    %116 = vector.shape_cast %115 : vector<1x16x32xbf16> to vector<16x32xbf16>
    %cst_129 = arith.constant dense<0.000000e+00> : vector<512x32xf32>
    %117 = tpu.matmul %114, %116, %cst_129 {dimension_numbers = #tpu.dot_dimension_numbers<[1], [0], [0], [1], [0, 0, 1, 1], [], []>} : vector<512x16xbf16>, vector<16x32xbf16>, vector<512x32xf32> -> vector<512x32xf32>
    %118 = arith.addf %111, %117 : vector<512x32xf32>
    %c0_130 = arith.constant 0 : index
    %c2_131 = arith.constant 2 : index
    %c1_132 = arith.constant 1 : index
    %c0_133 = arith.constant 0 : index
    %119 = vector.load %arg8[%c0_130, %c2_131, %c1_132, %c0_133] : memref<2x18x18x16xf32, #tpu.memory_space<vmem>>, vector<2x16x16x16xf32>
    %120 = vector.shape_cast %119 : vector<2x16x16x16xf32> to vector<512x16xf32>
    %121 = arith.truncf %120 : vector<512x16xf32> to vector<512x16xbf16>
    %c7_134 = arith.constant 7 : index
    %c0_135 = arith.constant 0 : index
    %c0_136 = arith.constant 0 : index
    %122 = vector.load %arg3[%c7_134, %c0_135, %c0_136] : memref<9x16x32xbf16, #tpu.memory_space<vmem>>, vector<1x16x32xbf16>
    %123 = vector.shape_cast %122 : vector<1x16x32xbf16> to vector<16x32xbf16>
    %cst_137 = arith.constant dense<0.000000e+00> : vector<512x32xf32>
    %124 = tpu.matmul %121, %123, %cst_137 {dimension_numbers = #tpu.dot_dimension_numbers<[1], [0], [0], [1], [0, 0, 1, 1], [], []>} : vector<512x16xbf16>, vector<16x32xbf16>, vector<512x32xf32> -> vector<512x32xf32>
    %125 = arith.addf %118, %124 : vector<512x32xf32>
    %c0_138 = arith.constant 0 : index
    %c2_139 = arith.constant 2 : index
    %c2_140 = arith.constant 2 : index
    %c0_141 = arith.constant 0 : index
    %126 = vector.load %arg8[%c0_138, %c2_139, %c2_140, %c0_141] : memref<2x18x18x16xf32, #tpu.memory_space<vmem>>, vector<2x16x16x16xf32>
    %127 = vector.shape_cast %126 : vector<2x16x16x16xf32> to vector<512x16xf32>
    %128 = arith.truncf %127 : vector<512x16xf32> to vector<512x16xbf16>
    %c8_142 = arith.constant 8 : index
    %c0_143 = arith.constant 0 : index
    %c0_144 = arith.constant 0 : index
    %129 = vector.load %arg3[%c8_142, %c0_143, %c0_144] : memref<9x16x32xbf16, #tpu.memory_space<vmem>>, vector<1x16x32xbf16>
    %130 = vector.shape_cast %129 : vector<1x16x32xbf16> to vector<16x32xbf16>
    %cst_145 = arith.constant dense<0.000000e+00> : vector<512x32xf32>
    %131 = tpu.matmul %128, %130, %cst_145 {dimension_numbers = #tpu.dot_dimension_numbers<[1], [0], [0], [1], [0, 0, 1, 1], [], []>} : vector<512x16xbf16>, vector<16x32xbf16>, vector<512x32xf32> -> vector<512x32xf32>
    %132 = arith.addf %125, %131 : vector<512x32xf32>
    %c0_146 = arith.constant 0 : index
    %c0_147 = arith.constant 0 : index
    %133 = vector.load %arg4[%c0_146, %c0_147] : memref<1x32xf32, #tpu.memory_space<vmem>>, vector<1x32xf32>
    %134 = vector.broadcast %133 : vector<1x32xf32> to vector<512x32xf32>
    %135 = arith.addf %132, %134 : vector<512x32xf32>
    %cst_148 = arith.constant 0.000000e+00 : f32
    %136 = vector.broadcast %cst_148 : f32 to vector<512x32xf32>
    %137 = arith.maximumf %135, %136 : vector<512x32xf32>
    %138 = vector.shape_cast %137 : vector<512x32xf32> to vector<2x256x32xf32>
    %cst_149 = arith.constant dense<0.000000e+00> : vector<2x32xf32>
    %139 = vector.multi_reduction <add>, %138, %cst_149 [1] : vector<2x256x32xf32> to vector<2x32xf32>
    %cst_150 = arith.constant 2.560000e+02 : f32
    %140 = vector.broadcast %cst_150 : f32 to vector<2x32xf32>
    %141 = arith.divf %139, %140 : vector<2x32xf32>
    %c0_151 = arith.constant 0 : index
    %c0_152 = arith.constant 0 : index
    %142 = vector.load %arg5[%c0_151, %c0_152] : memref<1x32xf32, #tpu.memory_space<vmem>>, vector<1x32xf32>
    %143 = vector.broadcast %142 : vector<1x32xf32> to vector<2x32xf32>
    %144 = arith.mulf %141, %143 : vector<2x32xf32>
    %cst_153 = arith.constant dense<0.000000e+00> : vector<2xf32>
    %145 = vector.multi_reduction <add>, %144, %cst_153 [1] : vector<2x32xf32> to vector<2xf32>
    %146 = vector.shape_cast %145 : vector<2xf32> to vector<2x1xf32>
    %c0_154 = arith.constant 0 : index
    %c0_155 = arith.constant 0 : index
    %147 = memref.load %arg6[%c0_154, %c0_155] : memref<1x1xf32, #tpu.memory_space<smem>>
    %148 = vector.broadcast %147 : f32 to vector<2x1xf32>
    %149 = arith.addf %146, %148 : vector<2x1xf32>
    %cst_156 = arith.constant 5.000000e-01 : f32
    %150 = vector.broadcast %cst_156 : f32 to vector<2x1xf32>
    %151 = arith.mulf %150, %149 : vector<2x1xf32>
    %152 = math.tanh %151 : vector<2x1xf32>
    %cst_157 = arith.constant 1.000000e+00 : f32
    %153 = vector.broadcast %cst_157 : f32 to vector<2x1xf32>
    %154 = arith.addf %152, %153 : vector<2x1xf32>
    %cst_158 = arith.constant 5.000000e-01 : f32
    %155 = vector.broadcast %cst_158 : f32 to vector<2x1xf32>
    %156 = arith.mulf %155, %154 : vector<2x1xf32>
    %c0_159 = arith.constant 0 : index
    %c0_160 = arith.constant 0 : index
    %157 = vector.load %arg7[%c0_159, %c0_160] : memref<2x1xf32, #tpu.memory_space<vmem>>, vector<2x1xf32>
    tpu.vector_store %arg7[%c0_159, %c0_160], %156 {strides = array<i32>} : memref<2x1xf32, #tpu.memory_space<vmem>>, vector<2x1xf32>,
    return
  }
}

</mosaic_0001>

<bundles_post_ra>
// kernel: giaa_forward.1
= control target key start
LH: loop header
LB: loop body
LE: loop exit
PB: predicated region body
PF: predicated region fallthrough
CT: control target
= control target key end

     0   :  { %vm320_vm0 = vcmask 1041408   ;;  %vm223_vm1 = vcmask 31744   ;;  %vm4988_vm2 = vcmask 130048   ;;  %vm4991_vm3 = vcmask 123904   ;;  %s17311_s1 = inlined_call_operand.vmem [shape: bf16[9,4,16], index: 1, kind: input, shape index: {}]   ;;  %s17312_s0 = inlined_call_operand.vmem [shape: f32[2,18,18,4], index: 0, kind: input, shape index: {}]   ;;  %s17313_s3 = inlined_call_operand.vmem [shape: bf16[9,16,32], index: 3, kind: input, shape index: {}]   ;;  %s17314_s2 = inlined_call_operand.vmem [shape: f32[1,16], index: 2, kind: input, shape index: {}]   ;;  %s17315_s4 = inlined_call_operand.vmem [shape: f32[1,32], index: 4, kind: input, shape index: {}]   ;;  %s17316_s5 = inlined_call_operand.vmem [shape: f32[1,32], index: 5, kind: input, shape index: {}]   ;;  %s17317_s6 = inlined_call_operand.<no memory space> [shape: f32[1,1], index: 6, kind: input, shape index: {}]   ;;  %s17318_s7 = inlined_call_operand.vmem [shape: f32[2,1], index: 7, kind: output, shape index: {}]  }
   0x1   :  { %v10330_v0 = vld [vmem:[%s17311_s1 + $0x2] sm:$0x3]  ;;  %v126_v2 = vld [vmem:[%s17312_s0 + $0x9] sm:$0xff]  ;;  %v127_v5 = vld [vmem:[%s17312_s0 + $0x19] sm:$0xff]  ;;  %vm10156_vm4 = vcmask 261120   ;;  %vm10310_vm5 = vcmask 1041409  }
   0x2   :  { %v125_v1 = vld [vmem:[%s17312_s0 + $0x1] sm:$0xff]  ;;  %14132 = vmatprep.subr.msk.bf16.mxu0 %vm320_vm0, %v10330_v0  ;;  %v322_v3 = vsel %vm320_vm0, %v10330_v0, 0  ;;  %v129_v9 = vld [vmem:[%s17312_s0 + $0x31] sm:$0xff]  ;;  %v130_v10 = vld [vmem:[%s17312_s0 + $0x39] sm:$0xff]  ;;  %vm10313_vm6 = vcmask 254976   ;;  %vm10324_vm7 = vcmask 1024  }
   0x3   :  { %v189_v4 = vpack.c.bf16 %v126_v2, %v125_v1  ;;  %v128_v6 = vld [vmem:[%s17312_s0 + $0x21] sm:$0xff]  ;;  %11921 = vmatpush3.bf16.msra.mxu0 %v322_v3  ;;  %v191_v12 = vpack.c.bf16 %v130_v10, %v129_v9  ;;  %v131_v13 = vld [vmem:[%s17312_s0 + $0x49] sm:$0xff]  ;;  %v132_v14 = vld [vmem:[%s17312_s0 + $0x51] sm:$0xff] }
   0x4   :  { %v124_v7 = vld [vmem:[%s17311_s1] sm:$0x3]  ;;  %v190_v8 = vpack.c.bf16 %v128_v6, %v127_v5  ;;  %v134_v16 = vld [vmem:[%s17312_s0 + $0x69] sm:$0xff]  ;;  %v192_v17 = vpack.c.bf16 %v132_v14, %v131_v13  ;;  %v137_v21 = vld [vmem:[%s17312_s0 + $0x91] sm:$0xff] }
   0x5   :  { %11922 = vmatprep.mubr.msk.bf16.mxu0 %vm223_vm1, %v189_v4  ;;  %14133 = vmatprep.subr.msk.bf16.mxu0 %vm320_vm0, %v124_v7  ;;  %v710_v11 = vsel %vm320_vm0, %v124_v7, 0  ;;  %v133_v15 = vld [vmem:[%s17312_s0 + $0x61] sm:$0xff]  ;;  %v135_v19 = vld [vmem:[%s17312_s0 + $0x79] sm:$0xff]  ;;  %v139_v25 = vld [vmem:[%s17312_s0 + $0xa9] sm:$0xff] }
   0x6   :  { %11923 = vmatmul.mubr.msk.bf16.vlgmr.msra.gmra.mrb[0].mxu0 %vm223_vm1, %v190_v8  ;;  %v193_v18 = vpack.c.bf16 %v134_v16, %v133_v15  ;;  %v136_v20 = vld [vmem:[%s17312_s0 + $0x81] sm:$0xff]  ;;  %v138_v22 = vld [vmem:[%s17312_s0 + $0x99] sm:$0xff]  ;;  %v140_v26 = vld [vmem:[%s17312_s0 + $0xb1] sm:$0xff] }
   0x7   :  { %11987 = vmatpush3.bf16.msra.mxu0 %v710_v11  ;;  %11926 = vmatprep.mubr.msk.bf16.mxu0 %vm223_vm1, %v191_v12  ;;  %v194_v23 = vpack.c.bf16 %v136_v20, %v135_v19  ;;  %v195_v24 = vpack.c.bf16 %v138_v22, %v137_v21  ;;  %v141_v27 = vld [vmem:[%s17312_s0 + $0xc1] sm:$0xff]  ;;  %v142_v28 = vld [vmem:[%s17312_s0 + $0xc9] sm:$0xff]  ;;  %v196_v30 = vpack.c.bf16 %v140_v26, %v139_v25  ;;  %v143_v32 = vld [vmem:[%s17312_s0 + $0xd9] sm:$0xff] }
   0x8   :  { %v14268_v29 = vld [vmem:[%s17311_s1 + $0x4] sm:$0x3]  ;;  %v197_v31 = vpack.c.bf16 %v142_v28, %v141_v27  ;;  %v145_v34 = vld [vmem:[%s17312_s0 + $0xf1] sm:$0xff]  ;;  %v146_v35 = vld [vmem:[%s17312_s0 + $0xf9] sm:$0xff] }
   0x9   :  { %14134 = vmatprep.subr.msk.bf16.mxu0 %vm320_vm0, %v14268_v29  ;;  %v144_v33 = vld [vmem:[%s17312_s0 + $0xe1] sm:$0xff]  ;;  %v199_v37 = vpack.c.bf16 %v146_v35, %v145_v34  ;;  %v147_v38 = vld [vmem:[%s17312_s0 + $0x109] sm:$0xff]  ;;  %v148_v39 = vld [vmem:[%s17312_s0 + $0x111] sm:$0xff] }
   0xa   :  { %v198_v36 = vpack.c.bf16 %v144_v33, %v143_v32  ;;  %v149_v40 = vld [vmem:[%s17312_s0 + $0x121] sm:$0xff]  ;;  %v150_v41 = vld [vmem:[%s17312_s0 + $0x129] sm:$0xff]  ;;  %v200_v42 = vpack.c.bf16 %v148_v39, %v147_v38  ;;  %v151_v44 = vld [vmem:[%s17312_s0 + $0x139] sm:$0xff] }
   0xb   :  { %v201_v43 = vpack.c.bf16 %v150_v41, %v149_v40  ;;  %v152_v45 = vld [vmem:[%s17312_s0 + $0x141] sm:$0xff]  ;;  %v153_v46 = vld [vmem:[%s17312_s0 + $0x151] sm:$0xff]  ;;  %v154_v47 = vld [vmem:[%s17312_s0 + $0x159] sm:$0xff] }
   0xc   :  { %v202_v48 = vpack.c.bf16 %v152_v45, %v151_v44  ;;  %v203_v49 = vpack.c.bf16 %v154_v47, %v153_v46  ;;  %v155_v50 = vld [vmem:[%s17312_s0 + $0x169] sm:$0xff]  ;;  %v156_v51 = vld [vmem:[%s17312_s0 + $0x171] sm:$0xff]  ;;  %v158_v53 = vld [vmem:[%s17312_s0 + $0x1b9] sm:$0xff]  ;;  %v1196_v47 = vsel %vm320_vm0, %v14268_v29, 0 }
   0xd   :  { %v157_v52 = vld [vmem:[%s17312_s0 + $0x1b1] sm:$0xff]  ;;  %v204_v54 = vpack.c.bf16 %v156_v51, %v155_v50  ;;  %v159_v56 = vld [vmem:[%s17312_s0 + $0x1c9] sm:$0xff]  ;;  %v161_v58 = vld [vmem:[%s17312_s0 + $0x1e1] sm:$0xff] }
   0xe   :  { %11927 = vmatmul.mubr.msk.bf16.gmra.mrb[4].mxu0 %vm223_vm1, %v192_v17  ;;  %v205_v55 = vpack.c.bf16 %v158_v53, %v157_v52  ;;  %v160_v57 = vld [vmem:[%s17312_s0 + $0x1d1] sm:$0xff]  ;;  %v162_v59 = vld [vmem:[%s17312_s0 + $0x1e9] sm:$0xff]  ;;  %v163_v62 = vld [vmem:[%s17312_s0 + $0x1f9] sm:$0xff] }
   0xf   :  { %11930 = vmatprep.mubr.msk.bf16.mxu0 %vm223_vm1, %v193_v18  ;;  %v206_v60 = vpack.c.bf16 %v160_v57, %v159_v56  ;;  %v207_v61 = vpack.c.bf16 %v162_v59, %v161_v58  ;;  %v164_v63 = vld [vmem:[%s17312_s0 + $0x201] sm:$0xff]  ;;  %v165_v0 = vld [vmem:[%s17312_s0 + $0x211] sm:$0xff]  ;;  %v166_v1 = vld [vmem:[%s17312_s0 + $0x219] sm:$0xff] }
  0x10   :  { %v208_v2 = vpack.c.bf16 %v164_v63, %v163_v62  ;;  %v209_v3 = vpack.c.bf16 %v166_v1, %v165_v0  ;;  %v167_v4 = vld [vmem:[%s17312_s0 + $0x229] sm:$0xff]  ;;  %v168_v5 = vld [vmem:[%s17312_s0 + $0x231] sm:$0xff]  ;;  %v169_v6 = vld [vmem:[%s17312_s0 + $0x241] sm:$0xff] }
  0x11   :  { %v170_v7 = vld [vmem:[%s17312_s0 + $0x249] sm:$0xff]  ;;  %v210_v8 = vpack.c.bf16 %v168_v5, %v167_v4  ;;  %v171_v10 = vld [vmem:[%s17312_s0 + $0x259] sm:$0xff]  ;;  %v172_v11 = vld [vmem:[%s17312_s0 + $0x261] sm:$0xff] }
  0x12   :  { %v211_v9 = vpack.c.bf16 %v170_v7, %v169_v6  ;;  %v173_v12 = vld [vmem:[%s17312_s0 + $0x271] sm:$0xff]  ;;  %v174_v13 = vld [vmem:[%s17312_s0 + $0x279] sm:$0xff]  ;;  %v212_v14 = vpack.c.bf16 %v172_v11, %v171_v10  ;;  %v175_v16 = vld [vmem:[%s17312_s0 + $0x289] sm:$0xff] }
  0x13   :  { %v213_v15 = vpack.c.bf16 %v174_v13, %v173_v12  ;;  %v176_v17 = vld [vmem:[%s17312_s0 + $0x291] sm:$0xff]  ;;  %v177_v18 = vld [vmem:[%s17312_s0 + $0x2a1] sm:$0xff]  ;;  %v178_v19 = vld [vmem:[%s17312_s0 + $0x2a9] sm:$0xff] }
  0x14   :  { %v214_v20 = vpack.c.bf16 %v176_v17, %v175_v16  ;;  %v215_v21 = vpack.c.bf16 %v178_v19, %v177_v18  ;;  %v179_v22 = vld [vmem:[%s17312_s0 + $0x2b9] sm:$0xff]  ;;  %v183_v28 = vld [vmem:[%s17312_s0 + $0x2e9] sm:$0xff] }
  0x15   :  { %v182_v25 = vld [vmem:[%s17312_s0 + $0x2d9] sm:$0xff]  ;;  %v186_v32 = vld [vmem:[%s17312_s0 + $0x309] sm:$0xff] }
  0x16   :  { %11931 = vmatmul.mubr.msk.bf16.gmra.mrb[8].mxu0 %vm223_vm1, %v194_v23  ;;  %v180_v23 = vld [vmem:[%s17312_s0 + $0x2c1] sm:$0xff]  ;;  %v187_v35 = vld [vmem:[%s17312_s0 + $0x319] sm:$0xff]  ;;  %v35_v29 = vld [vmem:[%s17312_s0 + $0x50] sm:$0xff] }
  0x17   :  { %11934 = vmatprep.mubr.msk.bf16.mxu0 %vm223_vm1, %v195_v24  ;;  %v181_v24 = vld [vmem:[%s17312_s0 + $0x2d1] sm:$0xff]  ;;  %v216_v26 = vpack.c.bf16 %v180_v23, %v179_v22  ;;  %v29_v38 = vld [vmem:[%s17312_s0 + $0x8] sm:$0xff]  ;;  %v36_v50 = vld [vmem:[%s17312_s0 + $0x60] sm:$0xff] }
  0x18   :  { %v217_v27 = vpack.c.bf16 %v182_v25, %v181_v24  ;;  %v30_v41 = vld [vmem:[%s17312_s0 + $0x18] sm:$0xff]  ;;  %v37_v51 = vld [vmem:[%s17312_s0 + $0x68] sm:$0xff]  ;;  %v40_v56 = vld [vmem:[%s17312_s0 + $0x90] sm:$0xff] }
  0x19   :  { %v33_v44 = vld [vmem:[%s17312_s0 + $0x38] sm:$0xff]  ;;  %v14485_v53 = vpack.c.bf16 %v37_v51, %v36_v50  ;;  %v44_v62 = vld [vmem:[%s17312_s0 + $0xc0] sm:$0xff]  ;;  %v45_v63 = vld [vmem:[%s17312_s0 + $0xc8] sm:$0xff] }
  0x1a   :  { %v41_v57 = vld [vmem:[%s17312_s0 + $0x98] sm:$0xff]  ;;  %v14525_v1 = vpack.c.bf16 %v45_v63, %v44_v62  ;;  %v48_v4 = vld [vmem:[%s17312_s0 + $0xf0] sm:$0xff]  ;;  %v52_v10 = vld [vmem:[%s17312_s0 + $0x120] sm:$0xff] }
  0x1b   :  { %v14505_v59 = vpack.c.bf16 %v41_v57, %v40_v56  ;;  %v49_v5 = vld [vmem:[%s17312_s0 + $0xf8] sm:$0xff]  ;;  %v53_v11 = vld [vmem:[%s17312_s0 + $0x128] sm:$0xff]  ;;  %v56_v16 = vld [vmem:[%s17312_s0 + $0x150] sm:$0xff] }
  0x1c   :  { %v14545_v7 = vpack.c.bf16 %v49_v5, %v48_v4  ;;  %v14565_v13 = vpack.c.bf16 %v53_v11, %v52_v10  ;;  %v57_v17 = vld [vmem:[%s17312_s0 + $0x158] sm:$0xff]  ;;  %v60_v22 = vld [vmem:[%s17312_s0 + $0x1b0] sm:$0xff]  ;;  %v80_v57 = vld [vmem:[%s17312_s0 + $0x2a0] sm:$0xff] }
  0x1d   :  { %v14585_v19 = vpack.c.bf16 %v57_v17, %v56_v16  ;;  %v61_v23 = vld [vmem:[%s17312_s0 + $0x1b8] sm:$0xff]  ;;  %v79_v56 = vld [vmem:[%s17312_s0 + $0x290] sm:$0xff]  ;;  %v88_v11 = vld [vmem:[%s17312_s0 + $0x300] sm:$0xff] }
  0x1e   :  { %11935 = vmatmul.mubr.msk.bf16.gmra.mrb[12].mxu0 %vm223_vm1, %v196_v30  ;;  %v184_v30 = vld [vmem:[%s17312_s0 + $0x2f1] sm:$0xff]  ;;  %v108_v25 = vpack.c.bf16 %v61_v23, %v60_v22 }
  0x1f   :  { %11938 = vmatprep.mubr.msk.bf16.mxu0 %vm223_vm1, %v197_v31  ;;  %v185_v31 = vld [vmem:[%s17312_s0 + $0x301] sm:$0xff]  ;;  %v218_v33 = vpack.c.bf16 %v184_v30, %v183_v28  ;;  %v77_v50 = vld [vmem:[%s17312_s0 + $0x278] sm:$0xff]  ;;  %v87_v10 = vld [vmem:[%s17312_s0 + $0x2f0] sm:$0xff] }
  0x20   :  { %v219_v34 = vpack.c.bf16 %v186_v32, %v185_v31  ;;  %v64_v28 = vld [vmem:[%s17312_s0 + $0x1e0] sm:$0xff]  ;;  %v65_v30 = vld [vmem:[%s17312_s0 + $0x1e8] sm:$0xff]  ;;  %v82_v63 = vld [vmem:[%s17312_s0 + $0x2b8] sm:$0xff] }
  0x21   :  { %v14622_v32 = vpack.c.bf16 %v65_v30, %v64_v28  ;;  %v85_v4 = vld [vmem:[%s17312_s0 + $0x2d8] sm:$0xff]  ;;  %v1002_v22 = vld [vmem:[%s17312_s0 + $0xa] sm:$0xff] }
  0x22   :  { %v90_v17 = vld [vmem:[%s17312_s0 + $0x318] sm:$0xff] }
  0x23   :  { %v1005_v28 = vld [vmem:[%s17312_s0 + $0x32] sm:$0xff]  ;;  %v1006_v30 = vld [vmem:[%s17312_s0 + $0x3a] sm:$0xff] }
  0x26   :  { %11939 = vmatmul.mubr.msk.bf16.gmra.mrb[16].mxu0 %vm223_vm1, %v198_v36  ;;  %v188_v36 = vld [vmem:[%s17312_s0 + $0x321] sm:$0xff] }
  0x27   :  { %11942 = vmatprep.mubr.msk.bf16.mxu0 %vm223_vm1, %v199_v37  ;;  %v28_v37 = vld [vmem:[%s17312_s0] sm:$0xff]  ;;  %v220_v39 = vpack.c.bf16 %v188_v36, %v187_v35  ;;  %v68_v35 = vld [vmem:[%s17312_s0 + $0x210] sm:$0xff]  ;;  %v69_v36 = vld [vmem:[%s17312_s0 + $0x218] sm:$0xff] }
  0x28   :  { %v92_v40 = vpack.c.bf16 %v29_v38, %v28_v37  ;;  %v14642_v38 = vpack.c.bf16 %v69_v36, %v68_v35  ;;  %v14788_v36 = vld [vmem:[%s17311_s1 + $0x8] sm:$0x3] }
  0x2e   :  { %11943 = vmatmul.mubr.msk.bf16.gmra.mrb[20].mxu0 %vm223_vm1, %v200_v42  ;;  %v31_v42 = vld [vmem:[%s17312_s0 + $0x20] sm:$0xff] }
  0x2f   :  { %11946 = vmatprep.mubr.msk.bf16.mxu0 %vm223_vm1, %v201_v43  ;;  %v32_v43 = vld [vmem:[%s17312_s0 + $0x30] sm:$0xff]  ;;  %v14454_v45 = vpack.c.bf16 %v31_v42, %v30_v41  ;;  %v72_v41 = vld [vmem:[%s17312_s0 + $0x240] sm:$0xff]  ;;  %v73_v42 = vld [vmem:[%s17312_s0 + $0x248] sm:$0xff] }
  0x30   :  { %v14456_v46 = vpack.c.bf16 %v33_v44, %v32_v43  ;;  %v14662_v44 = vpack.c.bf16 %v73_v42, %v72_v41  ;;  %v1010_v41 = vld [vmem:[%s17312_s0 + $0x6a] sm:$0xff] }
  0x36   :  { %11947 = vmatmul.mubr.msk.bf16.gmra.mrb[24].mxu0 %vm223_vm1, %v202_v48  ;;  %v14465_v48 = vld [vmem:[%s17311_s1 + $0x6] sm:$0x3] }
  0x37   :  { %11950 = vmatprep.mubr.msk.bf16.mxu0 %vm223_vm1, %v203_v49  ;;  %v34_v49 = vld [vmem:[%s17312_s0 + $0x48] sm:$0xff]  ;;  %v1747_v35 = vsel %vm320_vm0, %v14465_v48, 0 }
  0x38   :  { %v14483_v52 = vpack.c.bf16 %v35_v29, %v34_v49  ;;  %v75_v49 = vld [vmem:[%s17312_s0 + $0x260] sm:$0xff]  ;;  %v76_v29 = vld [vmem:[%s17312_s0 + $0x270] sm:$0xff] }
  0x3e   :  { %11951 = vmatmul.mubr.msk.bf16.gmra.mrb[28].mxu0 %vm223_vm1, %v204_v54  ;;  %v38_v54 = vld [vmem:[%s17312_s0 + $0x78] sm:$0xff] }
  0x3f   :  { %11954 = vmatprep.mubr.msk.bf16.mxu0 %vm223_vm1, %v205_v55  ;;  %v39_v55 = vld [vmem:[%s17312_s0 + $0x80] sm:$0xff] }
  0x40   :  { %v14503_v58 = vpack.c.bf16 %v39_v55, %v38_v54  ;;  %v14682_v54 = vpack.c.bf16 %v77_v50, %v76_v29  ;;  %v78_v55 = vld [vmem:[%s17312_s0 + $0x288] sm:$0xff]  ;;  %v1013_v50 = vld [vmem:[%s17312_s0 + $0x92] sm:$0xff] }
  0x41   :  { %v1012_v29 = vld [vmem:[%s17312_s0 + $0x82] sm:$0xff] }
  0x46   :  { %11955 = vmatmul.mubr.msk.bf16.gmra.mrb[32].mxu0 %vm223_vm1, %v206_v60  ;;  %v42_v60 = vld [vmem:[%s17312_s0 + $0xa8] sm:$0xff] }
  0x47   :  { %11958 = vmatprep.mubr.msk.bf16.mxu0 %vm223_vm1, %v207_v61  ;;  %v43_v61 = vld [vmem:[%s17312_s0 + $0xb0] sm:$0xff] }
  0x48   :  { %v14523_v0 = vpack.c.bf16 %v43_v61, %v42_v60  ;;  %v81_v60 = vld [vmem:[%s17312_s0 + $0x2a8] sm:$0xff]  ;;  %v14700_v61 = vpack.c.bf16 %v79_v56, %v78_v55  ;;  %v1014_v55 = vld [vmem:[%s17312_s0 + $0x9a] sm:$0xff] }
  0x49   :  { %v14702_v62 = vpack.c.bf16 %v81_v60, %v80_v57  ;;  %v14828_v57 = vpack.c.bf16 %v1014_v55, %v1013_v50  ;;  %v1015_v60 = vld [vmem:[%s17312_s0 + $0xaa] sm:$0xff]  ;;  %v1032_v50 = vld [vmem:[%s17312_s0 + $0x172] sm:$0xff] }
  0x4a   :  { %v1033_v55 = vld [vmem:[%s17312_s0 + $0x1b2] sm:$0xff] }
  0x4e   :  { %11959 = vmatmul.mubr.msk.bf16.gmra.mrb[36].mxu0 %vm223_vm1, %v208_v2  ;;  %v46_v2 = vld [vmem:[%s17312_s0 + $0xd8] sm:$0xff] }
  0x4f   :  { %11962 = vmatprep.mubr.msk.bf16.mxu0 %vm223_vm1, %v209_v3  ;;  %v47_v3 = vld [vmem:[%s17312_s0 + $0xe0] sm:$0xff] }
  0x50   :  { %v14543_v6 = vpack.c.bf16 %v47_v3, %v46_v2  ;;  %v83_v2 = vld [vmem:[%s17312_s0 + $0x2c0] sm:$0xff]  ;;  %v84_v3 = vld [vmem:[%s17312_s0 + $0x2d0] sm:$0xff] }
  0x51   :  { %v14720_v5 = vpack.c.bf16 %v83_v2, %v82_v63  ;;  %v1016_v63 = vld [vmem:[%s17312_s0 + $0xb2] sm:$0xff]  ;;  %v1017_v2 = vld [vmem:[%s17312_s0 + $0xc2] sm:$0xff] }
  0x56   :  { %11963 = vmatmul.mubr.msk.bf16.gmra.mrb[40].mxu0 %vm223_vm1, %v210_v8  ;;  %v50_v8 = vld [vmem:[%s17312_s0 + $0x108] sm:$0xff] }
  0x57   :  { %11966 = vmatprep.mubr.msk.bf16.mxu0 %vm223_vm1, %v211_v9  ;;  %v51_v9 = vld [vmem:[%s17312_s0 + $0x110] sm:$0xff] }
  0x58   :  { %v14563_v12 = vpack.c.bf16 %v51_v9, %v50_v8  ;;  %v14722_v8 = vpack.c.bf16 %v85_v4, %v84_v3  ;;  %v86_v9 = vld [vmem:[%s17312_s0 + $0x2e8] sm:$0xff]  ;;  %v14846_v4 = vpack.c.bf16 %v1016_v63, %v1015_v60  ;;  %v1034_v60 = vld [vmem:[%s17312_s0 + $0x1ba] sm:$0xff] }
  0x59   :  { %v1018_v3 = vld [vmem:[%s17312_s0 + $0xca] sm:$0xff] }
  0x5e   :  { %11967 = vmatmul.mubr.msk.bf16.gmra.mrb[44].mxu0 %vm223_vm1, %v212_v14  ;;  %v54_v14 = vld [vmem:[%s17312_s0 + $0x138] sm:$0xff] }
  0x5f   :  { %11970 = vmatprep.mubr.msk.bf16.mxu0 %vm223_vm1, %v213_v15  ;;  %v55_v15 = vld [vmem:[%s17312_s0 + $0x140] sm:$0xff] }
  0x60   :  { %v14583_v18 = vpack.c.bf16 %v55_v15, %v54_v14  ;;  %v89_v14 = vld [vmem:[%s17312_s0 + $0x308] sm:$0xff]  ;;  %v14740_v15 = vpack.c.bf16 %v87_v10, %v86_v9  ;;  %v14848_v9 = vpack.c.bf16 %v1018_v3, %v1017_v2  ;;  %v1019_v10 = vld [vmem:[%s17312_s0 + $0xda] sm:$0xff]  ;;  %v1081_v2 = vpack.c.bf16 %v1034_v60, %v1033_v55 }
  0x61   :  { %v14742_v16 = vpack.c.bf16 %v89_v14, %v88_v11  ;;  %v1020_v11 = vld [vmem:[%s17312_s0 + $0xe2] sm:$0xff]  ;;  %v1021_v14 = vld [vmem:[%s17312_s0 + $0xf2] sm:$0xff]  ;;  %v1035_v3 = vld [vmem:[%s17312_s0 + $0x1ca] sm:$0xff] }
  0x62   :  { %v1046_v55 = vld [vmem:[%s17312_s0 + $0x24a] sm:$0xff] }
  0x66   :  { %11971 = vmatmul.mubr.msk.bf16.gmra.mrb[48].mxu0 %vm223_vm1, %v214_v20  ;;  %v58_v20 = vld [vmem:[%s17312_s0 + $0x168] sm:$0xff] }
  0x67   :  { %11974 = vmatprep.mubr.msk.bf16.mxu0 %vm223_vm1, %v215_v21  ;;  %v59_v21 = vld [vmem:[%s17312_s0 + $0x170] sm:$0xff] }
  0x68   :  { %v14603_v24 = vpack.c.bf16 %v59_v21, %v58_v20  ;;  %v91_v20 = vld [vmem:[%s17312_s0 + $0x320] sm:$0xff] }
  0x69   :  { %v1001_v21 = vld [vmem:[%s17312_s0 + $0x2] sm:$0xff]  ;;  %v14760_v23 = vpack.c.bf16 %v91_v20, %v90_v17  ;;  %v1022_v17 = vld [vmem:[%s17312_s0 + $0xfa] sm:$0xff]  ;;  %v14866_v20 = vpack.c.bf16 %v1020_v11, %v1019_v10  ;;  %v1036_v10 = vld [vmem:[%s17312_s0 + $0x1d2] sm:$0xff] }
  0x6a   :  { %v1037_v11 = vld [vmem:[%s17312_s0 + $0x1e2] sm:$0xff] }
  0x6e   :  { %11975 = vmatmul.mubr.msk.bf16.gmra.mrb[52].mxu0 %vm223_vm1, %v216_v26  ;;  %v62_v26 = vld [vmem:[%s17312_s0 + $0x1c8] sm:$0xff] }
  0x6f   :  { %11978 = vmatprep.mubr.msk.bf16.mxu0 %vm223_vm1, %v217_v27  ;;  %v63_v27 = vld [vmem:[%s17312_s0 + $0x1d0] sm:$0xff] }
  0x70   :  { %v14620_v31 = vpack.c.bf16 %v63_v27, %v62_v26  ;;  %v1003_v26 = vld [vmem:[%s17312_s0 + $0x1a] sm:$0xff]  ;;  %v1004_v27 = vld [vmem:[%s17312_s0 + $0x22] sm:$0xff] }
  0x76   :  { %11979 = vmatmul.mubr.msk.bf16.gmra.mrb[56].mxu0 %vm223_vm1, %v218_v33  ;;  %v66_v33 = vld [vmem:[%s17312_s0 + $0x1f8] sm:$0xff] }
  0x77   :  { %11982 = vmatprep.mubr.msk.bf16.mxu0 %vm223_vm1, %v219_v34  ;;  %v67_v34 = vld [vmem:[%s17312_s0 + $0x200] sm:$0xff] }
  0x78   :  { %v14640_v37 = vpack.c.bf16 %v67_v34, %v66_v33  ;;  %v14777_v33 = vpack.c.bf16 %v1004_v27, %v1003_v26  ;;  %v14779_v34 = vpack.c.bf16 %v1006_v30, %v1005_v28  ;;  %v1025_v26 = vld [vmem:[%s17312_s0 + $0x122] sm:$0xff]  ;;  %v1026_v27 = vld [vmem:[%s17312_s0 + $0x12a] sm:$0xff] }
  0x79   :  { %v14888_v30 = vpack.c.bf16 %v1026_v27, %v1025_v26  ;;  %v1040_v26 = vld [vmem:[%s17312_s0 + $0x202] sm:$0xff]  ;;  %v1041_v27 = vld [vmem:[%s17312_s0 + $0x212] sm:$0xff] }
  0x7e   :  { %11983 = vmatmul.mubr.msk.bf16.gmra.mrb[60].mxu0 %vm223_vm1, %v220_v39  ;;  %v70_v39 = vld [vmem:[%s17312_s0 + $0x228] sm:$0xff] }
  0x7f   :  { %11988 = vmatprep.mubr.msk.bf16.mxu0 %vm223_vm1, %v92_v40  ;;  %v71_v40 = vld [vmem:[%s17312_s0 + $0x230] sm:$0xff] }
  0x80   :  { %v14660_v43 = vpack.c.bf16 %v71_v40, %v70_v39  ;;  %v1007_v39 = vld [vmem:[%s17312_s0 + $0x4a] sm:$0xff]  ;;  %v1009_v40 = vld [vmem:[%s17312_s0 + $0x62] sm:$0xff] }
  0x86   :  { %11989 = vmatmul.mubr.msk.bf16.vlgmr.msra.gmra.mrb[0].mxu0 %vm223_vm1, %v14454_v45 }
  0x87   :  { %12053 = vmatpush3.bf16.msra.mxu0 %v1196_v47  ;;  %11992 = vmatprep.mubr.msk.bf16.mxu0 %vm223_vm1, %v14456_v46  ;;  %v74_v47 = vld [vmem:[%s17312_s0 + $0x258] sm:$0xff] }
  0x88   :  { %14135 = vmatprep.subr.msk.bf16.mxu0 %vm320_vm0, %v14465_v48  ;;  %v14680_v51 = vpack.c.bf16 %v75_v49, %v74_v47  ;;  %v1008_v48 = vld [vmem:[%s17312_s0 + $0x52] sm:$0xff]  ;;  %v14808_v47 = vpack.c.bf16 %v1010_v41, %v1009_v40  ;;  %v1011_v49 = vld [vmem:[%s17312_s0 + $0x7a] sm:$0xff] }
  0x89   :  { %v14806_v42 = vpack.c.bf16 %v1008_v48, %v1007_v39  ;;  %v14826_v56 = vpack.c.bf16 %v1012_v29, %v1011_v49  ;;  %v1028_v39 = vld [vmem:[%s17312_s0 + $0x142] sm:$0xff]  ;;  %v1029_v48 = vld [vmem:[%s17312_s0 + $0x152] sm:$0xff]  ;;  %v1030_v40 = vld [vmem:[%s17312_s0 + $0x15a] sm:$0xff] }
  0x8a   :  { %v14908_v49 = vpack.c.bf16 %v1030_v40, %v1029_v48  ;;  %v1031_v29 = vld [vmem:[%s17312_s0 + $0x16a] sm:$0xff] }
  0x8b   :  { %v14926_v63 = vpack.c.bf16 %v1032_v50, %v1031_v29  ;;  %v1043_v40 = vld [vmem:[%s17312_s0 + $0x22a] sm:$0xff]  ;;  %v1044_v29 = vld [vmem:[%s17312_s0 + $0x232] sm:$0xff]  ;;  %v1045_v50 = vld [vmem:[%s17312_s0 + $0x242] sm:$0xff] }
  0x8c   :  { %v14983_v60 = vpack.c.bf16 %v1044_v29, %v1043_v40  ;;  %v1053_v40 = vld [vmem:[%s17312_s0 + $0x2a2] sm:$0xff]  ;;  %v1054_v29 = vld [vmem:[%s17312_s0 + $0x2aa] sm:$0xff] }
  0x8e   :  { %11993 = vmatmul.mubr.msk.bf16.gmra.mrb[4].mxu0 %vm223_vm1, %v14483_v52 }
  0x8f   :  { %11996 = vmatprep.mubr.msk.bf16.mxu0 %vm223_vm1, %v14485_v53 }
  0x96   :  { %11997 = vmatmul.mubr.msk.bf16.gmra.mrb[8].mxu0 %vm223_vm1, %v14503_v58 }
  0x97   :  { %12000 = vmatprep.mubr.msk.bf16.mxu0 %vm223_vm1, %v14505_v59 }
  0x9e   :  { %12001 = vmatmul.mubr.msk.bf16.gmra.mrb[12].mxu0 %vm223_vm1, %v14523_v0 }
  0x9f   :  { %12004 = vmatprep.mubr.msk.bf16.mxu0 %vm223_vm1, %v14525_v1 }
  0xa6   :  { %12005 = vmatmul.mubr.msk.bf16.gmra.mrb[16].mxu0 %vm223_vm1, %v14543_v6 }
  0xa7   :  { %12008 = vmatprep.mubr.msk.bf16.mxu0 %vm223_vm1, %v14545_v7 }
  0xae   :  { %12009 = vmatmul.mubr.msk.bf16.gmra.mrb[20].mxu0 %vm223_vm1, %v14563_v12 }
  0xaf   :  { %12012 = vmatprep.mubr.msk.bf16.mxu0 %vm223_vm1, %v14565_v13 }
  0xb6   :  { %12013 = vmatmul.mubr.msk.bf16.gmra.mrb[24].mxu0 %vm223_vm1, %v14583_v18 }
  0xb7   :  { %12016 = vmatprep.mubr.msk.bf16.mxu0 %vm223_vm1, %v14585_v19 }
  0xbe   :  { %12017 = vmatmul.mubr.msk.bf16.gmra.mrb[28].mxu0 %vm223_vm1, %v14603_v24 }
  0xbf   :  { %12020 = vmatprep.mubr.msk.bf16.mxu0 %vm223_vm1, %v108_v25  ;;  %v1065_v25 = vpack.c.bf16 %v1002_v22, %v1001_v21  ;;  %v14868_v21 = vpack.c.bf16 %v1022_v17, %v1021_v14  ;;  %v1023_v22 = vld [vmem:[%s17312_s0 + $0x10a] sm:$0xff]  ;;  %v14943_v17 = vpack.c.bf16 %v1036_v10, %v1035_v3  ;;  %v1047_v3 = vld [vmem:[%s17312_s0 + $0x25a] sm:$0xff]  ;;  %v1048_v10 = vld [vmem:[%s17312_s0 + $0x262] sm:$0xff] }
  0xc0   :  { %v1038_v14 = vld [vmem:[%s17312_s0 + $0x1ea] sm:$0xff] }
  0xc6   :  { %12021 = vmatmul.mubr.msk.bf16.gmra.mrb[32].mxu0 %vm223_vm1, %v14620_v31 }
  0xc7   :  { %12024 = vmatprep.mubr.msk.bf16.mxu0 %vm223_vm1, %v14622_v32 }
  0xce   :  { %12025 = vmatmul.mubr.msk.bf16.gmra.mrb[36].mxu0 %vm223_vm1, %v14640_v37 }
  0xcf   :  { %12028 = vmatprep.mubr.msk.bf16.mxu0 %vm223_vm1, %v14642_v38 }
  0xd6   :  { %12029 = vmatmul.mubr.msk.bf16.gmra.mrb[40].mxu0 %vm223_vm1, %v14660_v43 }
  0xd7   :  { %12032 = vmatprep.mubr.msk.bf16.mxu0 %vm223_vm1, %v14662_v44 }
  0xde   :  { %12033 = vmatmul.mubr.msk.bf16.gmra.mrb[44].mxu0 %vm223_vm1, %v14680_v51 }
  0xdf   :  { %12036 = vmatprep.mubr.msk.bf16.mxu0 %vm223_vm1, %v14682_v54 }
  0xe6   :  { %12037 = vmatmul.mubr.msk.bf16.gmra.mrb[48].mxu0 %vm223_vm1, %v14700_v61 }
  0xe7   :  { %12040 = vmatprep.mubr.msk.bf16.mxu0 %vm223_vm1, %v14702_v62 }
  0xee   :  { %12041 = vmatmul.mubr.msk.bf16.gmra.mrb[52].mxu0 %vm223_vm1, %v14720_v5 }
  0xef   :  { %12044 = vmatprep.mubr.msk.bf16.mxu0 %vm223_vm1, %v14722_v8 }
  0xf6   :  { %12045 = vmatmul.mubr.msk.bf16.gmra.mrb[56].mxu0 %vm223_vm1, %v14740_v15 }
  0xf7   :  { %12048 = vmatprep.mubr.msk.bf16.mxu0 %vm223_vm1, %v14742_v16 }
  0xfe   :  { %12049 = vmatmul.mubr.msk.bf16.gmra.mrb[60].mxu0 %vm223_vm1, %v14760_v23 }
  0xff   :  { %12054 = vmatprep.mubr.msk.bf16.mxu0 %vm223_vm1, %v1065_v25  ;;  %v1024_v25 = vld [vmem:[%s17312_s0 + $0x112] sm:$0xff] }
 0x100   :  { %v14886_v28 = vpack.c.bf16 %v1024_v25, %v1023_v22  ;;  %v14945_v22 = vpack.c.bf16 %v1038_v14, %v1037_v11  ;;  %v1039_v25 = vld [vmem:[%s17312_s0 + $0x1fa] sm:$0xff]  ;;  %v1049_v11 = vld [vmem:[%s17312_s0 + $0x272] sm:$0xff] }
 0x101   :  { %v1050_v14 = vld [vmem:[%s17312_s0 + $0x27a] sm:$0xff] }
 0x106   :  { %12055 = vmatmul.mubr.msk.bf16.vlgmr.msra.gmra.mrb[0].mxu0 %vm223_vm1, %v14777_v33 }
 0x107   :  { %12119 = vmatpush3.bf16.msra.mxu0 %v1747_v35  ;;  %12058 = vmatprep.mubr.msk.bf16.mxu0 %vm223_vm1, %v14779_v34  ;;  %v1027_v35 = vld [vmem:[%s17312_s0 + $0x13a] sm:$0xff] }
 0x108   :  { %14136 = vmatprep.subr.msk.bf16.mxu0 %vm320_vm0, %v14788_v36  ;;  %v14906_v41 = vpack.c.bf16 %v1028_v39, %v1027_v35  ;;  %v1042_v35 = vld [vmem:[%s17312_s0 + $0x21a] sm:$0xff]  ;;  %v14963_v39 = vpack.c.bf16 %v1040_v26, %v1039_v25  ;;  %v15003_v25 = vpack.c.bf16 %v1048_v10, %v1047_v3  ;;  %v15005_v26 = vpack.c.bf16 %v1050_v14, %v1049_v11  ;;  %v1056_v10 = vld [vmem:[%s17312_s0 + $0x2c2] sm:$0xff]  ;;  %v1057_v11 = vld [vmem:[%s17312_s0 + $0x2d2] sm:$0xff] }
 0x109   :  { %v14965_v48 = vpack.c.bf16 %v1042_v35, %v1041_v27  ;;  %v1051_v27 = vld [vmem:[%s17312_s0 + $0x28a] sm:$0xff]  ;;  %v1052_v35 = vld [vmem:[%s17312_s0 + $0x292] sm:$0xff]  ;;  %v1055_v3 = vld [vmem:[%s17312_s0 + $0x2ba] sm:$0xff] }
 0x10a   :  { %v1058_v14 = vld [vmem:[%s17312_s0 + $0x2da] sm:$0xff] }
 0x10e   :  { %12059 = vmatmul.mubr.msk.bf16.gmra.mrb[4].mxu0 %vm223_vm1, %v14806_v42 }
 0x10f   :  { %12062 = vmatprep.mubr.msk.bf16.mxu0 %vm223_vm1, %v14808_v47 }
 0x116   :  { %12063 = vmatmul.mubr.msk.bf16.gmra.mrb[8].mxu0 %vm223_vm1, %v14826_v56 }
 0x117   :  { %12066 = vmatprep.mubr.msk.bf16.mxu0 %vm223_vm1, %v14828_v57 }
 0x11e   :  { %12067 = vmatmul.mubr.msk.bf16.gmra.mrb[12].mxu0 %vm223_vm1, %v14846_v4 }
 0x11f   :  { %12070 = vmatprep.mubr.msk.bf16.mxu0 %vm223_vm1, %v14848_v9 }
 0x126   :  { %12071 = vmatmul.mubr.msk.bf16.gmra.mrb[16].mxu0 %vm223_vm1, %v14866_v20 }
 0x127   :  { %12074 = vmatprep.mubr.msk.bf16.mxu0 %vm223_vm1, %v14868_v21 }
 0x12e   :  { %12075 = vmatmul.mubr.msk.bf16.gmra.mrb[20].mxu0 %vm223_vm1, %v14886_v28 }
 0x12f   :  { %12078 = vmatprep.mubr.msk.bf16.mxu0 %vm223_vm1, %v14888_v30 }
 0x136   :  { %12079 = vmatmul.mubr.msk.bf16.gmra.mrb[24].mxu0 %vm223_vm1, %v14906_v41 }
 0x137   :  { %12082 = vmatprep.mubr.msk.bf16.mxu0 %vm223_vm1, %v14908_v49 }
 0x13e   :  { %12083 = vmatmul.mubr.msk.bf16.gmra.mrb[28].mxu0 %vm223_vm1, %v14926_v63 }
 0x13f   :  { %12086 = vmatprep.mubr.msk.bf16.mxu0 %vm223_vm1, %v1081_v2  ;;  %v14985_v2 = vpack.c.bf16 %v1046_v55, %v1045_v50  ;;  %v15023_v50 = vpack.c.bf16 %v1052_v35, %v1051_v27  ;;  %v15025_v55 = vpack.c.bf16 %v1054_v29, %v1053_v40  ;;  %v15043_v27 = vpack.c.bf16 %v1056_v10, %v1055_v3  ;;  %v1059_v40 = vld [vmem:[%s17312_s0 + $0x2ea] sm:$0xff]  ;;  %v1060_v29 = vld [vmem:[%s17312_s0 + $0x2f2] sm:$0xff]  ;;  %v1061_v3 = vld [vmem:[%s17312_s0 + $0x302] sm:$0xff] }
 0x140   :  { %v15045_v35 = vpack.c.bf16 %v1058_v14, %v1057_v11  ;;  %v1062_v10 = vld [vmem:[%s17312_s0 + $0x30a] sm:$0xff]  ;;  %v15063_v11 = vpack.c.bf16 %v1060_v29, %v1059_v40  ;;  %v2297_v40 = vsel %vm320_vm0, %v14788_v36, 0 }
 0x141   :  { %17330 = vst [vmem:[#allocation4_spill] sm:$0xff] %v15025_v55  ;;  %17331 = vst [vmem:[#allocation5_spill] sm:$0xff] %v15043_v27  ;;  %v15065_v14 = vpack.c.bf16 %v1062_v10, %v1061_v3  ;;  %v10686_v29 = vld [vmem:[%s17311_s1 + $0xa] sm:$0x3] }
 0x142   :  { %17332 = vst [vmem:[#allocation6_spill] sm:$0xff] %v15045_v35  ;;  %v10540_v36 = vld [vmem:[%s17312_s0 + $0xc9] sm:$0xff] }
 0x146   :  { %12087 = vmatmul.mubr.msk.bf16.gmra.mrb[32].mxu0 %vm223_vm1, %v14943_v17 }
 0x147   :  { %12090 = vmatprep.mubr.msk.bf16.mxu0 %vm223_vm1, %v14945_v22 }
 0x14e   :  { %12091 = vmatmul.mubr.msk.bf16.gmra.mrb[36].mxu0 %vm223_vm1, %v14963_v39 }
 0x14f   :  { %12094 = vmatprep.mubr.msk.bf16.mxu0 %vm223_vm1, %v14965_v48 }
 0x156   :  { %12095 = vmatmul.mubr.msk.bf16.gmra.mrb[40].mxu0 %vm223_vm1, %v14983_v60 }
 0x157   :  { %12098 = vmatprep.mubr.msk.bf16.mxu0 %vm223_vm1, %v14985_v2 }
 0x15e   :  { %12099 = vmatmul.mubr.msk.bf16.gmra.mrb[44].mxu0 %vm223_vm1, %v15003_v25 }
 0x15f   :  { %12102 = vmatprep.mubr.msk.bf16.mxu0 %vm223_vm1, %v15005_v26 }
 0x166   :  { %12103 = vmatmul.mubr.msk.bf16.gmra.mrb[48].mxu0 %vm223_vm1, %v15023_v50 }
 0x167   :  { %12106 = vmatprep.mubr.msk.bf16.mxu0 %vm223_vm1, %v15025_v55 }
 0x16e   :  { %12107 = vmatmul.mubr.msk.bf16.gmra.mrb[52].mxu0 %vm223_vm1, %v15043_v27  ;;  %v1064_v27 = vld [vmem:[%s17312_s0 + $0x322] sm:$0xff] }
 0x16f   :  { %12110 = vmatprep.mubr.msk.bf16.mxu0 %vm223_vm1, %v15045_v35  ;;  %v1063_v35 = vld [vmem:[%s17312_s0 + $0x31a] sm:$0xff] }
 0x170   :  { %v15077_v55 = vpack.c.bf16 %v1064_v27, %v1063_v35  ;;  %v10541_v27 = vld [vmem:[%s17312_s0 + $0xd9] sm:$0xff]  ;;  %v10542_v35 = vld [vmem:[%s17312_s0 + $0xe1] sm:$0xff] }
 0x171   :  { %v15256_v10 = vpack.c.bf16 %v10542_v35, %v10541_v27  ;;  %v10559_v27 = vld [vmem:[%s17312_s0 + $0x1e1] sm:$0xff]  ;;  %v10560_v35 = vld [vmem:[%s17312_s0 + $0x1e9] sm:$0xff] }
 0x176   :  { %12111 = vmatmul.mubr.msk.bf16.gmra.mrb[56].mxu0 %vm223_vm1, %v15063_v11 }
 0x177   :  { %12114 = vmatprep.mubr.msk.bf16.mxu0 %vm223_vm1, %v15065_v14 }
 0x17e   :  { %12115 = vmatmul.mubr.msk.bf16.gmra.mrb[60].mxu0 %vm223_vm1, %v15077_v55 }
 0x17f   :  { %12120 = vmatprep.mubr.msk.bf16.mxu0 %vm223_vm1, %v14454_v45  ;;  %v10458_v45 = vld [vmem:[%s17312_s0 + $0x180] sm:$0xff] }
 0x186   :  { %12121 = vmatmul.mubr.msk.bf16.vlgmr.msra.gmra.mrb[0].mxu0 %vm223_vm1, %v14456_v46  ;;  %v10459_v46 = vld [vmem:[%s17312_s0 + $0x188] sm:$0xff] }
 0x187   :  { %12185 = vmatpush3.bf16.msra.mxu0 %v2297_v40  ;;  %12124 = vmatprep.mubr.msk.bf16.mxu0 %vm223_vm1, %v14483_v52  ;;  %v15123_v52 = vpack.c.bf16 %v10459_v46, %v10458_v45  ;;  %v10543_v40 = vld [vmem:[%s17312_s0 + $0xf1] sm:$0xff]  ;;  %v10545_v45 = vld [vmem:[%s17312_s0 + $0x109] sm:$0xff] }
 0x188   :  { %14137 = vmatprep.subr.msk.bf16.mxu0 %vm320_vm0, %v10686_v29  ;;  %v10546_v46 = vld [vmem:[%s17312_s0 + $0x111] sm:$0xff] }
 0x18e   :  { %12125 = vmatmul.mubr.msk.bf16.gmra.mrb[4].mxu0 %vm223_vm1, %v14485_v53  ;;  %v10490_v53 = vld [vmem:[%s17312_s0 + $0x330] sm:$0xff] }
 0x18f   :  { %12128 = vmatprep.mubr.msk.bf16.mxu0 %vm223_vm1, %v14503_v58  ;;  %v10491_v58 = vld [vmem:[%s17312_s0 + $0x338] sm:$0xff] }
 0x196   :  { %12129 = vmatmul.mubr.msk.bf16.gmra.mrb[8].mxu0 %vm223_vm1, %v14505_v59  ;;  %v10525_v59 = vld [vmem:[%s17312_s0 + $0x19] sm:$0xff] }
 0x197   :  { %12132 = vmatprep.mubr.msk.bf16.mxu0 %vm223_vm1, %v14523_v0  ;;  %v10526_v0 = vld [vmem:[%s17312_s0 + $0x21] sm:$0xff] }
 0x19e   :  { %12133 = vmatmul.mubr.msk.bf16.gmra.mrb[12].mxu0 %vm223_vm1, %v14525_v1  ;;  %v15169_v1 = vpack.c.bf16 %v10491_v58, %v10490_v53  ;;  %v15276_v58 = vpack.c.bf16 %v10546_v46, %v10545_v45  ;;  %v15351_v45 = vpack.c.bf16 %v10560_v35, %v10559_v27  ;;  %v10572_v27 = vld [vmem:[%s17312_s0 + $0x279] sm:$0xff]  ;;  %v10573_v35 = vld [vmem:[%s17312_s0 + $0x289] sm:$0xff] }
 0x19f   :  { %12136 = vmatprep.mubr.msk.bf16.mxu0 %vm223_vm1, %v14543_v6  ;;  %v2166_v6 = vpack.c.bf16 %v10526_v0, %v10525_v59  ;;  %v10547_v59 = vld [vmem:[%s17312_s0 + $0x121] sm:$0xff]  ;;  %v10548_v0 = vld [vmem:[%s17312_s0 + $0x129] sm:$0xff] }
 0x1a6   :  { %12137 = vmatmul.mubr.msk.bf16.gmra.mrb[16].mxu0 %vm223_vm1, %v14545_v7  ;;  %v10527_v7 = vld [vmem:[%s17312_s0 + $0x31] sm:$0xff] }
 0x1a7   :  { %12140 = vmatprep.mubr.msk.bf16.mxu0 %vm223_vm1, %v14563_v12  ;;  %v10528_v12 = vld [vmem:[%s17312_s0 + $0x39] sm:$0xff] }
 0x1ae   :  { %12141 = vmatmul.mubr.msk.bf16.gmra.mrb[20].mxu0 %vm223_vm1, %v14565_v13  ;;  %v10529_v13 = vld [vmem:[%s17312_s0 + $0x49] sm:$0xff] }
 0x1af   :  { %12144 = vmatprep.mubr.msk.bf16.mxu0 %vm223_vm1, %v14583_v18  ;;  %v10530_v18 = vld [vmem:[%s17312_s0 + $0x51] sm:$0xff] }
 0x1b6   :  { %12145 = vmatmul.mubr.msk.bf16.gmra.mrb[24].mxu0 %vm223_vm1, %v14585_v19  ;;  %v15186_v19 = vpack.c.bf16 %v10528_v12, %v10527_v7  ;;  %v10550_v7 = vld [vmem:[%s17312_s0 + $0x141] sm:$0xff]  ;;  %v15294_v12 = vpack.c.bf16 %v10548_v0, %v10547_v59  ;;  %v10563_v59 = vld [vmem:[%s17312_s0 + $0x211] sm:$0xff]  ;;  %v10564_v0 = vld [vmem:[%s17312_s0 + $0x219] sm:$0xff] }
 0x1b7   :  { %12148 = vmatprep.mubr.msk.bf16.mxu0 %vm223_vm1, %v14603_v24  ;;  %v15188_v24 = vpack.c.bf16 %v10530_v18, %v10529_v13  ;;  %v10551_v18 = vld [vmem:[%s17312_s0 + $0x151] sm:$0xff] }
 0x1be   :  { %12149 = vmatmul.mubr.msk.bf16.gmra.mrb[28].mxu0 %vm223_vm1, %v15123_v52 }
 0x1bf   :  { %12152 = vmatprep.mubr.msk.bf16.mxu0 %vm223_vm1, %v14620_v31  ;;  %v2847_v31 = vsel %vm320_vm0, %v10686_v29, 0  ;;  %v10544_v29 = vld [vmem:[%s17312_s0 + $0xf9] sm:$0xff] }
 0x1c0   :  { %v15274_v53 = vpack.c.bf16 %v10544_v29, %v10543_v40  ;;  %v10561_v40 = vld [vmem:[%s17312_s0 + $0x1f9] sm:$0xff]  ;;  %v10562_v29 = vld [vmem:[%s17312_s0 + $0x201] sm:$0xff] }
 0x1c1   :  { %v15353_v46 = vpack.c.bf16 %v10562_v29, %v10561_v40  ;;  %v10574_v40 = vld [vmem:[%s17312_s0 + $0x291] sm:$0xff] }
 0x1c6   :  { %12153 = vmatmul.mubr.msk.bf16.gmra.mrb[32].mxu0 %vm223_vm1, %v14622_v32  ;;  %v15196_v32 = vld [vmem:[%s17311_s1 + $0xc] sm:$0x3] }
 0x1c7   :  { %12156 = vmatprep.mubr.msk.bf16.mxu0 %vm223_vm1, %v14640_v37  ;;  %v10531_v37 = vld [vmem:[%s17312_s0 + $0x61] sm:$0xff] }
 0x1ce   :  { %12157 = vmatmul.mubr.msk.bf16.gmra.mrb[36].mxu0 %vm223_vm1, %v14642_v38  ;;  %v10532_v38 = vld [vmem:[%s17312_s0 + $0x69] sm:$0xff] }
 0x1cf   :  { %12160 = vmatprep.mubr.msk.bf16.mxu0 %vm223_vm1, %v14660_v43  ;;  %v10533_v43 = vld [vmem:[%s17312_s0 + $0x79] sm:$0xff] }
 0x1d6   :  { %12161 = vmatmul.mubr.msk.bf16.gmra.mrb[40].mxu0 %vm223_vm1, %v14662_v44  ;;  %v10534_v44 = vld [vmem:[%s17312_s0 + $0x81] sm:$0xff] }
 0x1d7   :  { %12164 = vmatprep.mubr.msk.bf16.mxu0 %vm223_vm1, %v14680_v51  ;;  %v15214_v51 = vpack.c.bf16 %v10532_v38, %v10531_v37  ;;  %v10553_v37 = vld [vmem:[%s17312_s0 + $0x169] sm:$0xff]  ;;  %v10554_v38 = vld [vmem:[%s17312_s0 + $0x171] sm:$0xff] }
 0x1de   :  { %12165 = vmatmul.mubr.msk.bf16.gmra.mrb[44].mxu0 %vm223_vm1, %v14682_v54  ;;  %v15216_v54 = vpack.c.bf16 %v10534_v44, %v10533_v43  ;;  %v15316_v44 = vpack.c.bf16 %v10554_v38, %v10553_v37  ;;  %v10567_v37 = vld [vmem:[%s17312_s0 + $0x241] sm:$0xff]  ;;  %v10568_v38 = vld [vmem:[%s17312_s0 + $0x249] sm:$0xff] }
 0x1df   :  { %12168 = vmatprep.mubr.msk.bf16.mxu0 %vm223_vm1, %v14700_v61  ;;  %v10535_v61 = vld [vmem:[%s17312_s0 + $0x91] sm:$0xff] }
 0x1e6   :  { %12169 = vmatmul.mubr.msk.bf16.gmra.mrb[48].mxu0 %vm223_vm1, %v14702_v62  ;;  %v10536_v62 = vld [vmem:[%s17312_s0 + $0x99] sm:$0xff] }
 0x1e7   :  { %12172 = vmatprep.mubr.msk.bf16.mxu0 %vm223_vm1, %v14720_v5  ;;  %v10537_v5 = vld [vmem:[%s17312_s0 + $0xa9] sm:$0xff] }
 0x1ee   :  { %12173 = vmatmul.mubr.msk.bf16.gmra.mrb[52].mxu0 %vm223_vm1, %v14722_v8  ;;  %v10538_v8 = vld [vmem:[%s17312_s0 + $0xb1] sm:$0xff] }
 0x1ef   :  { %12176 = vmatprep.mubr.msk.bf16.mxu0 %vm223_vm1, %v14740_v15  ;;  %v15234_v15 = vpack.c.bf16 %v10536_v62, %v10535_v61  ;;  %v10555_v61 = vld [vmem:[%s17312_s0 + $0x181] sm:$0xff]  ;;  %v10556_v62 = vld [vmem:[%s17312_s0 + $0x189] sm:$0xff] }
 0x1f6   :  { %12177 = vmatmul.mubr.msk.bf16.gmra.mrb[56].mxu0 %vm223_vm1, %v14742_v16  ;;  %v15236_v16 = vpack.c.bf16 %v10538_v8, %v10537_v5  ;;  %v10557_v5 = vld [vmem:[%s17312_s0 + $0x1c9] sm:$0xff]  ;;  %v10558_v8 = vld [vmem:[%s17312_s0 + $0x1d1] sm:$0xff] }
 0x1f7   :  { %12180 = vmatprep.mubr.msk.bf16.mxu0 %vm223_vm1, %v14760_v23  ;;  %v10539_v23 = vld [vmem:[%s17312_s0 + $0xc1] sm:$0xff] }
 0x1f8   :  { %v15254_v3 = vpack.c.bf16 %v10540_v36, %v10539_v23  ;;  %v15334_v23 = vpack.c.bf16 %v10556_v62, %v10555_v61  ;;  %v2182_v36 = vpack.c.bf16 %v10558_v8, %v10557_v5  ;;  %v10569_v61 = vld [vmem:[%s17312_s0 + $0x259] sm:$0xff]  ;;  %v10570_v62 = vld [vmem:[%s17312_s0 + $0x261] sm:$0xff]  ;;  %v15391_v5 = vpack.c.bf16 %v10568_v38, %v10567_v37 }
 0x1f9   :  { %v15393_v8 = vpack.c.bf16 %v10570_v62, %v10569_v61  ;;  %v10578_v37 = vld [vmem:[%s17312_s0 + $0x2c1] sm:$0xff]  ;;  %v10579_v62 = vld [vmem:[%s17312_s0 + $0x2d1] sm:$0xff] }
 0x1fe   :  { %12181 = vmatmul.mubr.msk.bf16.gmra.mrb[60].mxu0 %vm223_vm1, %v15169_v1 }
 0x1ff   :  { %12186 = vmatprep.mubr.msk.bf16.mxu0 %vm223_vm1, %v2166_v6  ;;  %v10549_v6 = vld [vmem:[%s17312_s0 + $0x139] sm:$0xff] }
 0x200   :  { %v15296_v13 = vpack.c.bf16 %v10550_v7, %v10549_v6  ;;  %v10565_v6 = vld [vmem:[%s17312_s0 + $0x229] sm:$0xff]  ;;  %v10566_v7 = vld [vmem:[%s17312_s0 + $0x231] sm:$0xff] }
 0x206   :  { %12187 = vmatmul.mubr.msk.bf16.vlgmr.msra.gmra.mrb[0].mxu0 %vm223_vm1, %v15186_v19 }
 0x207   :  { %12251 = vmatpush3.bf16.msra.mxu0 %v2847_v31  ;;  %12190 = vmatprep.mubr.msk.bf16.mxu0 %vm223_vm1, %v15188_v24  ;;  %v10552_v31 = vld [vmem:[%s17312_s0 + $0x159] sm:$0xff] }
 0x208   :  { %14138 = vmatprep.subr.msk.bf16.mxu0 %vm320_vm0, %v15196_v32  ;;  %v15314_v43 = vpack.c.bf16 %v10552_v31, %v10551_v18  ;;  %v15371_v18 = vpack.c.bf16 %v10564_v0, %v10563_v59  ;;  %v15373_v31 = vpack.c.bf16 %v10566_v7, %v10565_v6  ;;  %v15413_v59 = vpack.c.bf16 %v10574_v40, %v10573_v35  ;;  %v10575_v0 = vld [vmem:[%s17312_s0 + $0x2a1] sm:$0xff]  ;;  %v10576_v6 = vld [vmem:[%s17312_s0 + $0x2a9] sm:$0xff]  ;;  %v10577_v7 = vld [vmem:[%s17312_s0 + $0x2b9] sm:$0xff] }
 0x209   :  { %v15431_v38 = vpack.c.bf16 %v10576_v6, %v10575_v0  ;;  %v15433_v61 = vpack.c.bf16 %v10578_v37, %v10577_v7  ;;  %v10582_v35 = vld [vmem:[%s17312_s0 + $0x2f1] sm:$0xff]  ;;  %v10583_v6 = vld [vmem:[%s17312_s0 + $0x301] sm:$0xff]  ;;  %v10584_v7 = vld [vmem:[%s17312_s0 + $0x309] sm:$0xff] }
 0x20a   :  { %v10585_v37 = vld [vmem:[%s17312_s0 + $0x319] sm:$0xff] }
 0x20e   :  { %12191 = vmatmul.mubr.msk.bf16.gmra.mrb[4].mxu0 %vm223_vm1, %v15214_v51 }
 0x20f   :  { %12194 = vmatprep.mubr.msk.bf16.mxu0 %vm223_vm1, %v15216_v54 }
 0x216   :  { %12195 = vmatmul.mubr.msk.bf16.gmra.mrb[8].mxu0 %vm223_vm1, %v15234_v15 }
 0x217   :  { %12198 = vmatprep.mubr.msk.bf16.mxu0 %vm223_vm1, %v15236_v16 }
 0x21e   :  { %12199 = vmatmul.mubr.msk.bf16.gmra.mrb[12].mxu0 %vm223_vm1, %v15254_v3 }
 0x21f   :  { %12202 = vmatprep.mubr.msk.bf16.mxu0 %vm223_vm1, %v15256_v10 }
 0x226   :  { %12203 = vmatmul.mubr.msk.bf16.gmra.mrb[16].mxu0 %vm223_vm1, %v15274_v53 }
 0x227   :  { %12206 = vmatprep.mubr.msk.bf16.mxu0 %vm223_vm1, %v15276_v58 }
 0x22e   :  { %12207 = vmatmul.mubr.msk.bf16.gmra.mrb[20].mxu0 %vm223_vm1, %v15294_v12 }
 0x22f   :  { %12210 = vmatprep.mubr.msk.bf16.mxu0 %vm223_vm1, %v15296_v13 }
 0x236   :  { %12211 = vmatmul.mubr.msk.bf16.gmra.mrb[24].mxu0 %vm223_vm1, %v15314_v43 }
 0x237   :  { %12214 = vmatprep.mubr.msk.bf16.mxu0 %vm223_vm1, %v15316_v44 }
 0x23e   :  { %12215 = vmatmul.mubr.msk.bf16.gmra.mrb[28].mxu0 %vm223_vm1, %v15334_v23 }
 0x23f   :  { %12218 = vmatprep.mubr.msk.bf16.mxu0 %vm223_vm1, %v2182_v36  ;;  %v10571_v36 = vld [vmem:[%s17312_s0 + $0x271] sm:$0xff] }
 0x240   :  { %v15411_v29 = vpack.c.bf16 %v10572_v27, %v10571_v36  ;;  %v10580_v36 = vld [vmem:[%s17312_s0 + $0x2d9] sm:$0xff]  ;;  %v10581_v27 = vld [vmem:[%s17312_s0 + $0x2e9] sm:$0xff] }
 0x241   :  { %v15451_v40 = vpack.c.bf16 %v10580_v36, %v10579_v62  ;;  %v15453_v0 = vpack.c.bf16 %v10582_v35, %v10581_v27  ;;  %v10586_v62 = vld [vmem:[%s17312_s0 + $0x321] sm:$0xff]  ;;  %v15471_v36 = vpack.c.bf16 %v10584_v7, %v10583_v6  ;;  %v10587_v35 = vld [vmem:[%s17312_s0 + $0x331] sm:$0xff]  ;;  %v3398_v6 = vsel %vm320_vm0, %v15196_v32, 0  ;;  %v10880_v7 = vld [vmem:[%s17311_s1 + $0xe] sm:$0x3] }
 0x242   :  { %v15473_v27 = vpack.c.bf16 %v10586_v62, %v10585_v37  ;;  %v10730_v32 = vld [vmem:[%s17312_s0 + $0xb0] sm:$0xff]  ;;  %v10732_v37 = vld [vmem:[%s17312_s0 + $0xc8] sm:$0xff] }
 0x243   :  { %17333 = vst [vmem:[#allocation7_spill] sm:$0xff] %v15451_v40  ;;  %17334 = vst [vmem:[#allocation8_spill] sm:$0xff] %v15453_v0 }
 0x246   :  { %12219 = vmatmul.mubr.msk.bf16.gmra.mrb[32].mxu0 %vm223_vm1, %v15351_v45 }
 0x247   :  { %12222 = vmatprep.mubr.msk.bf16.mxu0 %vm223_vm1, %v15353_v46 }
 0x24e   :  { %12223 = vmatmul.mubr.msk.bf16.gmra.mrb[36].mxu0 %vm223_vm1, %v15371_v18 }
 0x24f   :  { %12226 = vmatprep.mubr.msk.bf16.mxu0 %vm223_vm1, %v15373_v31 }
 0x256   :  { %12227 = vmatmul.mubr.msk.bf16.gmra.mrb[40].mxu0 %vm223_vm1, %v15391_v5 }
 0x257   :  { %12230 = vmatprep.mubr.msk.bf16.mxu0 %vm223_vm1, %v15393_v8 }
 0x25e   :  { %12231 = vmatmul.mubr.msk.bf16.gmra.mrb[44].mxu0 %vm223_vm1, %v15411_v29 }
 0x25f   :  { %12234 = vmatprep.mubr.msk.bf16.mxu0 %vm223_vm1, %v15413_v59 }
 0x266   :  { %12235 = vmatmul.mubr.msk.bf16.gmra.mrb[48].mxu0 %vm223_vm1, %v15431_v38 }
 0x267   :  { %12238 = vmatprep.mubr.msk.bf16.mxu0 %vm223_vm1, %v15433_v61 }
 0x26e   :  { %12239 = vmatmul.mubr.msk.bf16.gmra.mrb[52].mxu0 %vm223_vm1, %v15451_v40 }
 0x26f   :  { %12242 = vmatprep.mubr.msk.bf16.mxu0 %vm223_vm1, %v15453_v0  ;;  %v10588_v0 = vld [vmem:[%s17312_s0 + $0x339] sm:$0xff] }
 0x270   :  { %v15485_v40 = vpack.c.bf16 %v10588_v0, %v10587_v35  ;;  %v10731_v0 = vld [vmem:[%s17312_s0 + $0xc0] sm:$0xff] }
 0x271   :  { %v3273_v35 = vpack.c.bf16 %v10732_v37, %v10731_v0  ;;  %v10754_v0 = vld [vmem:[%s17312_s0 + $0x200] sm:$0xff]  ;;  %v10755_v37 = vld [vmem:[%s17312_s0 + $0x210] sm:$0xff] }
 0x276   :  { %12243 = vmatmul.mubr.msk.bf16.gmra.mrb[56].mxu0 %vm223_vm1, %v15471_v36 }
 0x277   :  { %12246 = vmatprep.mubr.msk.bf16.mxu0 %vm223_vm1, %v15473_v27 }
 0x27e   :  { %12247 = vmatmul.mubr.msk.bf16.gmra.mrb[60].mxu0 %vm223_vm1, %v15485_v40 }
 0x27f   :  { %12252 = vmatprep.mubr.msk.bf16.mxu0 %vm223_vm1, %v14777_v33  ;;  %v10652_v33 = vld [vmem:[%s17312_s0 + $0x182] sm:$0xff] }
 0x286   :  { %12253 = vmatmul.mubr.msk.bf16.vlgmr.msra.gmra.mrb[0].mxu0 %vm223_vm1, %v14779_v34  ;;  %v10653_v34 = vld [vmem:[%s17312_s0 + $0x18a] sm:$0xff] }
 0x287   :  { %12317 = vmatpush3.bf16.msra.mxu0 %v3398_v6  ;;  %12256 = vmatprep.mubr.msk.bf16.mxu0 %vm223_vm1, %v14806_v42  ;;  %v15531_v42 = vpack.c.bf16 %v10653_v34, %v10652_v33  ;;  %v10733_v6 = vld [vmem:[%s17312_s0 + $0xd8] sm:$0xff]  ;;  %v10735_v33 = vld [vmem:[%s17312_s0 + $0xf0] sm:$0xff] }
 0x288   :  { %14139 = vmatprep.subr.msk.bf16.mxu0 %vm320_vm0, %v10880_v7  ;;  %v10736_v34 = vld [vmem:[%s17312_s0 + $0xf8] sm:$0xff] }
 0x28e   :  { %12257 = vmatmul.mubr.msk.bf16.gmra.mrb[4].mxu0 %vm223_vm1, %v14808_v47  ;;  %v17335_v47 = vld [vmem:[#allocation4_spill] sm:$0xff] }
 0x28f   :  { %12260 = vmatprep.mubr.msk.bf16.mxu0 %vm223_vm1, %v14826_v56  ;;  %v17336_v56 = vld [vmem:[#allocation5_spill] sm:$0xff] }
 0x296   :  { %12261 = vmatmul.mubr.msk.bf16.gmra.mrb[8].mxu0 %vm223_vm1, %v14828_v57  ;;  %v17337_v57 = vld [vmem:[#allocation6_spill] sm:$0xff] }
 0x297   :  { %12264 = vmatprep.mubr.msk.bf16.mxu0 %vm223_vm1, %v14846_v4  ;;  %v10684_v4 = vld [vmem:[%s17312_s0 + $0x332] sm:$0xff] }
 0x29e   :  { %12265 = vmatmul.mubr.msk.bf16.gmra.mrb[12].mxu0 %vm223_vm1, %v14848_v9  ;;  %v10685_v9 = vld [vmem:[%s17312_s0 + $0x33a] sm:$0xff] }
 0x29f   :  { %12268 = vmatprep.mubr.msk.bf16.mxu0 %vm223_vm1, %v14866_v20  ;;  %v10719_v20 = vld [vmem:[%s17312_s0 + $0x30] sm:$0xff] }
 0x2a6   :  { %12269 = vmatmul.mubr.msk.bf16.gmra.mrb[16].mxu0 %vm223_vm1, %v14868_v21  ;;  %v10720_v21 = vld [vmem:[%s17312_s0 + $0x38] sm:$0xff] }
 0x2a7   :  { %12272 = vmatprep.mubr.msk.bf16.mxu0 %vm223_vm1, %v14886_v28  ;;  %v15577_v28 = vpack.c.bf16 %v10685_v9, %v10684_v4  ;;  %v10738_v4 = vld [vmem:[%s17312_s0 + $0x110] sm:$0xff]  ;;  %v10739_v9 = vld [vmem:[%s17312_s0 + $0x120] sm:$0xff] }
 0x2ae   :  { %12273 = vmatmul.mubr.msk.bf16.gmra.mrb[20].mxu0 %vm223_vm1, %v14888_v30  ;;  %v3267_v30 = vpack.c.bf16 %v10720_v21, %v10719_v20  ;;  %v10740_v20 = vld [vmem:[%s17312_s0 + $0x128] sm:$0xff] }
 0x2af   :  { %12276 = vmatprep.mubr.msk.bf16.mxu0 %vm223_vm1, %v14906_v41  ;;  %v10721_v41 = vld [vmem:[%s17312_s0 + $0x48] sm:$0xff] }
 0x2b6   :  { %12277 = vmatmul.mubr.msk.bf16.gmra.mrb[24].mxu0 %vm223_vm1, %v14908_v49  ;;  %v10722_v49 = vld [vmem:[%s17312_s0 + $0x50] sm:$0xff] }
 0x2b7   :  { %12280 = vmatprep.mubr.msk.bf16.mxu0 %vm223_vm1, %v14926_v63  ;;  %v10723_v63 = vld [vmem:[%s17312_s0 + $0x60] sm:$0xff] }
 0x2be   :  { %12281 = vmatmul.mubr.msk.bf16.gmra.mrb[28].mxu0 %vm223_vm1, %v15531_v42 }
 0x2bf   :  { %12284 = vmatprep.mubr.msk.bf16.mxu0 %vm223_vm1, %v14943_v17  ;;  %v10724_v17 = vld [vmem:[%s17312_s0 + $0x68] sm:$0xff] }
 0x2c6   :  { %12285 = vmatmul.mubr.msk.bf16.gmra.mrb[32].mxu0 %vm223_vm1, %v14945_v22  ;;  %v3268_v22 = vpack.c.bf16 %v10722_v49, %v10721_v41  ;;  %v10741_v41 = vld [vmem:[%s17312_s0 + $0x138] sm:$0xff]  ;;  %v10742_v49 = vld [vmem:[%s17312_s0 + $0x140] sm:$0xff] }
 0x2c7   :  { %12288 = vmatprep.mubr.msk.bf16.mxu0 %vm223_vm1, %v14963_v39  ;;  %v3269_v39 = vpack.c.bf16 %v10724_v17, %v10723_v63  ;;  %v10743_v63 = vld [vmem:[%s17312_s0 + $0x150] sm:$0xff]  ;;  %v10744_v17 = vld [vmem:[%s17312_s0 + $0x158] sm:$0xff] }
 0x2ce   :  { %12289 = vmatmul.mubr.msk.bf16.gmra.mrb[36].mxu0 %vm223_vm1, %v14965_v48  ;;  %v3948_v48 = vsel %vm320_vm0, %v10880_v7, 0  ;;  %v10734_v7 = vld [vmem:[%s17312_s0 + $0xe0] sm:$0xff] }
 0x2cf   :  { %12292 = vmatprep.mubr.msk.bf16.mxu0 %vm223_vm1, %v14983_v60  ;;  %v15599_v60 = vld [vmem:[%s17311_s1 + $0x10] sm:$0x3] }
 0x2d6   :  { %12293 = vmatmul.mubr.msk.bf16.gmra.mrb[40].mxu0 %vm223_vm1, %v14985_v2  ;;  %v10725_v2 = vld [vmem:[%s17312_s0 + $0x78] sm:$0xff] }
 0x2d7   :  { %12296 = vmatprep.mubr.msk.bf16.mxu0 %vm223_vm1, %v15003_v25  ;;  %v10726_v25 = vld [vmem:[%s17312_s0 + $0x80] sm:$0xff] }
 0x2de   :  { %12297 = vmatmul.mubr.msk.bf16.gmra.mrb[44].mxu0 %vm223_vm1, %v15005_v26  ;;  %v10727_v26 = vld [vmem:[%s17312_s0 + $0x90] sm:$0xff] }
 0x2df   :  { %12300 = vmatprep.mubr.msk.bf16.mxu0 %vm223_vm1, %v15023_v50  ;;  %v10728_v50 = vld [vmem:[%s17312_s0 + $0x98] sm:$0xff] }
 0x2e6   :  { %12301 = vmatmul.mubr.msk.bf16.gmra.mrb[48].mxu0 %vm223_vm1, %v17335_v47  ;;  %v3274_v47 = vpack.c.bf16 %v10734_v7, %v10733_v6  ;;  %v10757_v7 = vld [vmem:[%s17312_s0 + $0x228] sm:$0xff] }
 0x2e7   :  { %12304 = vmatprep.mubr.msk.bf16.mxu0 %vm223_vm1, %v17336_v56  ;;  %v3275_v56 = vpack.c.bf16 %v10736_v34, %v10735_v33  ;;  %v10758_v33 = vld [vmem:[%s17312_s0 + $0x230] sm:$0xff]  ;;  %v10759_v34 = vld [vmem:[%s17312_s0 + $0x240] sm:$0xff] }
 0x2ee   :  { %12305 = vmatmul.mubr.msk.bf16.gmra.mrb[52].mxu0 %vm223_vm1, %v17337_v57  ;;  %v10737_v57 = vld [vmem:[%s17312_s0 + $0x108] sm:$0xff] }
 0x2ef   :  { %12308 = vmatprep.mubr.msk.bf16.mxu0 %vm223_vm1, %v15063_v11  ;;  %v3271_v11 = vpack.c.bf16 %v10728_v50, %v10727_v26  ;;  %v3276_v21 = vpack.c.bf16 %v10738_v4, %v10737_v57  ;;  %v10749_v26 = vld [vmem:[%s17312_s0 + $0x198] sm:$0xff]  ;;  %v10750_v50 = vld [vmem:[%s17312_s0 + $0x1a0] sm:$0xff] }
 0x2f0   :  { %v10761_v4 = vld [vmem:[%s17312_s0 + $0x258] sm:$0xff] }
 0x2f6   :  { %12309 = vmatmul.mubr.msk.bf16.gmra.mrb[56].mxu0 %vm223_vm1, %v15065_v14  ;;  %v10729_v14 = vld [vmem:[%s17312_s0 + $0xa8] sm:$0xff] }
 0x2f7   :  { %12312 = vmatprep.mubr.msk.bf16.mxu0 %vm223_vm1, %v15077_v55  ;;  %v3270_v55 = vpack.c.bf16 %v10726_v25, %v10725_v2  ;;  %v3272_v62 = vpack.c.bf16 %v10730_v32, %v10729_v14  ;;  %v10746_v2 = vld [vmem:[%s17312_s0 + $0x170] sm:$0xff]  ;;  %v3282_v14 = vpack.c.bf16 %v10750_v50, %v10749_v26  ;;  %v10772_v50 = vld [vmem:[%s17312_s0 + $0x2d8] sm:$0xff] }
 0x2f8   :  { %v10771_v26 = vld [vmem:[%s17312_s0 + $0x2d0] sm:$0xff] }
 0x2fe   :  { %12313 = vmatmul.mubr.msk.bf16.gmra.mrb[60].mxu0 %vm223_vm1, %v15577_v28 }
 0x2ff   :  { %12318 = vmatprep.mubr.msk.bf16.mxu0 %vm223_vm1, %v3267_v30  ;;  %v3277_v30 = vpack.c.bf16 %v10740_v20, %v10739_v9  ;;  %v10762_v9 = vld [vmem:[%s17312_s0 + $0x260] sm:$0xff]  ;;  %v10763_v20 = vld [vmem:[%s17312_s0 + $0x270] sm:$0xff] }
 0x306   :  { %12319 = vmatmul.mubr.msk.bf16.vlgmr.msra.gmra.mrb[0].mxu0 %vm223_vm1, %v3268_v22  ;;  %v3278_v22 = vpack.c.bf16 %v10742_v49, %v10741_v41  ;;  %v10765_v49 = vld [vmem:[%s17312_s0 + $0x288] sm:$0xff] }
 0x307   :  { %12383 = vmatpush3.bf16.msra.mxu0 %v3948_v48  ;;  %12322 = vmatprep.mubr.msk.bf16.mxu0 %vm223_vm1, %v3269_v39  ;;  %v3279_v39 = vpack.c.bf16 %v10744_v17, %v10743_v63  ;;  %v10745_v48 = vld [vmem:[%s17312_s0 + $0x168] sm:$0xff]  ;;  %v10766_v63 = vld [vmem:[%s17312_s0 + $0x290] sm:$0xff]  ;;  %v10767_v17 = vld [vmem:[%s17312_s0 + $0x2a0] sm:$0xff] }
 0x308   :  { %14140 = vmatprep.subr.msk.bf16.mxu0 %vm320_vm0, %v15599_v60  ;;  %v3280_v25 = vpack.c.bf16 %v10746_v2, %v10745_v48  ;;  %v10769_v2 = vld [vmem:[%s17312_s0 + $0x2b8] sm:$0xff] }
 0x30e   :  { %12323 = vmatmul.mubr.msk.bf16.gmra.mrb[4].mxu0 %vm223_vm1, %v3270_v55  ;;  %v10751_v55 = vld [vmem:[%s17312_s0 + $0x1e0] sm:$0xff] }
 0x30f   :  { %12326 = vmatprep.mubr.msk.bf16.mxu0 %vm223_vm1, %v3271_v11  ;;  %v10752_v11 = vld [vmem:[%s17312_s0 + $0x1e8] sm:$0xff] }
 0x310   :  { %v3283_v32 = vpack.c.bf16 %v10752_v11, %v10751_v55  ;;  %v3293_v11 = vpack.c.bf16 %v10772_v50, %v10771_v26 }
 0x316   :  { %12327 = vmatmul.mubr.msk.bf16.gmra.mrb[8].mxu0 %vm223_vm1, %v3272_v62  ;;  %v10756_v62 = vld [vmem:[%s17312_s0 + $0x218] sm:$0xff] }
 0x317   :  { %12330 = vmatprep.mubr.msk.bf16.mxu0 %vm223_vm1, %v3273_v35  ;;  %v3285_v6 = vpack.c.bf16 %v10756_v62, %v10755_v37 }
 0x31e   :  { %12331 = vmatmul.mubr.msk.bf16.gmra.mrb[12].mxu0 %vm223_vm1, %v3274_v47  ;;  %v10760_v47 = vld [vmem:[%s17312_s0 + $0x248] sm:$0xff] }
 0x31f   :  { %12334 = vmatprep.mubr.msk.bf16.mxu0 %vm223_vm1, %v3275_v56  ;;  %v3286_v56 = vpack.c.bf16 %v10758_v33, %v10757_v7  ;;  %v3287_v57 = vpack.c.bf16 %v10760_v47, %v10759_v34  ;;  %v10781_v33 = vld [vmem:[%s17312_s0 + $0x348] sm:$0xff]  ;;  %v10782_v34 = vld [vmem:[%s17312_s0 + $0x350] sm:$0xff] }
 0x320   :  { %v3298_v47 = vpack.c.bf16 %v10782_v34, %v10781_v33  ;;  %v10950_v33 = vld [vmem:[%s17312_s0 + $0x21a] sm:$0xff] }
 0x326   :  { %12335 = vmatmul.mubr.msk.bf16.gmra.mrb[16].mxu0 %vm223_vm1, %v3276_v21  ;;  %v10764_v21 = vld [vmem:[%s17312_s0 + $0x278] sm:$0xff] }
 0x327   :  { %12338 = vmatprep.mubr.msk.bf16.mxu0 %vm223_vm1, %v3277_v30  ;;  %v3288_v30 = vpack.c.bf16 %v10762_v9, %v10761_v4  ;;  %v3289_v41 = vpack.c.bf16 %v10764_v21, %v10763_v20  ;;  %v10929_v4 = vld [vmem:[%s17312_s0 + $0xf2] sm:$0xff]  ;;  %v10930_v9 = vld [vmem:[%s17312_s0 + $0xfa] sm:$0xff] }
 0x328   :  { %v4375_v21 = vpack.c.bf16 %v10930_v9, %v10929_v4 }
 0x32e   :  { %12339 = vmatmul.mubr.msk.bf16.gmra.mrb[20].mxu0 %vm223_vm1, %v3278_v22  ;;  %v10768_v22 = vld [vmem:[%s17312_s0 + $0x2a8] sm:$0xff] }
 0x32f   :  { %12342 = vmatprep.mubr.msk.bf16.mxu0 %vm223_vm1, %v3279_v39  ;;  %v3290_v39 = vpack.c.bf16 %v10766_v63, %v10765_v49  ;;  %v3291_v48 = vpack.c.bf16 %v10768_v22, %v10767_v17  ;;  %v10933_v49 = vld [vmem:[%s17312_s0 + $0x122] sm:$0xff]  ;;  %v10934_v63 = vld [vmem:[%s17312_s0 + $0x12a] sm:$0xff] }
 0x330   :  { %v4377_v22 = vpack.c.bf16 %v10934_v63, %v10933_v49  ;;  %v10975_v63 = vld [vmem:[%s17312_s0 + $0x34a] sm:$0xff] }
 0x336   :  { %12343 = vmatmul.mubr.msk.bf16.gmra.mrb[24].mxu0 %vm223_vm1, %v3280_v25  ;;  %v10770_v25 = vld [vmem:[%s17312_s0 + $0x2c0] sm:$0xff] }
 0x337   :  { %12346 = vmatprep.mubr.msk.bf16.mxu0 %vm223_vm1, %v15123_v52  ;;  %v10753_v52 = vld [vmem:[%s17312_s0 + $0x1f8] sm:$0xff]  ;;  %v3292_v55 = vpack.c.bf16 %v10770_v25, %v10769_v2 }
 0x338   :  { %v3284_v35 = vpack.c.bf16 %v10754_v0, %v10753_v52  ;;  %v10775_v52 = vld [vmem:[%s17312_s0 + $0x300] sm:$0xff]  ;;  %v10776_v0 = vld [vmem:[%s17312_s0 + $0x308] sm:$0xff]  ;;  %v10937_v2 = vld [vmem:[%s17312_s0 + $0x152] sm:$0xff] }
 0x339   :  { %v3295_v62 = vpack.c.bf16 %v10776_v0, %v10775_v52  ;;  %v10938_v25 = vld [vmem:[%s17312_s0 + $0x15a] sm:$0xff]  ;;  %v10944_v52 = vld [vmem:[%s17312_s0 + $0x1a2] sm:$0xff] }
 0x33a   :  { %v4379_v50 = vpack.c.bf16 %v10938_v25, %v10937_v2  ;;  %v10945_v0 = vld [vmem:[%s17312_s0 + $0x1e2] sm:$0xff] }
 0x33e   :  { %12347 = vmatmul.mubr.msk.bf16.gmra.mrb[28].mxu0 %vm223_vm1, %v3282_v14  ;;  %v10773_v14 = vld [vmem:[%s17312_s0 + $0x2e8] sm:$0xff] }
 0x33f   :  { %12350 = vmatprep.mubr.msk.bf16.mxu0 %vm223_vm1, %v3283_v32  ;;  %v10774_v32 = vld [vmem:[%s17312_s0 + $0x2f0] sm:$0xff] }
 0x340   :  { %v3294_v37 = vpack.c.bf16 %v10774_v32, %v10773_v14  ;;  %v10943_v32 = vld [vmem:[%s17312_s0 + $0x19a] sm:$0xff] }
 0x346   :  { %12351 = vmatmul.mubr.msk.bf16.gmra.mrb[32].mxu0 %vm223_vm1, %v3284_v35  ;;  %v10777_v35 = vld [vmem:[%s17312_s0 + $0x318] sm:$0xff] }
 0x347   :  { %12354 = vmatprep.mubr.msk.bf16.mxu0 %vm223_vm1, %v3285_v6  ;;  %v10778_v6 = vld [vmem:[%s17312_s0 + $0x320] sm:$0xff] }
 0x348   :  { %v3296_v7 = vpack.c.bf16 %v10778_v6, %v10777_v35  ;;  %v10948_v6 = vld [vmem:[%s17312_s0 + $0x202] sm:$0xff] }
 0x34e   :  { %12355 = vmatmul.mubr.msk.bf16.gmra.mrb[36].mxu0 %vm223_vm1, %v3286_v56  ;;  %v4498_v56 = vsel %vm320_vm0, %v15599_v60, 0  ;;  %v10927_v60 = vld [vmem:[%s17312_s0 + $0xda] sm:$0xff] }
 0x34f   :  { %12358 = vmatprep.mubr.msk.bf16.mxu0 %vm223_vm1, %v3287_v57  ;;  %v10928_v57 = vld [vmem:[%s17312_s0 + $0xe2] sm:$0xff] }
 0x350   :  { %v4374_v20 = vpack.c.bf16 %v10928_v57, %v10927_v60 }
 0x356   :  { %12359 = vmatmul.mubr.msk.bf16.gmra.mrb[40].mxu0 %vm223_vm1, %v3288_v30  ;;  %v10931_v30 = vld [vmem:[%s17312_s0 + $0x10a] sm:$0xff] }
 0x357   :  { %12362 = vmatprep.mubr.msk.bf16.mxu0 %vm223_vm1, %v3289_v41  ;;  %v10932_v41 = vld [vmem:[%s17312_s0 + $0x112] sm:$0xff] }
 0x358   :  { %v4376_v17 = vpack.c.bf16 %v10932_v41, %v10931_v30  ;;  %v10972_v30 = vld [vmem:[%s17312_s0 + $0x322] sm:$0xff] }
 0x359   :  { %v14143_v41 = vld [vmem:[%s17313_s3] sm:$0xff]  }
 0x35e   :  { %12363 = vmatmul.mubr.msk.bf16.gmra.mrb[44].mxu0 %vm223_vm1, %v3290_v39  ;;  %v10935_v39 = vld [vmem:[%s17312_s0 + $0x13a] sm:$0xff] }
 0x35f   :  { %12366 = vmatprep.mubr.msk.bf16.mxu0 %vm223_vm1, %v3291_v48  ;;  %v10936_v48 = vld [vmem:[%s17312_s0 + $0x142] sm:$0xff] }
 0x360   :  { %v4378_v26 = vpack.c.bf16 %v10936_v48, %v10935_v39  ;;  %v16331_v39 = vld [vmem:[%s17314_s2] ss:$0 sm:$0xff] }
 0x366   :  { %12367 = vmatmul.mubr.msk.bf16.gmra.mrb[48].mxu0 %vm223_vm1, %v3292_v55  ;;  %v10939_v55 = vld [vmem:[%s17312_s0 + $0x16a] sm:$0xff] }
 0x367   :  { %12370 = vmatprep.mubr.msk.bf16.mxu0 %vm223_vm1, %v3293_v11  ;;  %v10940_v11 = vld [vmem:[%s17312_s0 + $0x172] sm:$0xff] }
 0x368   :  { %v4380_v14 = vpack.c.bf16 %v10940_v11, %v10939_v55 }
 0x36e   :  { %12371 = vmatmul.mubr.msk.bf16.gmra.mrb[52].mxu0 %vm223_vm1, %v3294_v37  ;;  %v10946_v37 = vld [vmem:[%s17312_s0 + $0x1ea] sm:$0xff] }
 0x36f   :  { %12374 = vmatprep.mubr.msk.bf16.mxu0 %vm223_vm1, %v3295_v62  ;;  %v4382_v62 = vpack.c.bf16 %v10944_v52, %v10943_v32  ;;  %v4383_v35 = vpack.c.bf16 %v10946_v37, %v10945_v0 }
 0x376   :  { %12375 = vmatmul.mubr.msk.bf16.gmra.mrb[56].mxu0 %vm223_vm1, %v3296_v7  ;;  %v10949_v7 = vld [vmem:[%s17312_s0 + $0x212] sm:$0xff] }
 0x377   :  { %12378 = vmatprep.mubr.msk.bf16.mxu0 %vm223_vm1, %v15169_v1  ;;  %v10846_v1 = vld [vmem:[%s17312_s0 + $0x199] sm:$0xff] }
 0x37e   :  { %12379 = vmatmul.mubr.msk.bf16.gmra.mrb[60].mxu0 %vm223_vm1, %v3298_v47  ;;  %v4385_v47 = vpack.c.bf16 %v10950_v33, %v10949_v7 }
 0x37f   :  { %12384 = vmatprep.mubr.msk.bf16.mxu0 %vm223_vm1, %v15186_v19  ;;  %v10847_v19 = vld [vmem:[%s17312_s0 + $0x1a1] sm:$0xff] }
 0x386   :  { %12385 = vmatmul.mubr.msk.bf16.vlgmr.msra.gmra.mrb[0].mxu0 %vm223_vm1, %v15188_v24  ;;  %v3832_v24 = vpack.c.bf16 %v10847_v19, %v10846_v1  ;;  %v10952_v1 = vld [vmem:[%s17312_s0 + $0x232] sm:$0xff]  ;;  %v10953_v19 = vld [vmem:[%s17312_s0 + $0x242] sm:$0xff] }
 0x387   :  { %12449 = vmatpush3.bf16.msra.mxu0 %v4498_v56  ;;  %12388 = vmatprep.mubr.msk.bf16.mxu0 %vm223_vm1, %v15214_v51  ;;  %v17338_v51 = vld [vmem:[#allocation7_spill] sm:$0xff]  ;;  %v10951_v56 = vld [vmem:[%s17312_s0 + $0x22a] sm:$0xff] }
 0x38e   :  { %12389 = vmatmul.mubr.msk.bf16.gmra.mrb[4].mxu0 %vm223_vm1, %v15216_v54  ;;  %v17339_v54 = vld [vmem:[#allocation8_spill] sm:$0xff] }
 0x38f   :  { %12392 = vmatprep.mubr.msk.bf16.mxu0 %vm223_vm1, %v15234_v15  ;;  %v10878_v15 = vld [vmem:[%s17312_s0 + $0x349] sm:$0xff] }
 0x396   :  { %12393 = vmatmul.mubr.msk.bf16.gmra.mrb[8].mxu0 %vm223_vm1, %v15236_v16  ;;  %v10879_v16 = vld [vmem:[%s17312_s0 + $0x351] sm:$0xff] }
 0x397   :  { %12396 = vmatprep.mubr.msk.bf16.mxu0 %vm223_vm1, %v15254_v3  ;;  %v10913_v3 = vld [vmem:[%s17312_s0 + $0x32] sm:$0xff] }
 0x39e   :  { %12397 = vmatmul.mubr.msk.bf16.gmra.mrb[12].mxu0 %vm223_vm1, %v15256_v10  ;;  %v10914_v10 = vld [vmem:[%s17312_s0 + $0x3a] sm:$0xff] }
 0x39f   :  { %12400 = vmatprep.mubr.msk.bf16.mxu0 %vm223_vm1, %v15274_v53  ;;  %v3848_v53 = vpack.c.bf16 %v10879_v16, %v10878_v15  ;;  %v10955_v15 = vld [vmem:[%s17312_s0 + $0x25a] sm:$0xff]  ;;  %v10956_v16 = vld [vmem:[%s17312_s0 + $0x262] sm:$0xff] }
 0x3a6   :  { %12401 = vmatmul.mubr.msk.bf16.gmra.mrb[16].mxu0 %vm223_vm1, %v15276_v58  ;;  %v4367_v58 = vpack.c.bf16 %v10914_v10, %v10913_v3  ;;  %v10957_v3 = vld [vmem:[%s17312_s0 + $0x272] sm:$0xff]  ;;  %v10958_v10 = vld [vmem:[%s17312_s0 + $0x27a] sm:$0xff] }
 0x3a7   :  { %12404 = vmatprep.mubr.msk.bf16.mxu0 %vm223_vm1, %v15294_v12  ;;  %v10915_v12 = vld [vmem:[%s17312_s0 + $0x4a] sm:$0xff] }
 0x3ae   :  { %12405 = vmatmul.mubr.msk.bf16.gmra.mrb[20].mxu0 %vm223_vm1, %v15296_v13  ;;  %v10916_v13 = vld [vmem:[%s17312_s0 + $0x52] sm:$0xff] }
 0x3af   :  { %12408 = vmatprep.mubr.msk.bf16.mxu0 %vm223_vm1, %v15314_v43  ;;  %v10917_v43 = vld [vmem:[%s17312_s0 + $0x62] sm:$0xff] }
 0x3b6   :  { %12409 = vmatmul.mubr.msk.bf16.gmra.mrb[24].mxu0 %vm223_vm1, %v15316_v44  ;;  %v10918_v44 = vld [vmem:[%s17312_s0 + $0x6a] sm:$0xff] }
 0x3b7   :  { %12412 = vmatprep.mubr.msk.bf16.mxu0 %vm223_vm1, %v15334_v23  ;;  %v4368_v23 = vpack.c.bf16 %v10916_v13, %v10915_v12  ;;  %v16032_v12 = vld [vmem:[%s17312_s0 + $0x28a] sm:$0xff]  ;;  %v16037_v13 = vld [vmem:[%s17312_s0 + $0x292] sm:$0xff] }
 0x3be   :  { %12413 = vmatmul.mubr.msk.bf16.gmra.mrb[28].mxu0 %vm223_vm1, %v3832_v24  ;;  %v10954_v24 = vld [vmem:[%s17312_s0 + $0x24a] sm:$0xff] }
 0x3bf   :  { %12416 = vmatprep.mubr.msk.bf16.mxu0 %vm223_vm1, %v15351_v45  ;;  %v4369_v45 = vpack.c.bf16 %v10918_v44, %v10917_v43  ;;  %v16042_v43 = vld [vmem:[%s17312_s0 + $0x2a2] sm:$0xff]  ;;  %v16047_v44 = vld [vmem:[%s17312_s0 + $0x2aa] sm:$0xff] }
 0x3c6   :  { %12417 = vmatmul.mubr.msk.bf16.gmra.mrb[32].mxu0 %vm223_vm1, %v15353_v46  ;;  %v10919_v46 = vld [vmem:[%s17312_s0 + $0x7a] sm:$0xff] }
 0x3c7   :  { %12420 = vmatprep.mubr.msk.bf16.mxu0 %vm223_vm1, %v15371_v18  ;;  %v10920_v18 = vld [vmem:[%s17312_s0 + $0x82] sm:$0xff] }
 0x3ce   :  { %12421 = vmatmul.mubr.msk.bf16.gmra.mrb[36].mxu0 %vm223_vm1, %v15373_v31  ;;  %v10921_v31 = vld [vmem:[%s17312_s0 + $0x92] sm:$0xff] }
 0x3cf   :  { %12424 = vmatprep.mubr.msk.bf16.mxu0 %vm223_vm1, %v15391_v5  ;;  %v10922_v5 = vld [vmem:[%s17312_s0 + $0x9a] sm:$0xff] }
 0x3d6   :  { %12425 = vmatmul.mubr.msk.bf16.gmra.mrb[40].mxu0 %vm223_vm1, %v15393_v8  ;;  %v4370_v8 = vpack.c.bf16 %v10920_v18, %v10919_v46  ;;  %v14153_v46 = vmov 0.0   ;;  %v10963_v18 = vld [vmem:[%s17312_s0 + $0x2ba] sm:$0xff] }
 0x3d7   :  { %12428 = vmatprep.mubr.msk.bf16.mxu0 %vm223_vm1, %v15411_v29  ;;  %v4371_v29 = vpack.c.bf16 %v10922_v5, %v10921_v31  ;;  %4996 = vst.msk [vmem:[#allocation2 + $0x30] sm:$0xff] %vm4988_vm2, %v14153_v46  ;;  %4997 = vst.msk [vmem:[#allocation2 + $0x38] sm:$0xff] %vm4988_vm2, %v14153_v46  ;;  %v10964_v31 = vld [vmem:[%s17312_s0 + $0x2c2] sm:$0xff]  ;;  %v10965_v5 = vld [vmem:[%s17312_s0 + $0x2d2] sm:$0xff] }
 0x3d8   :  { %4989 = vst.msk [vmem:[#allocation2] sm:$0xff] %vm4988_vm2, %v14153_v46  ;;  %4990 = vst.msk [vmem:[#allocation2 + $0x8] sm:$0xff] %vm4988_vm2, %v14153_v46 }
 0x3d9   :  { %4993 = vst.msk [vmem:[#allocation2 + $0x18] sm:$0xff] %vm4988_vm2, %v14153_v46  ;;  %4994 = vst.msk [vmem:[#allocation2 + $0x20] sm:$0xff] %vm4988_vm2, %v14153_v46 }
 0x3da   :  { %4999 = vst.msk [vmem:[#allocation2 + $0x48] sm:$0xff] %vm4988_vm2, %v14153_v46  ;;  %5000 = vst.msk [vmem:[#allocation2 + $0x50] sm:$0xff] %vm4988_vm2, %v14153_v46 }
 0x3db   :  { %5002 = vst.msk [vmem:[#allocation2 + $0x60] sm:$0xff] %vm4988_vm2, %v14153_v46  ;;  %5003 = vst.msk [vmem:[#allocation2 + $0x68] sm:$0xff] %vm4988_vm2, %v14153_v46 }
 0x3dc   :  { %5005 = vst.msk [vmem:[#allocation2 + $0x78] sm:$0xff] %vm4988_vm2, %v14153_v46  ;;  %5006 = vst.msk [vmem:[#allocation2 + $0x80] sm:$0xff] %vm4988_vm2, %v14153_v46 }
 0x3dd   :  { %5008 = vst.msk [vmem:[#allocation2 + $0x90] sm:$0xff] %vm4988_vm2, %v14153_v46  ;;  %5009 = vst.msk [vmem:[#allocation2 + $0x98] sm:$0xff] %vm4988_vm2, %v14153_v46 }
 0x3de   :  { %12429 = vmatmul.mubr.msk.bf16.gmra.mrb[44].mxu0 %vm223_vm1, %v15413_v59  ;;  %v10923_v59 = vld [vmem:[%s17312_s0 + $0xaa] sm:$0xff]  ;;  %5011 = vst.msk [vmem:[#allocation2 + $0xa8] sm:$0xff] %vm4988_vm2, %v14153_v46  ;;  %5012 = vst.msk [vmem:[#allocation2 + $0xb0] sm:$0xff] %vm4988_vm2, %v14153_v46 }
 0x3df   :  { %12432 = vmatprep.mubr.msk.bf16.mxu0 %vm223_vm1, %v15431_v38  ;;  %v10924_v38 = vld [vmem:[%s17312_s0 + $0xb2] sm:$0xff]  ;;  %5014 = vst.msk [vmem:[#allocation2 + $0xc0] sm:$0xff] %vm4988_vm2, %v14153_v46  ;;  %5015 = vst.msk [vmem:[#allocation2 + $0xc8] sm:$0xff] %vm4988_vm2, %v14153_v46  ;;  %v5261_v60 = vld [vmem:[#allocation2 + $0x1] sm:$0xff] }
 0x3e0   :  { %5017 = vst.msk [vmem:[#allocation2 + $0xd8] sm:$0xff] %vm4988_vm2, %v14153_v46  ;;  %5018 = vst.msk [vmem:[#allocation2 + $0xe0] sm:$0xff] %vm4988_vm2, %v14153_v46 }
 0x3e1   :  { %5020 = vst.msk [vmem:[#allocation2 + $0xf0] sm:$0xff] %vm4988_vm2, %v14153_v46  ;;  %5021 = vst.msk [vmem:[#allocation2 + $0xf8] sm:$0xff] %vm4988_vm2, %v14153_v46 }
 0x3e2   :  { %5023 = vst.msk [vmem:[#allocation2 + $0x108] sm:$0xff] %vm4988_vm2, %v14153_v46  ;;  %5024 = vst.msk [vmem:[#allocation2 + $0x110] sm:$0xff] %vm4988_vm2, %v14153_v46 }
 0x3e3   :  { %5026 = vst.msk [vmem:[#allocation2 + $0x120] sm:$0xff] %vm4988_vm2, %v14153_v46  ;;  %5027 = vst.msk [vmem:[#allocation2 + $0x128] sm:$0xff] %vm4988_vm2, %v14153_v46 }
 0x3e4   :  { %5029 = vst.msk [vmem:[#allocation2 + $0x138] sm:$0xff] %vm4988_vm2, %v14153_v46  ;;  %5030 = vst.msk [vmem:[#allocation2 + $0x140] sm:$0xff] %vm4988_vm2, %v14153_v46 }
 0x3e5   :  { %5032 = vst.msk [vmem:[#allocation2 + $0x150] sm:$0xff] %vm4988_vm2, %v14153_v46  ;;  %5033 = vst.msk [vmem:[#allocation2 + $0x158] sm:$0xff] %vm4988_vm2, %v14153_v46 }
 0x3e6   :  { %12433 = vmatmul.mubr.msk.bf16.gmra.mrb[48].mxu0 %vm223_vm1, %v15433_v61  ;;  %v10925_v61 = vld [vmem:[%s17312_s0 + $0xc2] sm:$0xff]  ;;  %5035 = vst.msk [vmem:[#allocation2 + $0x168] sm:$0xff] %vm4988_vm2, %v14153_v46  ;;  %5036 = vst.msk [vmem:[#allocation2 + $0x170] sm:$0xff] %vm4988_vm2, %v14153_v46 }
 0x3e7   :  { %12436 = vmatprep.mubr.msk.bf16.mxu0 %vm223_vm1, %v17338_v51  ;;  %v4386_v51 = vpack.c.bf16 %v10952_v1, %v10951_v56  ;;  %5038 = vst.msk [vmem:[#allocation2 + $0x180] sm:$0xff] %vm4988_vm2, %v14153_v46  ;;  %5039 = vst.msk [vmem:[#allocation2 + $0x188] sm:$0xff] %vm4988_vm2, %v14153_v46 }
 0x3e8   :  { %5041 = vst.msk [vmem:[#allocation2 + $0x198] sm:$0xff] %vm4988_vm2, %v14153_v46  ;;  %5042 = vst.msk [vmem:[#allocation2 + $0x1a0] sm:$0xff] %vm4988_vm2, %v14153_v46 }
 0x3e9   :  { %5044 = vst.msk [vmem:[#allocation2 + $0x1b0] sm:$0xff] %vm4988_vm2, %v14153_v46  ;;  %5045 = vst.msk [vmem:[#allocation2 + $0x1b8] sm:$0xff] %vm4988_vm2, %v14153_v46 }
 0x3ea   :  { %5047 = vst.msk [vmem:[#allocation2 + $0x1c8] sm:$0xff] %vm4988_vm2, %v14153_v46  ;;  %5048 = vst.msk [vmem:[#allocation2 + $0x1d0] sm:$0xff] %vm4988_vm2, %v14153_v46 }
 0x3eb   :  { %5050 = vst.msk [vmem:[#allocation2 + $0x1e0] sm:$0xff] %vm4988_vm2, %v14153_v46  ;;  %5051 = vst.msk [vmem:[#allocation2 + $0x1e8] sm:$0xff] %vm4988_vm2, %v14153_v46 }
 0x3ec   :  { %5053 = vst.msk [vmem:[#allocation2 + $0x1f8] sm:$0xff] %vm4988_vm2, %v14153_v46  ;;  %5054 = vst.msk [vmem:[#allocation2 + $0x200] sm:$0xff] %vm4988_vm2, %v14153_v46 }
 0x3ed   :  { %5056 = vst.msk [vmem:[#allocation2 + $0x210] sm:$0xff] %vm4988_vm2, %v14153_v46  ;;  %5057 = vst.msk [vmem:[#allocation2 + $0x218] sm:$0xff] %vm4988_vm2, %v14153_v46 }
 0x3ee   :  { %12437 = vmatmul.mubr.msk.bf16.gmra.mrb[52].mxu0 %vm223_vm1, %v17339_v54  ;;  %v4387_v54 = vpack.c.bf16 %v10954_v24, %v10953_v19  ;;  %5059 = vst.msk [vmem:[#allocation2 + $0x228] sm:$0xff] %vm4988_vm2, %v14153_v46  ;;  %5060 = vst.msk [vmem:[#allocation2 + $0x230] sm:$0xff] %vm4988_vm2, %v14153_v46 }
 0x3ef   :  { %12440 = vmatprep.mubr.msk.bf16.mxu0 %vm223_vm1, %v15471_v36  ;;  %v4372_v36 = vpack.c.bf16 %v10924_v38, %v10923_v59  ;;  %5062 = vst.msk [vmem:[#allocation2 + $0x240] sm:$0xff] %vm4988_vm2, %v14153_v46  ;;  %5063 = vst.msk [vmem:[#allocation2 + $0x248] sm:$0xff] %vm4988_vm2, %v14153_v46  ;;  %v10967_v38 = vld [vmem:[%s17312_s0 + $0x2ea] sm:$0xff] }
 0x3f0   :  { %5065 = vst.msk [vmem:[#allocation2 + $0x258] sm:$0xff] %vm4988_vm2, %v14153_v46  ;;  %5066 = vst.msk [vmem:[#allocation2 + $0x260] sm:$0xff] %vm4988_vm2, %v14153_v46 }
 0x3f1   :  { %5068 = vst.msk [vmem:[#allocation2 + $0x270] sm:$0xff] %vm4988_vm2, %v14153_v46  ;;  %5069 = vst.msk [vmem:[#allocation2 + $0x278] sm:$0xff] %vm4988_vm2, %v14153_v46 }
 0x3f2   :  { %5071 = vst.msk [vmem:[#allocation2 + $0x288] sm:$0xff] %vm4988_vm2, %v14153_v46  ;;  %5072 = vst.msk [vmem:[#allocation2 + $0x290] sm:$0xff] %vm4988_vm2, %v14153_v46 }
 0x3f3   :  { %5074 = vst.msk [vmem:[#allocation2 + $0x2a0] sm:$0xff] %vm4988_vm2, %v14153_v46  ;;  %5075 = vst.msk [vmem:[#allocation2 + $0x2a8] sm:$0xff] %vm4988_vm2, %v14153_v46 }
 0x3f4   :  { %5077 = vst.msk [vmem:[#allocation2 + $0x2b8] sm:$0xff] %vm4988_vm2, %v14153_v46  ;;  %5078 = vst.msk [vmem:[#allocation2 + $0x2c0] sm:$0xff] %vm4988_vm2, %v14153_v46 }
 0x3f5   :  { %5080 = vst.msk [vmem:[#allocation2 + $0x2d0] sm:$0xff] %vm4988_vm2, %v14153_v46  ;;  %5081 = vst.msk [vmem:[#allocation2 + $0x2d8] sm:$0xff] %vm4988_vm2, %v14153_v46 }
 0x3f6   :  { %12441 = vmatmul.mubr.msk.bf16.gmra.mrb[56].mxu0 %vm223_vm1, %v15473_v27  ;;  %5083 = vst.msk [vmem:[#allocation2 + $0x2e8] sm:$0xff] %vm4988_vm2, %v14153_v46  ;;  %5084 = vst.msk [vmem:[#allocation2 + $0x2f0] sm:$0xff] %vm4988_vm2, %v14153_v46 }
 0x3f7   :  { %12444 = vmatprep.mubr.msk.bf16.mxu0 %vm223_vm1, %v15485_v40  ;;  %v10926_v40 = vld [vmem:[%s17312_s0 + $0xca] sm:$0xff]  ;;  %5086 = vst.msk [vmem:[#allocation2 + $0x300] sm:$0xff] %vm4988_vm2, %v14153_v46  ;;  %5087 = vst.msk [vmem:[#allocation2 + $0x308] sm:$0xff] %vm4988_vm2, %v14153_v46 }
 0x3f8   :  { %v4373_v27 = vpack.c.bf16 %v10926_v40, %v10925_v61  ;;  %5089 = vst.msk [vmem:[#allocation2 + $0x318] sm:$0xff] %vm4988_vm2, %v14153_v46  ;;  %5090 = vst.msk [vmem:[#allocation2 + $0x320] sm:$0xff] %vm4988_vm2, %v14153_v46  ;;  %v10968_v61 = vld [vmem:[%s17312_s0 + $0x2f2] sm:$0xff]  ;;  %v14142_v40 = vld [vmem:[%s17313_s3 + $0x8] sm:$0xff]  }
 0x3f9   :  { %5092 = vst.msk [vmem:[#allocation2 + $0x330] sm:$0xff] %vm4988_vm2, %v14153_v46  ;;  %5093 = vst.msk [vmem:[#allocation2 + $0x338] sm:$0xff] %vm4988_vm2, %v14153_v46  ;;  %12514 = vmatprep.subr.bf16.mxu1 %v14142_v40  ;;  %v4394_v9 = vpack.c.bf16 %v10968_v61, %v10967_v38 }
 0x3fa   :  { %5095 = vst.msk [vmem:[#allocation2 + $0x348] sm:$0xff] %vm4988_vm2, %v14153_v46  ;;  %5096 = vst.msk [vmem:[#allocation2 + $0x350] sm:$0xff] %vm4988_vm2, %v14153_v46  ;;  %12515 = vmatpush3.bf16.msra.mxu1 %v14142_v40 }
 0x3fb   :  { %4998 = vst.msk [vmem:[#allocation2 + $0x40] sm:$0x3] %vm4991_vm3, %v14153_v46  ;;  %4992 = vst.msk [vmem:[#allocation2 + $0x10] sm:$0x3] %vm4991_vm3, %v14153_v46  ;;  %12580 = vmatprep.subr.bf16.mxu1 %v14143_v41 }
 0x3fc   :  { %4995 = vst.msk [vmem:[#allocation2 + $0x28] sm:$0x3] %vm4991_vm3, %v14153_v46  ;;  %5001 = vst.msk [vmem:[#allocation2 + $0x58] sm:$0x3] %vm4991_vm3, %v14153_v46 }
 0x3fd   :  { %5004 = vst.msk [vmem:[#allocation2 + $0x70] sm:$0x3] %vm4991_vm3, %v14153_v46  ;;  %5007 = vst.msk [vmem:[#allocation2 + $0x88] sm:$0x3] %vm4991_vm3, %v14153_v46 }
 0x3fe   :  { %12445 = vmatmul.mubr.msk.bf16.gmra.mrb[60].mxu0 %vm223_vm1, %v3848_v53  ;;  %v4388_v53 = vpack.c.bf16 %v10956_v16, %v10955_v15  ;;  %5010 = vst.msk [vmem:[#allocation2 + $0xa0] sm:$0x3] %vm4991_vm3, %v14153_v46  ;;  %5013 = vst.msk [vmem:[#allocation2 + $0xb8] sm:$0x3] %vm4991_vm3, %v14153_v46 }
 0x3ff   :  { %12450 = vmatprep.mubr.msk.bf16.mxu0 %vm223_vm1, %v4367_v58  ;;  %v4389_v58 = vpack.c.bf16 %v10958_v10, %v10957_v3  ;;  %5016 = vst.msk [vmem:[#allocation2 + $0xd0] sm:$0x3] %vm4991_vm3, %v14153_v46  ;;  %5019 = vst.msk [vmem:[#allocation2 + $0xe8] sm:$0x3] %vm4991_vm3, %v14153_v46 }
 0x400   :  { %5022 = vst.msk [vmem:[#allocation2 + $0x100] sm:$0x3] %vm4991_vm3, %v14153_v46  ;;  %5025 = vst.msk [vmem:[#allocation2 + $0x118] sm:$0x3] %vm4991_vm3, %v14153_v46 }
 0x401   :  { %5028 = vst.msk [vmem:[#allocation2 + $0x130] sm:$0x3] %vm4991_vm3, %v14153_v46  ;;  %5031 = vst.msk [vmem:[#allocation2 + $0x148] sm:$0x3] %vm4991_vm3, %v14153_v46 }
 0x402   :  { %5034 = vst.msk [vmem:[#allocation2 + $0x160] sm:$0x3] %vm4991_vm3, %v14153_v46  ;;  %5037 = vst.msk [vmem:[#allocation2 + $0x178] sm:$0x3] %vm4991_vm3, %v14153_v46  ;;  %v5262_v57 = vld [vmem:[#allocation2 + $0x9] sm:$0xff] }
 0x403   :  { %5040 = vst.msk [vmem:[#allocation2 + $0x190] sm:$0x3] %vm4991_vm3, %v14153_v46  ;;  %5043 = vst.msk [vmem:[#allocation2 + $0x1a8] sm:$0x3] %vm4991_vm3, %v14153_v46  ;;  %v5325_v4 = vpack.c.bf16 %v5262_v57, %v5261_v60 }
 0x404   :  { %5046 = vst.msk [vmem:[#allocation2 + $0x1c0] sm:$0x3] %vm4991_vm3, %v14153_v46  ;;  %5049 = vst.msk [vmem:[#allocation2 + $0x1d8] sm:$0x3] %vm4991_vm3, %v14153_v46 }
 0x405   :  { %5052 = vst.msk [vmem:[#allocation2 + $0x1f0] sm:$0x3] %vm4991_vm3, %v14153_v46  ;;  %5055 = vst.msk [vmem:[#allocation2 + $0x208] sm:$0x3] %vm4991_vm3, %v14153_v46  ;;  %12516 = vmatprep.mubr.msk.bf16.mxu1 %vm4988_vm2, %v5325_v4 }
 0x406   :  { %12451 = vmatmul.mubr.msk.bf16.vlgmr.msra.gmra.mrb[0].mxu0 %vm223_vm1, %v4368_v23  ;;  %v4390_v23 = vpack.c.bf16 %v16037_v13, %v16032_v12  ;;  %5058 = vst.msk [vmem:[#allocation2 + $0x220] sm:$0x3] %vm4991_vm3, %v14153_v46  ;;  %5061 = vst.msk [vmem:[#allocation2 + $0x238] sm:$0x3] %vm4991_vm3, %v14153_v46 }
 0x407   :  { %12454 = vmatprep.mubr.msk.bf16.mxu0 %vm223_vm1, %v4369_v45  ;;  %v4391_v45 = vpack.c.bf16 %v16047_v44, %v16042_v43  ;;  %5064 = vst.msk [vmem:[#allocation2 + $0x250] sm:$0x3] %vm4991_vm3, %v14153_v46  ;;  %5067 = vst.msk [vmem:[#allocation2 + $0x268] sm:$0x3] %vm4991_vm3, %v14153_v46  ;;  %v16355_v43 = vld [vmem:[%s17313_s3 + $0x10] sm:$0xff]  }
 0x408   :  { %5070 = vst.msk [vmem:[#allocation2 + $0x280] sm:$0x3] %vm4991_vm3, %v14153_v46  ;;  %5073 = vst.msk [vmem:[#allocation2 + $0x298] sm:$0x3] %vm4991_vm3, %v14153_v46 }
 0x409   :  { %5076 = vst.msk [vmem:[#allocation2 + $0x2b0] sm:$0x3] %vm4991_vm3, %v14153_v46  ;;  %5079 = vst.msk [vmem:[#allocation2 + $0x2c8] sm:$0x3] %vm4991_vm3, %v14153_v46 }
 0x40a   :  { %5082 = vst.msk [vmem:[#allocation2 + $0x2e0] sm:$0x3] %vm4991_vm3, %v14153_v46  ;;  %5085 = vst.msk [vmem:[#allocation2 + $0x2f8] sm:$0x3] %vm4991_vm3, %v14153_v46 }
 0x40b   :  { %5088 = vst.msk [vmem:[#allocation2 + $0x310] sm:$0x3] %vm4991_vm3, %v14153_v46  ;;  %5091 = vst.msk [vmem:[#allocation2 + $0x328] sm:$0x3] %vm4991_vm3, %v14153_v46 }
 0x40c   :  { %5094 = vst.msk [vmem:[#allocation2 + $0x340] sm:$0x3] %vm4991_vm3, %v14153_v46  ;;  %5097 = vst.msk [vmem:[#allocation2 + $0x358] sm:$0x3] %vm4991_vm3, %v14153_v46 }
 0x40e   :  { %12455 = vmatmul.mubr.msk.bf16.gmra.mrb[4].mxu0 %vm223_vm1, %v4370_v8  ;;  %v10966_v8 = vld [vmem:[%s17312_s0 + $0x2da] sm:$0xff] }
 0x40f   :  { %12458 = vmatprep.mubr.msk.bf16.mxu0 %vm223_vm1, %v4371_v29  ;;  %v4392_v29 = vpack.c.bf16 %v10964_v31, %v10963_v18  ;;  %v4393_v59 = vpack.c.bf16 %v10966_v8, %v10965_v5 }
 0x416   :  { %12459 = vmatmul.mubr.msk.bf16.gmra.mrb[8].mxu0 %vm223_vm1, %v4372_v36  ;;  %v10969_v36 = vld [vmem:[%s17312_s0 + $0x302] sm:$0xff] }
 0x417   :  { %12462 = vmatprep.mubr.msk.bf16.mxu0 %vm223_vm1, %v4373_v27  ;;  %v10970_v27 = vld [vmem:[%s17312_s0 + $0x30a] sm:$0xff] }
 0x41e   :  { %12463 = vmatmul.mubr.msk.bf16.gmra.mrb[12].mxu0 %vm223_vm1, %v4374_v20  ;;  %v4395_v20 = vpack.c.bf16 %v10970_v27, %v10969_v36 }
 0x41f   :  { %12466 = vmatprep.mubr.msk.bf16.mxu0 %vm223_vm1, %v4375_v21  ;;  %v10971_v21 = vld [vmem:[%s17312_s0 + $0x31a] sm:$0xff] }
 0x420   :  { %v4396_v49 = vpack.c.bf16 %v10972_v30, %v10971_v21 }
 0x426   :  { %12467 = vmatmul.mubr.msk.bf16.gmra.mrb[16].mxu0 %vm223_vm1, %v4376_v17  ;;  %v10976_v17 = vld [vmem:[%s17312_s0 + $0x352] sm:$0xff] }
 0x427   :  { %12470 = vmatprep.mubr.msk.bf16.mxu0 %vm223_vm1, %v4377_v22  ;;  %v4398_v22 = vpack.c.bf16 %v10976_v17, %v10975_v63 }
 0x42e   :  { %12471 = vmatmul.mubr.msk.bf16.gmra.mrb[20].mxu0 %vm223_vm1, %v4378_v26 }
 0x42f   :  { %12474 = vmatprep.mubr.msk.bf16.mxu0 %vm223_vm1, %v4379_v50 }
 0x436   :  { %12475 = vmatmul.mubr.msk.bf16.gmra.mrb[24].mxu0 %vm223_vm1, %v4380_v14 }
 0x437   :  { %12478 = vmatprep.mubr.msk.bf16.mxu0 %vm223_vm1, %v15531_v42  ;;  %v10947_v42 = vld [vmem:[%s17312_s0 + $0x1fa] sm:$0xff] }
 0x438   :  { %v4384_v34 = vpack.c.bf16 %v10948_v6, %v10947_v42 }
 0x43e   :  { %12479 = vmatmul.mubr.msk.bf16.gmra.mrb[28].mxu0 %vm223_vm1, %v4382_v62 }
 0x43f   :  { %12482 = vmatprep.mubr.msk.bf16.mxu0 %vm223_vm1, %v4383_v35 }
 0x446   :  { %12483 = vmatmul.mubr.msk.bf16.gmra.mrb[32].mxu0 %vm223_vm1, %v4384_v34 }
 0x447   :  { %12486 = vmatprep.mubr.msk.bf16.mxu0 %vm223_vm1, %v4385_v47 }
 0x44e   :  { %12487 = vmatmul.mubr.msk.bf16.gmra.mrb[36].mxu0 %vm223_vm1, %v4386_v51 }
 0x44f   :  { %12490 = vmatprep.mubr.msk.bf16.mxu0 %vm223_vm1, %v4387_v54 }
 0x456   :  { %12491 = vmatmul.mubr.msk.bf16.gmra.mrb[40].mxu0 %vm223_vm1, %v4388_v53 }
 0x457   :  { %12494 = vmatprep.mubr.msk.bf16.mxu0 %vm223_vm1, %v4389_v58 }
 0x45e   :  { %12495 = vmatmul.mubr.msk.bf16.gmra.mrb[44].mxu0 %vm223_vm1, %v4390_v23 }
 0x45f   :  { %12498 = vmatprep.mubr.msk.bf16.mxu0 %vm223_vm1, %v4391_v45 }
 0x466   :  { %12499 = vmatmul.mubr.msk.bf16.gmra.mrb[48].mxu0 %vm223_vm1, %v4392_v29 }
 0x467   :  { %12502 = vmatprep.mubr.msk.bf16.mxu0 %vm223_vm1, %v4393_v59 }
 0x46e   :  { %12503 = vmatmul.mubr.msk.bf16.gmra.mrb[52].mxu0 %vm223_vm1, %v4394_v9 }
 0x46f   :  { %12506 = vmatprep.mubr.msk.bf16.mxu0 %vm223_vm1, %v4395_v20 }
 0x476   :  { %12507 = vmatmul.mubr.msk.bf16.gmra.mrb[56].mxu0 %vm223_vm1, %v4396_v49 }
 0x477   :  { %12510 = vmatprep.mubr.msk.bf16.mxu0 %vm223_vm1, %v15577_v28 }
 0x47e   :  { %12511 = vmatmul.mubr.msk.bf16.gmra.mrb[60].mxu0 %vm223_vm1, %v4398_v22 }
 0x4d9   :  { %v12452_v48 = vpop.f32.mrb[0].mxu0 }
 0x4da   :  { %v4862_v2 = vadd.f32 %v12452_v48, %v16331_v39  ;;  %v4534_v28 = vpop.f32.mrb[1].mxu0 }
 0x4db   :  { %v4860_v25 = vadd.f32 %v16331_v39, %v4534_v28  ;;  %v12453_v26 = vpop.f32.mrb[2].mxu0 }
 0x4dc   :  { %v4926_v50 = vmax.f32 %v4862_v2, 0.0  ;;  %v4863_v55 = vadd.f32 %v12453_v26, %v16331_v39  ;;  %v4537_v11 = vpop.f32.mrb[3].mxu0 }
 0x4dd   :  { %v4924_v14 = vmax.f32 %v4860_v25, 0.0  ;;  %v4861_v32 = vadd.f32 %v16331_v39, %v4537_v11 }
 0x4de   :  { %5101 = vst.msk [vmem:[#allocation2 + $0x31] sm:$0xff] %vm4988_vm2, %v4926_v50  ;;  %v4927_v52 = vmax.f32 %v4863_v55, 0.0 }
 0x4df   :  { %5099 = vst.msk [vmem:[#allocation2 + $0x19] sm:$0xff] %vm4988_vm2, %v4924_v14  ;;  %v4925_v0 = vmax.f32 %v4861_v32, 0.0 }
 0x4e0   :  { %5102 = vst.msk [vmem:[#allocation2 + $0x39] sm:$0xff] %vm4988_vm2, %v4927_v52 }
 0x4e1   :  { %5100 = vst.msk [vmem:[#allocation2 + $0x21] sm:$0xff] %vm4988_vm2, %v4925_v0  ;;  %v12456_v37 = vpop.f32.mrb[4].mxu0 }
 0x4e2   :  { %v4866_v62 = vadd.f32 %v12456_v37, %v16331_v39  ;;  %v4550_v35 = vpop.f32.mrb[5].mxu0 }
 0x4e3   :  { %v4864_v42 = vadd.f32 %v16331_v39, %v4550_v35  ;;  %v12457_v6 = vpop.f32.mrb[6].mxu0 }
 0x4e4   :  { %v4930_v7 = vmax.f32 %v4866_v62, 0.0  ;;  %v4867_v33 = vadd.f32 %v12457_v6, %v16331_v39  ;;  %v4553_v34 = vpop.f32.mrb[7].mxu0 }
 0x4e5   :  { %v4928_v47 = vmax.f32 %v4864_v42, 0.0  ;;  %v4865_v56 = vadd.f32 %v16331_v39, %v4553_v34  ;;  %v5265_v3 = vld [vmem:[#allocation2 + $0x31] sm:$0xff] }
 0x4e6   :  { %5105 = vst.msk [vmem:[#allocation2 + $0x61] sm:$0xff] %vm4988_vm2, %v4930_v7  ;;  %v4931_v1 = vmax.f32 %v4867_v33, 0.0  ;;  %v5263_v51 = vld [vmem:[#allocation2 + $0x19] sm:$0xff] }
 0x4e7   :  { %5103 = vst.msk [vmem:[#allocation2 + $0x49] sm:$0xff] %vm4988_vm2, %v4928_v47  ;;  %v4929_v19 = vmax.f32 %v4865_v56, 0.0  ;;  %v5266_v24 = vld [vmem:[#allocation2 + $0x39] sm:$0xff] }
 0x4e8   :  { %5106 = vst.msk [vmem:[#allocation2 + $0x69] sm:$0xff] %vm4988_vm2, %v4931_v1  ;;  %v5264_v54 = vld [vmem:[#allocation2 + $0x21] sm:$0xff]  ;;  %v5327_v58 = vpack.c.bf16 %v5266_v24, %v5265_v3 }
 0x4e9   :  { %5104 = vst.msk [vmem:[#allocation2 + $0x51] sm:$0xff] %vm4988_vm2, %v4929_v19  ;;  %v12460_v15 = vpop.f32.mrb[8].mxu0  ;;  %v5326_v16 = vpack.c.bf16 %v5264_v54, %v5263_v51 }
 0x4ea   :  { %v4870_v10 = vadd.f32 %v12460_v15, %v16331_v39  ;;  %v4566_v53 = vpop.f32.mrb[9].mxu0 }
 0x4eb   :  { %v4868_v12 = vadd.f32 %v16331_v39, %v4566_v53  ;;  %v12461_v13 = vpop.f32.mrb[10].mxu0  ;;  %12517 = vmatmul.mubr.msk.bf16.vlgmr.msra.gmra.mrb[0].mxu1 %vm4988_vm2, %v5326_v16 }
 0x4ec   :  { %v4934_v44 = vmax.f32 %v4870_v10, 0.0  ;;  %v4871_v23 = vadd.f32 %v12461_v13, %v16331_v39  ;;  %v4569_v45 = vpop.f32.mrb[11].mxu0  ;;  %12520 = vmatprep.mubr.msk.bf16.mxu1 %vm4988_vm2, %v5327_v58  ;;  %12581 = vmatpush3.bf16.msra.mxu1 %v14143_v41 }
 0x4ed   :  { %v4932_v46 = vmax.f32 %v4868_v12, 0.0  ;;  %v4869_v18 = vadd.f32 %v16331_v39, %v4569_v45  ;;  %12646 = vmatprep.subr.bf16.mxu1 %v16355_v43  ;;  %v5269_v40 = vld [vmem:[#allocation2 + $0x61] sm:$0xff] }
 0x4ee   :  { %5109 = vst.msk [vmem:[#allocation2 + $0x91] sm:$0xff] %vm4988_vm2, %v4934_v44  ;;  %v4935_v31 = vmax.f32 %v4871_v23, 0.0  ;;  %v5267_v29 = vld [vmem:[#allocation2 + $0x49] sm:$0xff] }
 0x4ef   :  { %5107 = vst.msk [vmem:[#allocation2 + $0x79] sm:$0xff] %vm4988_vm2, %v4932_v46  ;;  %v4933_v5 = vmax.f32 %v4869_v18, 0.0  ;;  %v5270_v8 = vld [vmem:[#allocation2 + $0x69] sm:$0xff] }
 0x4f0   :  { %5110 = vst.msk [vmem:[#allocation2 + $0x99] sm:$0xff] %vm4988_vm2, %v4935_v31  ;;  %v5268_v59 = vld [vmem:[#allocation2 + $0x51] sm:$0xff]  ;;  %v5329_v60 = vpack.c.bf16 %v5270_v8, %v5269_v40 }
 0x4f1   :  { %5108 = vst.msk [vmem:[#allocation2 + $0x81] sm:$0xff] %vm4988_vm2, %v4933_v5  ;;  %v12464_v38 = vpop.f32.mrb[12].mxu0  ;;  %v5328_v61 = vpack.c.bf16 %v5268_v59, %v5267_v29 }
 0x4f2   :  { %v4874_v36 = vadd.f32 %v12464_v38, %v16331_v39  ;;  %v4582_v27 = vpop.f32.mrb[13].mxu0 }
 0x4f3   :  { %v4872_v57 = vadd.f32 %v16331_v39, %v4582_v27  ;;  %v12465_v4 = vpop.f32.mrb[14].mxu0  ;;  %12521 = vmatmul.mubr.msk.bf16.gmra.mrb[4].mxu1 %vm4988_vm2, %v5328_v61 }
 0x4f4   :  { %v4938_v9 = vmax.f32 %v4874_v36, 0.0  ;;  %v4875_v20 = vadd.f32 %v12465_v4, %v16331_v39  ;;  %v4585_v21 = vpop.f32.mrb[15].mxu0  ;;  %12524 = vmatprep.mubr.msk.bf16.mxu1 %vm4988_vm2, %v5329_v60 }
 0x4f5   :  { %v4936_v30 = vmax.f32 %v4872_v57, 0.0  ;;  %v4873_v41 = vadd.f32 %v16331_v39, %v4585_v21  ;;  %v5273_v25 = vld [vmem:[#allocation2 + $0x91] sm:$0xff] }
 0x4f6   :  { %5113 = vst.msk [vmem:[#allocation2 + $0xc1] sm:$0xff] %vm4988_vm2, %v4938_v9  ;;  %v4939_v49 = vmax.f32 %v4875_v20, 0.0  ;;  %v5271_v22 = vld [vmem:[#allocation2 + $0x79] sm:$0xff] }
 0x4f7   :  { %5111 = vst.msk [vmem:[#allocation2 + $0xa9] sm:$0xff] %vm4988_vm2, %v4936_v30  ;;  %v4937_v63 = vmax.f32 %v4873_v41, 0.0  ;;  %v5274_v17 = vld [vmem:[#allocation2 + $0x99] sm:$0xff] }
 0x4f8   :  { %5114 = vst.msk [vmem:[#allocation2 + $0xc9] sm:$0xff] %vm4988_vm2, %v4939_v49  ;;  %v5272_v48 = vld [vmem:[#allocation2 + $0x81] sm:$0xff]  ;;  %v5331_v55 = vpack.c.bf16 %v5274_v17, %v5273_v25 }
 0x4f9   :  { %5112 = vst.msk [vmem:[#allocation2 + $0xb1] sm:$0xff] %vm4988_vm2, %v4937_v63  ;;  %v12468_v2 = vpop.f32.mrb[16].mxu0  ;;  %v5330_v28 = vpack.c.bf16 %v5272_v48, %v5271_v22 }
 0x4fa   :  { %v4878_v26 = vadd.f32 %v12468_v2, %v16331_v39  ;;  %v4598_v50 = vpop.f32.mrb[17].mxu0 }
 0x4fb   :  { %v4876_v11 = vadd.f32 %v16331_v39, %v4598_v50  ;;  %v12469_v14 = vpop.f32.mrb[18].mxu0  ;;  %12525 = vmatmul.mubr.msk.bf16.gmra.mrb[8].mxu1 %vm4988_vm2, %v5330_v28 }
 0x4fc   :  { %v4942_v32 = vmax.f32 %v4878_v26, 0.0  ;;  %v4879_v52 = vadd.f32 %v12469_v14, %v16331_v39  ;;  %v4601_v0 = vpop.f32.mrb[19].mxu0  ;;  %12528 = vmatprep.mubr.msk.bf16.mxu1 %vm4988_vm2, %v5331_v55 }
 0x4fd   :  { %v4940_v37 = vmax.f32 %v4876_v11, 0.0  ;;  %v4877_v62 = vadd.f32 %v16331_v39, %v4601_v0  ;;  %v5277_v56 = vld [vmem:[#allocation2 + $0xc1] sm:$0xff] }
 0x4fe   :  { %5117 = vst.msk [vmem:[#allocation2 + $0xf1] sm:$0xff] %vm4988_vm2, %v4942_v32  ;;  %v4943_v35 = vmax.f32 %v4879_v52, 0.0  ;;  %v5275_v7 = vld [vmem:[#allocation2 + $0xa9] sm:$0xff] }
 0x4ff   :  { %5115 = vst.msk [vmem:[#allocation2 + $0xd9] sm:$0xff] %vm4988_vm2, %v4940_v37  ;;  %v4941_v42 = vmax.f32 %v4877_v62, 0.0  ;;  %v5278_v6 = vld [vmem:[#allocation2 + $0xc9] sm:$0xff] }
 0x500   :  { %5118 = vst.msk [vmem:[#allocation2 + $0xf9] sm:$0xff] %vm4988_vm2, %v4943_v35  ;;  %v5276_v33 = vld [vmem:[#allocation2 + $0xb1] sm:$0xff]  ;;  %v5333_v24 = vpack.c.bf16 %v5278_v6, %v5277_v56 }
 0x501   :  { %5116 = vst.msk [vmem:[#allocation2 + $0xe1] sm:$0xff] %vm4988_vm2, %v4941_v42  ;;  %v12472_v34 = vpop.f32.mrb[20].mxu0  ;;  %v5332_v47 = vpack.c.bf16 %v5276_v33, %v5275_v7 }
 0x502   :  { %v4882_v1 = vadd.f32 %v12472_v34, %v16331_v39  ;;  %v4614_v19 = vpop.f32.mrb[21].mxu0 }
 0x503   :  { %v4880_v51 = vadd.f32 %v16331_v39, %v4614_v19  ;;  %v12473_v54 = vpop.f32.mrb[22].mxu0  ;;  %12529 = vmatmul.mubr.msk.bf16.gmra.mrb[12].mxu1 %vm4988_vm2, %v5332_v47 }
 0x504   :  { %v4946_v15 = vmax.f32 %v4882_v1, 0.0  ;;  %v4883_v16 = vadd.f32 %v12473_v54, %v16331_v39  ;;  %v4617_v3 = vpop.f32.mrb[23].mxu0  ;;  %12532 = vmatprep.mubr.msk.bf16.mxu1 %vm4988_vm2, %v5333_v24  ;;  %v5293_v24 = vld [vmem:[#allocation2 + $0x1b1] sm:$0xff] }
 0x505   :  { %v4944_v10 = vmax.f32 %v4880_v51, 0.0  ;;  %v4881_v53 = vadd.f32 %v16331_v39, %v4617_v3  ;;  %v5281_v18 = vld [vmem:[#allocation2 + $0xf1] sm:$0xff]  ;;  %v5294_v51 = vld [vmem:[#allocation2 + $0x1b9] sm:$0xff] }
 0x506   :  { %5121 = vst.msk [vmem:[#allocation2 + $0x121] sm:$0xff] %vm4988_vm2, %v4946_v15  ;;  %v4947_v58 = vmax.f32 %v4883_v16, 0.0  ;;  %v5279_v44 = vld [vmem:[#allocation2 + $0xd9] sm:$0xff] }
 0x507   :  { %5119 = vst.msk [vmem:[#allocation2 + $0x109] sm:$0xff] %vm4988_vm2, %v4944_v10  ;;  %v4945_v12 = vmax.f32 %v4881_v53, 0.0  ;;  %v5282_v13 = vld [vmem:[#allocation2 + $0xf9] sm:$0xff]  ;;  %v5341_v10 = vpack.c.bf16 %v5294_v51, %v5293_v24 }
 0x508   :  { %5122 = vst.msk [vmem:[#allocation2 + $0x129] sm:$0xff] %vm4988_vm2, %v4947_v58  ;;  %v5280_v23 = vld [vmem:[#allocation2 + $0xe1] sm:$0xff]  ;;  %v5335_v8 = vpack.c.bf16 %v5282_v13, %v5281_v18 }
 0x509   :  { %5120 = vst.msk [vmem:[#allocation2 + $0x111] sm:$0xff] %vm4988_vm2, %v4945_v12  ;;  %v12476_v45 = vpop.f32.mrb[24].mxu0  ;;  %v5334_v46 = vpack.c.bf16 %v5280_v23, %v5279_v44 }
 0x50a   :  { %v4886_v31 = vadd.f32 %v12476_v45, %v16331_v39  ;;  %v4630_v5 = vpop.f32.mrb[25].mxu0 }
 0x50b   :  { %v4884_v29 = vadd.f32 %v16331_v39, %v4630_v5  ;;  %v12477_v59 = vpop.f32.mrb[26].mxu0  ;;  %12533 = vmatmul.mubr.msk.bf16.gmra.mrb[16].mxu1 %vm4988_vm2, %v5334_v46 }
 0x50c   :  { %v4950_v38 = vmax.f32 %v4886_v31, 0.0  ;;  %v4887_v61 = vadd.f32 %v12477_v59, %v16331_v39  ;;  %v4633_v40 = vpop.f32.mrb[27].mxu0  ;;  %12536 = vmatprep.mubr.msk.bf16.mxu1 %vm4988_vm2, %v5335_v8 }
 0x50d   :  { %v4948_v36 = vmax.f32 %v4884_v29, 0.0  ;;  %v4885_v27 = vadd.f32 %v16331_v39, %v4633_v40  ;;  %v5285_v41 = vld [vmem:[#allocation2 + $0x121] sm:$0xff] }
 0x50e   :  { %5125 = vst.msk [vmem:[#allocation2 + $0x151] sm:$0xff] %vm4988_vm2, %v4950_v38  ;;  %v4951_v60 = vmax.f32 %v4887_v61, 0.0  ;;  %v5283_v9 = vld [vmem:[#allocation2 + $0x109] sm:$0xff] }
 0x50f   :  { %5123 = vst.msk [vmem:[#allocation2 + $0x139] sm:$0xff] %vm4988_vm2, %v4948_v36  ;;  %v4949_v57 = vmax.f32 %v4885_v27, 0.0  ;;  %v5286_v4 = vld [vmem:[#allocation2 + $0x129] sm:$0xff] }
 0x510   :  { %5126 = vst.msk [vmem:[#allocation2 + $0x159] sm:$0xff] %vm4988_vm2, %v4951_v60  ;;  %v5284_v20 = vld [vmem:[#allocation2 + $0x111] sm:$0xff]  ;;  %v5337_v17 = vpack.c.bf16 %v5286_v4, %v5285_v41 }
 0x511   :  { %5124 = vst.msk [vmem:[#allocation2 + $0x141] sm:$0xff] %vm4988_vm2, %v4949_v57  ;;  %v12480_v21 = vpop.f32.mrb[28].mxu0  ;;  %v5336_v30 = vpack.c.bf16 %v5284_v20, %v5283_v9 }
 0x512   :  { %v4890_v49 = vadd.f32 %v12480_v21, %v16331_v39  ;;  %v4646_v63 = vpop.f32.mrb[29].mxu0 }
 0x513   :  { %v4888_v22 = vadd.f32 %v16331_v39, %v4646_v63  ;;  %v12481_v48 = vpop.f32.mrb[30].mxu0  ;;  %12537 = vmatmul.mubr.msk.bf16.gmra.mrb[20].mxu1 %vm4988_vm2, %v5336_v30 }
 0x514   :  { %v4954_v2 = vmax.f32 %v4890_v49, 0.0  ;;  %v4891_v28 = vadd.f32 %v12481_v48, %v16331_v39  ;;  %v4649_v25 = vpop.f32.mrb[31].mxu0  ;;  %12540 = vmatprep.mubr.msk.bf16.mxu1 %vm4988_vm2, %v5337_v17 }
 0x515   :  { %v4952_v26 = vmax.f32 %v4888_v22, 0.0  ;;  %v4889_v50 = vadd.f32 %v16331_v39, %v4649_v25  ;;  %v5289_v62 = vld [vmem:[#allocation2 + $0x151] sm:$0xff] }
 0x516   :  { %5129 = vst.msk [vmem:[#allocation2 + $0x181] sm:$0xff] %vm4988_vm2, %v4954_v2  ;;  %v4955_v55 = vmax.f32 %v4891_v28, 0.0  ;;  %v5287_v32 = vld [vmem:[#allocation2 + $0x139] sm:$0xff] }
 0x517   :  { %5127 = vst.msk [vmem:[#allocation2 + $0x169] sm:$0xff] %vm4988_vm2, %v4952_v26  ;;  %v4953_v11 = vmax.f32 %v4889_v50, 0.0  ;;  %v5290_v14 = vld [vmem:[#allocation2 + $0x159] sm:$0xff] }
 0x518   :  { %5130 = vst.msk [vmem:[#allocation2 + $0x189] sm:$0xff] %vm4988_vm2, %v4955_v55  ;;  %v5288_v52 = vld [vmem:[#allocation2 + $0x141] sm:$0xff]  ;;  %v5339_v6 = vpack.c.bf16 %v5290_v14, %v5289_v62 }
 0x519   :  { %5128 = vst.msk [vmem:[#allocation2 + $0x171] sm:$0xff] %vm4988_vm2, %v4953_v11  ;;  %v12484_v0 = vpop.f32.mrb[32].mxu0  ;;  %v5338_v37 = vpack.c.bf16 %v5288_v52, %v5287_v32 }
 0x51a   :  { %v4894_v35 = vadd.f32 %v12484_v0, %v16331_v39  ;;  %v4662_v42 = vpop.f32.mrb[33].mxu0 }
 0x51b   :  { %v4892_v7 = vadd.f32 %v16331_v39, %v4662_v42  ;;  %v12485_v33 = vpop.f32.mrb[34].mxu0  ;;  %12541 = vmatmul.mubr.msk.bf16.gmra.mrb[24].mxu1 %vm4988_vm2, %v5338_v37 }
 0x51c   :  { %v4958_v34 = vmax.f32 %v4894_v35, 0.0  ;;  %v4895_v47 = vadd.f32 %v12485_v33, %v16331_v39  ;;  %v4665_v56 = vpop.f32.mrb[35].mxu0  ;;  %12544 = vmatprep.mubr.msk.bf16.mxu1 %vm4988_vm2, %v5339_v6 }
 0x51d   :  { %v4956_v1 = vmax.f32 %v4892_v7, 0.0  ;;  %v4893_v19 = vadd.f32 %v16331_v39, %v4665_v56 }
 0x51e   :  { %5133 = vst.msk [vmem:[#allocation2 + $0x1e1] sm:$0xff] %vm4988_vm2, %v4958_v34  ;;  %v4959_v54 = vmax.f32 %v4895_v47, 0.0  ;;  %v5291_v16 = vld [vmem:[#allocation2 + $0x169] sm:$0xff] }
 0x51f   :  { %5131 = vst.msk [vmem:[#allocation2 + $0x1c9] sm:$0xff] %vm4988_vm2, %v4956_v1  ;;  %v4957_v15 = vmax.f32 %v4893_v19, 0.0 }
 0x520   :  { %5134 = vst.msk [vmem:[#allocation2 + $0x1e9] sm:$0xff] %vm4988_vm2, %v4959_v54  ;;  %v5292_v3 = vld [vmem:[#allocation2 + $0x171] sm:$0xff] }
 0x521   :  { %5132 = vst.msk [vmem:[#allocation2 + $0x1d1] sm:$0xff] %vm4988_vm2, %v4957_v15  ;;  %v12488_v53 = vpop.f32.mrb[36].mxu0  ;;  %v5340_v58 = vpack.c.bf16 %v5292_v3, %v5291_v16 }
 0x522   :  { %v4898_v12 = vadd.f32 %v12488_v53, %v16331_v39  ;;  %v4678_v13 = vpop.f32.mrb[37].mxu0 }
 0x523   :  { %v4896_v44 = vadd.f32 %v16331_v39, %v4678_v13  ;;  %v12489_v23 = vpop.f32.mrb[38].mxu0  ;;  %12545 = vmatmul.mubr.msk.bf16.gmra.mrb[28].mxu1 %vm4988_vm2, %v5340_v58 }
 0x524   :  { %v4962_v45 = vmax.f32 %v4898_v12, 0.0  ;;  %v4899_v46 = vadd.f32 %v12489_v23, %v16331_v39  ;;  %v4681_v18 = vpop.f32.mrb[39].mxu0  ;;  %12548 = vmatprep.mubr.msk.bf16.mxu1 %vm4988_vm2, %v5341_v10 }
 0x525   :  { %v4960_v31 = vmax.f32 %v4896_v44, 0.0  ;;  %v4897_v5 = vadd.f32 %v16331_v39, %v4681_v18  ;;  %v5297_v27 = vld [vmem:[#allocation2 + $0x1e1] sm:$0xff] }
 0x526   :  { %5137 = vst.msk [vmem:[#allocation2 + $0x211] sm:$0xff] %vm4988_vm2, %v4962_v45  ;;  %v4963_v8 = vmax.f32 %v4899_v46, 0.0  ;;  %v5295_v38 = vld [vmem:[#allocation2 + $0x1c9] sm:$0xff] }
 0x527   :  { %5135 = vst.msk [vmem:[#allocation2 + $0x1f9] sm:$0xff] %vm4988_vm2, %v4960_v31  ;;  %v4961_v29 = vmax.f32 %v4897_v5, 0.0  ;;  %v5298_v59 = vld [vmem:[#allocation2 + $0x1e9] sm:$0xff] }
 0x528   :  { %5138 = vst.msk [vmem:[#allocation2 + $0x219] sm:$0xff] %vm4988_vm2, %v4963_v8  ;;  %v5296_v61 = vld [vmem:[#allocation2 + $0x1d1] sm:$0xff]  ;;  %v5343_v4 = vpack.c.bf16 %v5298_v59, %v5297_v27 }
 0x529   :  { %5136 = vst.msk [vmem:[#allocation2 + $0x201] sm:$0xff] %vm4988_vm2, %v4961_v29  ;;  %v12492_v40 = vpop.f32.mrb[40].mxu0  ;;  %v5342_v36 = vpack.c.bf16 %v5296_v61, %v5295_v38 }
 0x52a   :  { %v4902_v60 = vadd.f32 %v12492_v40, %v16331_v39  ;;  %v4694_v57 = vpop.f32.mrb[41].mxu0 }
 0x52b   :  { %v4900_v9 = vadd.f32 %v16331_v39, %v4694_v57  ;;  %v12493_v20 = vpop.f32.mrb[42].mxu0  ;;  %12549 = vmatmul.mubr.msk.bf16.gmra.mrb[32].mxu1 %vm4988_vm2, %v5342_v36 }
 0x52c   :  { %v4966_v21 = vmax.f32 %v4902_v60, 0.0  ;;  %v4903_v30 = vadd.f32 %v12493_v20, %v16331_v39  ;;  %v4697_v41 = vpop.f32.mrb[43].mxu0  ;;  %12552 = vmatprep.mubr.msk.bf16.mxu1 %vm4988_vm2, %v5343_v4 }
 0x52d   :  { %v4964_v49 = vmax.f32 %v4900_v9, 0.0  ;;  %v4901_v63 = vadd.f32 %v16331_v39, %v4697_v41  ;;  %v5301_v50 = vld [vmem:[#allocation2 + $0x211] sm:$0xff] }
 0x52e   :  { %5141 = vst.msk [vmem:[#allocation2 + $0x241] sm:$0xff] %vm4988_vm2, %v4966_v21  ;;  %v4967_v17 = vmax.f32 %v4903_v30, 0.0  ;;  %v5299_v2 = vld [vmem:[#allocation2 + $0x1f9] sm:$0xff] }
 0x52f   :  { %5139 = vst.msk [vmem:[#allocation2 + $0x229] sm:$0xff] %vm4988_vm2, %v4964_v49  ;;  %v4965_v22 = vmax.f32 %v4901_v63, 0.0  ;;  %v5302_v48 = vld [vmem:[#allocation2 + $0x219] sm:$0xff] }
 0x530   :  { %5142 = vst.msk [vmem:[#allocation2 + $0x249] sm:$0xff] %vm4988_vm2, %v4967_v17  ;;  %v5300_v28 = vld [vmem:[#allocation2 + $0x201] sm:$0xff]  ;;  %v5345_v14 = vpack.c.bf16 %v5302_v48, %v5301_v50 }
 0x531   :  { %5140 = vst.msk [vmem:[#allocation2 + $0x231] sm:$0xff] %vm4988_vm2, %v4965_v22  ;;  %v12496_v25 = vpop.f32.mrb[44].mxu0  ;;  %v5344_v26 = vpack.c.bf16 %v5300_v28, %v5299_v2 }
 0x532   :  { %v4906_v55 = vadd.f32 %v12496_v25, %v16331_v39  ;;  %v4710_v11 = vpop.f32.mrb[45].mxu0 }
 0x533   :  { %v4904_v32 = vadd.f32 %v16331_v39, %v4710_v11  ;;  %v12497_v52 = vpop.f32.mrb[46].mxu0  ;;  %12553 = vmatmul.mubr.msk.bf16.gmra.mrb[36].mxu1 %vm4988_vm2, %v5344_v26 }
 0x534   :  { %v4970_v0 = vmax.f32 %v4906_v55, 0.0  ;;  %v4907_v37 = vadd.f32 %v12497_v52, %v16331_v39  ;;  %v4713_v62 = vpop.f32.mrb[47].mxu0  ;;  %12556 = vmatprep.mubr.msk.bf16.mxu1 %vm4988_vm2, %v5345_v14 }
 0x535   :  { %v4968_v35 = vmax.f32 %v4904_v32, 0.0  ;;  %v4905_v42 = vadd.f32 %v16331_v39, %v4713_v62  ;;  %v5305_v19 = vld [vmem:[#allocation2 + $0x241] sm:$0xff] }
 0x536   :  { %5145 = vst.msk [vmem:[#allocation2 + $0x271] sm:$0xff] %vm4988_vm2, %v4970_v0  ;;  %v4971_v6 = vmax.f32 %v4907_v37, 0.0  ;;  %v5303_v34 = vld [vmem:[#allocation2 + $0x229] sm:$0xff] }
 0x537   :  { %5143 = vst.msk [vmem:[#allocation2 + $0x259] sm:$0xff] %vm4988_vm2, %v4968_v35  ;;  %v4969_v7 = vmax.f32 %v4905_v42, 0.0  ;;  %v5306_v33 = vld [vmem:[#allocation2 + $0x249] sm:$0xff] }
 0x538   :  { %5146 = vst.msk [vmem:[#allocation2 + $0x279] sm:$0xff] %vm4988_vm2, %v4971_v6  ;;  %v5304_v47 = vld [vmem:[#allocation2 + $0x231] sm:$0xff]  ;;  %v5347_v54 = vpack.c.bf16 %v5306_v33, %v5305_v19 }
 0x539   :  { %5144 = vst.msk [vmem:[#allocation2 + $0x261] sm:$0xff] %vm4988_vm2, %v4969_v7  ;;  %v12500_v56 = vpop.f32.mrb[48].mxu0  ;;  %v5346_v1 = vpack.c.bf16 %v5304_v47, %v5303_v34 }
 0x53a   :  { %v4910_v24 = vadd.f32 %v12500_v56, %v16331_v39  ;;  %v4726_v51 = vpop.f32.mrb[49].mxu0 }
 0x53b   :  { %v4908_v15 = vadd.f32 %v16331_v39, %v4726_v51  ;;  %v12501_v16 = vpop.f32.mrb[50].mxu0  ;;  %12557 = vmatmul.mubr.msk.bf16.gmra.mrb[40].mxu1 %vm4988_vm2, %v5346_v1 }
 0x53c   :  { %v4974_v3 = vmax.f32 %v4910_v24, 0.0  ;;  %v4911_v10 = vadd.f32 %v12501_v16, %v16331_v39  ;;  %v4729_v53 = vpop.f32.mrb[51].mxu0  ;;  %12560 = vmatprep.mubr.msk.bf16.mxu1 %vm4988_vm2, %v5347_v54 }
 0x53d   :  { %v4972_v58 = vmax.f32 %v4908_v15, 0.0  ;;  %v4909_v12 = vadd.f32 %v16331_v39, %v4729_v53  ;;  %v5309_v5 = vld [vmem:[#allocation2 + $0x271] sm:$0xff] }
 0x53e   :  { %5149 = vst.msk [vmem:[#allocation2 + $0x2a1] sm:$0xff] %vm4988_vm2, %v4974_v3  ;;  %v4975_v13 = vmax.f32 %v4911_v10, 0.0  ;;  %v5307_v45 = vld [vmem:[#allocation2 + $0x259] sm:$0xff] }
 0x53f   :  { %5147 = vst.msk [vmem:[#allocation2 + $0x289] sm:$0xff] %vm4988_vm2, %v4972_v58  ;;  %v4973_v44 = vmax.f32 %v4909_v12, 0.0  ;;  %v5310_v23 = vld [vmem:[#allocation2 + $0x279] sm:$0xff] }
 0x540   :  { %5150 = vst.msk [vmem:[#allocation2 + $0x2a9] sm:$0xff] %vm4988_vm2, %v4975_v13  ;;  %v5308_v46 = vld [vmem:[#allocation2 + $0x261] sm:$0xff]  ;;  %v5349_v59 = vpack.c.bf16 %v5310_v23, %v5309_v5  ;;  %v5165_v5 = vld [vmem:[#allocation2 + $0x18] sm:$0xff] }
 0x541   :  { %5148 = vst.msk [vmem:[#allocation2 + $0x291] sm:$0xff] %vm4988_vm2, %v4973_v44  ;;  %v12504_v18 = vpop.f32.mrb[52].mxu0  ;;  %v5348_v31 = vpack.c.bf16 %v5308_v46, %v5307_v45  ;;  %v5164_v13 = vld [vmem:[#allocation2 + $0x8] sm:$0xff] }
 0x542   :  { %v4914_v8 = vadd.f32 %v12504_v18, %v16331_v39  ;;  %v4742_v29 = vpop.f32.mrb[53].mxu0  ;;  %v5166_v18 = vld [vmem:[#allocation2 + $0x20] sm:$0xff] }
 0x543   :  { %v4912_v38 = vadd.f32 %v16331_v39, %v4742_v29  ;;  %v12505_v61 = vpop.f32.mrb[54].mxu0  ;;  %12561 = vmatmul.mubr.msk.bf16.gmra.mrb[44].mxu1 %vm4988_vm2, %v5348_v31  ;;  %v5168_v31 = vld [vmem:[#allocation2 + $0x38] sm:$0xff]  ;;  %v5167_v29 = vld [vmem:[#allocation2 + $0x30] sm:$0xff] }
 0x544   :  { %v4978_v40 = vmax.f32 %v4914_v8, 0.0  ;;  %v4915_v36 = vadd.f32 %v12505_v61, %v16331_v39  ;;  %v4745_v27 = vpop.f32.mrb[55].mxu0  ;;  %12564 = vmatprep.mubr.msk.bf16.mxu1 %vm4988_vm2, %v5349_v59  ;;  %v16499_v8 = vpack.c.bf16 %v5166_v18, %v5165_v5  ;;  %v16501_v59 = vpack.c.bf16 %v5168_v31, %v5167_v29  ;;  %v5170_v61 = vld [vmem:[#allocation2 + $0x50] sm:$0xff]  ;;  %v5207_v31 = vld [vmem:[#allocation2 + $0x240] sm:$0xff] }
 0x545   :  { %v4976_v60 = vmax.f32 %v4912_v38, 0.0  ;;  %v4913_v57 = vadd.f32 %v16331_v39, %v4745_v27  ;;  %v5313_v63 = vld [vmem:[#allocation2 + $0x2a1] sm:$0xff]  ;;  %v16508_v38 = vld [vmem:[%s17313_s3 + $0x18] sm:$0xff]  }
 0x546   :  { %5153 = vst.msk [vmem:[#allocation2 + $0x2d1] sm:$0xff] %vm4988_vm2, %v4978_v40  ;;  %v4979_v4 = vmax.f32 %v4915_v36, 0.0  ;;  %v5311_v21 = vld [vmem:[#allocation2 + $0x289] sm:$0xff]  ;;  %v5210_v29 = vld [vmem:[#allocation2 + $0x260] sm:$0xff] }
 0x547   :  { %5151 = vst.msk [vmem:[#allocation2 + $0x2b9] sm:$0xff] %vm4988_vm2, %v4976_v60  ;;  %v4977_v9 = vmax.f32 %v4913_v57, 0.0  ;;  %v5314_v20 = vld [vmem:[#allocation2 + $0x2a9] sm:$0xff]  ;;  %v5171_v60 = vld [vmem:[#allocation2 + $0x60] sm:$0xff] }
 0x548   :  { %5154 = vst.msk [vmem:[#allocation2 + $0x2d9] sm:$0xff] %vm4988_vm2, %v4979_v4  ;;  %v5312_v30 = vld [vmem:[#allocation2 + $0x291] sm:$0xff]  ;;  %v5351_v48 = vpack.c.bf16 %v5314_v20, %v5313_v63  ;;  %v5172_v40 = vld [vmem:[#allocation2 + $0x68] sm:$0xff]  ;;  %v5174_v4 = vld [vmem:[#allocation2 + $0x80] sm:$0xff] }
 0x549   :  { %5152 = vst.msk [vmem:[#allocation2 + $0x2c1] sm:$0xff] %vm4988_vm2, %v4977_v9  ;;  %v12508_v41 = vpop.f32.mrb[56].mxu0  ;;  %v5350_v49 = vpack.c.bf16 %v5312_v30, %v5311_v21  ;;  %v5169_v36 = vld [vmem:[#allocation2 + $0x48] sm:$0xff]  ;;  %v16516_v57 = vpack.c.bf16 %v5172_v40, %v5171_v60  ;;  %v5176_v9 = vld [vmem:[#allocation2 + $0x98] sm:$0xff]  ;;  %v5175_v21 = vld [vmem:[#allocation2 + $0x90] sm:$0xff] }
 0x54a   :  { %v4918_v17 = vadd.f32 %v12508_v41, %v16331_v39  ;;  %v4758_v22 = vpop.f32.mrb[57].mxu0  ;;  %v16514_v27 = vpack.c.bf16 %v5170_v61, %v5169_v36  ;;  %v5173_v20 = vld [vmem:[#allocation2 + $0x78] sm:$0xff]  ;;  %v16524_v30 = vpack.c.bf16 %v5176_v9, %v5175_v21  ;;  %v5178_v41 = vld [vmem:[#allocation2 + $0xb0] sm:$0xff]  ;;  %v5177_v63 = vld [vmem:[#allocation2 + $0xa8] sm:$0xff] }
 0x54b   :  { %v4916_v2 = vadd.f32 %v16331_v39, %v4758_v22  ;;  %v12509_v28 = vpop.f32.mrb[58].mxu0  ;;  %12565 = vmatmul.mubr.msk.bf16.gmra.mrb[48].mxu1 %vm4988_vm2, %v5350_v49  ;;  %v5180_v49 = vld [vmem:[#allocation2 + $0xc8] sm:$0xff]  ;;  %v5179_v22 = vld [vmem:[#allocation2 + $0xc0] sm:$0xff]  ;;  %v5212_v61 = vld [vmem:[#allocation2 + $0x278] sm:$0xff] }
 0x54c   :  { %v4982_v25 = vmax.f32 %v4918_v17, 0.0  ;;  %v4919_v26 = vadd.f32 %v12509_v28, %v16331_v39  ;;  %v4761_v50 = vpop.f32.mrb[59].mxu0  ;;  %12568 = vmatprep.mubr.msk.bf16.mxu1 %vm4988_vm2, %v5351_v48  ;;  %v16530_v17 = vpack.c.bf16 %v5178_v41, %v5177_v63  ;;  %v16532_v48 = vpack.c.bf16 %v5180_v49, %v5179_v22  ;;  %v5184_v28 = vld [vmem:[#allocation2 + $0xf8] sm:$0xff]  ;;  %v5211_v60 = vld [vmem:[#allocation2 + $0x270] sm:$0xff]  ;;  %v5213_v21 = vld [vmem:[#allocation2 + $0x288] sm:$0xff] }
 0x54d   :  { %v4980_v55 = vmax.f32 %v4916_v2, 0.0  ;;  %v4917_v11 = vadd.f32 %v16331_v39, %v4761_v50  ;;  %v5317_v42 = vld [vmem:[#allocation2 + $0x2d1] sm:$0xff]  ;;  %v5182_v2 = vld [vmem:[#allocation2 + $0xe0] sm:$0xff] }
 0x54e   :  { %5157 = vst.msk [vmem:[#allocation2 + $0x301] sm:$0xff] %vm4988_vm2, %v4982_v25  ;;  %v4983_v14 = vmax.f32 %v4919_v26, 0.0  ;;  %v5315_v0 = vld [vmem:[#allocation2 + $0x2b9] sm:$0xff]  ;;  %v5183_v50 = vld [vmem:[#allocation2 + $0xf0] sm:$0xff] }
 0x54f   :  { %5155 = vst.msk [vmem:[#allocation2 + $0x2e9] sm:$0xff] %vm4988_vm2, %v4980_v55  ;;  %v4981_v32 = vmax.f32 %v4917_v11, 0.0  ;;  %v5318_v52 = vld [vmem:[#allocation2 + $0x2d9] sm:$0xff]  ;;  %v16540_v55 = vpack.c.bf16 %v5184_v28, %v5183_v50  ;;  %v5186_v11 = vld [vmem:[#allocation2 + $0x110] sm:$0xff] }
 0x550   :  { %5158 = vst.msk [vmem:[#allocation2 + $0x309] sm:$0xff] %vm4988_vm2, %v4983_v14  ;;  %v5316_v37 = vld [vmem:[#allocation2 + $0x2c1] sm:$0xff]  ;;  %v5353_v33 = vpack.c.bf16 %v5318_v52, %v5317_v42  ;;  %v5181_v25 = vld [vmem:[#allocation2 + $0xd8] sm:$0xff]  ;;  %v5214_v9 = vld [vmem:[#allocation2 + $0x290] sm:$0xff] }
 0x551   :  { %5156 = vst.msk [vmem:[#allocation2 + $0x2f1] sm:$0xff] %vm4988_vm2, %v4981_v32  ;;  %v12512_v62 = vpop.f32.mrb[60].mxu0  ;;  %v5352_v35 = vpack.c.bf16 %v5316_v37, %v5315_v0  ;;  %v16538_v26 = vpack.c.bf16 %v5182_v2, %v5181_v25  ;;  %v5188_v14 = vld [vmem:[#allocation2 + $0x128] sm:$0xff]  ;;  %v5187_v0 = vld [vmem:[#allocation2 + $0x120] sm:$0xff]  ;;  %v5189_v42 = vld [vmem:[#allocation2 + $0x138] sm:$0xff]  ;;  %v16599_v41 = vpack.c.bf16 %v5214_v9, %v5213_v21 }
 0x552   :  { %v4922_v6 = vadd.f32 %v12512_v62, %v16331_v39  ;;  %v4774_v7 = vpop.f32.mrb[61].mxu0  ;;  %v5185_v32 = vld [vmem:[#allocation2 + $0x108] sm:$0xff]  ;;  %v16548_v37 = vpack.c.bf16 %v5188_v14, %v5187_v0  ;;  %v5190_v62 = vld [vmem:[#allocation2 + $0x140] sm:$0xff]  ;;  %v5209_v40 = vld [vmem:[#allocation2 + $0x258] sm:$0xff] }
 0x553   :  { %v4920_v34 = vadd.f32 %v16331_v39, %v4774_v7  ;;  %v12513_v47 = vpop.f32.mrb[62].mxu0  ;;  %12569 = vmatmul.mubr.msk.bf16.gmra.mrb[52].mxu1 %vm4988_vm2, %v5352_v35  ;;  %v16546_v52 = vpack.c.bf16 %v5186_v11, %v5185_v32  ;;  %v5192_v35 = vld [vmem:[#allocation2 + $0x158] sm:$0xff]  ;;  %v5191_v7 = vld [vmem:[#allocation2 + $0x150] sm:$0xff]  ;;  %v16591_v36 = vpack.c.bf16 %v5210_v29, %v5209_v40  ;;  %v5215_v49 = vld [vmem:[#allocation2 + $0x2a0] sm:$0xff] }
 0x554   :  { %v4986_v56 = vmax.f32 %v4922_v6, 0.0  ;;  %v4923_v1 = vadd.f32 %v12513_v47, %v16331_v39  ;;  %v4777_v19 = vpop.f32.mrb[63].mxu0  ;;  %12572 = vmatprep.mubr.msk.bf16.mxu1 %vm4988_vm2, %v5353_v33  ;;  %v16554_v6 = vpack.c.bf16 %v5190_v62, %v5189_v42  ;;  %v16556_v33 = vpack.c.bf16 %v5192_v35, %v5191_v7  ;;  %v5196_v47 = vld [vmem:[#allocation2 + $0x1b8] sm:$0xff]  ;;  %v5218_v22 = vld [vmem:[#allocation2 + $0x2c0] sm:$0xff]  ;;  %v5219_v50 = vld [vmem:[#allocation2 + $0x2d0] sm:$0xff] }
 0x555   :  { %v4984_v24 = vmax.f32 %v4920_v34, 0.0  ;;  %v4921_v51 = vadd.f32 %v16331_v39, %v4777_v19  ;;  %v5321_v58 = vld [vmem:[#allocation2 + $0x301] sm:$0xff]  ;;  %v5195_v34 = vld [vmem:[#allocation2 + $0x1b0] sm:$0xff]  ;;  %v5220_v2 = vld [vmem:[#allocation2 + $0x2d8] sm:$0xff] }
 0x556   :  { %5161 = vst.msk [vmem:[#allocation2 + $0x331] sm:$0xff] %vm4988_vm2, %v4986_v56  ;;  %v4987_v54 = vmax.f32 %v4923_v1, 0.0  ;;  %v5319_v3 = vld [vmem:[#allocation2 + $0x2e9] sm:$0xff]  ;;  %v5163_v39 = vld [vmem:[#allocation2] sm:$0xff]  ;;  %v5243_v19 = vpack.c.bf16 %v5196_v47, %v5195_v34  ;;  %v5217_v28 = vld [vmem:[#allocation2 + $0x2b8] sm:$0xff]  ;;  %v16609_v11 = vpack.c.bf16 %v5220_v2, %v5219_v50 }
 0x557   :  { %5159 = vst.msk [vmem:[#allocation2 + $0x319] sm:$0xff] %vm4988_vm2, %v4984_v24  ;;  %v4985_v15 = vmax.f32 %v4921_v51, 0.0  ;;  %v5322_v16 = vld [vmem:[#allocation2 + $0x309] sm:$0xff]  ;;  %v5227_v45 = vpack.c.bf16 %v5164_v13, %v5163_v39  ;;  %v16607_v25 = vpack.c.bf16 %v5218_v22, %v5217_v28  ;;  %v5223_v35 = vld [vmem:[#allocation2 + $0x300] sm:$0xff] }
 0x558   :  { %5162 = vst.msk [vmem:[#allocation2 + $0x339] sm:$0xff] %vm4988_vm2, %v4987_v54  ;;  %v5320_v10 = vld [vmem:[#allocation2 + $0x2f1] sm:$0xff]  ;;  %v5355_v12 = vpack.c.bf16 %v5322_v16, %v5321_v58  ;;  %v5193_v1 = vld [vmem:[#allocation2 + $0x168] sm:$0xff] }
 0x559   :  { %5160 = vst.msk [vmem:[#allocation2 + $0x321] sm:$0xff] %vm4988_vm2, %v4985_v15  ;;  %v5354_v53 = vpack.c.bf16 %v5320_v10, %v5319_v3  ;;  %v5194_v56 = vld [vmem:[#allocation2 + $0x170] sm:$0xff]  ;;  %v5200_v54 = vld [vmem:[#allocation2 + $0x1e8] sm:$0xff]  ;;  %v5199_v3 = vld [vmem:[#allocation2 + $0x1e0] sm:$0xff] }
 0x55a   :  { %v16562_v24 = vpack.c.bf16 %v5194_v56, %v5193_v1  ;;  %v5198_v51 = vld [vmem:[#allocation2 + $0x1d0] sm:$0xff]  ;;  %v5197_v15 = vld [vmem:[#allocation2 + $0x1c8] sm:$0xff]  ;;  %v16569_v10 = vpack.c.bf16 %v5200_v54, %v5199_v3  ;;  %v5204_v58 = vld [vmem:[#allocation2 + $0x218] sm:$0xff] }
 0x55b   :  { %12573 = vmatmul.mubr.msk.bf16.gmra.mrb[56].mxu1 %vm4988_vm2, %v5354_v53  ;;  %v16567_v16 = vpack.c.bf16 %v5198_v51, %v5197_v15  ;;  %v5202_v53 = vld [vmem:[#allocation2 + $0x200] sm:$0xff]  ;;  %v5203_v13 = vld [vmem:[#allocation2 + $0x210] sm:$0xff]  ;;  %v5224_v32 = vld [vmem:[#allocation2 + $0x308] sm:$0xff] }
 0x55c   :  { %12576 = vmatprep.mubr.msk.bf16.mxu1 %vm4988_vm2, %v5355_v12  ;;  %v5201_v12 = vld [vmem:[#allocation2 + $0x1f8] sm:$0xff]  ;;  %v5222_v14 = vld [vmem:[#allocation2 + $0x2f0] sm:$0xff]  ;;  %v5221_v0 = vld [vmem:[#allocation2 + $0x2e8] sm:$0xff]  ;;  %v16617_v42 = vpack.c.bf16 %v5224_v32, %v5223_v35 }
 0x55d   :  { %v16575_v39 = vpack.c.bf16 %v5202_v53, %v5201_v12  ;;  %v16615_v62 = vpack.c.bf16 %v5222_v14, %v5221_v0  ;;  %v6142_v7 = vld [vmem:[#allocation2 + $0x2] sm:$0xff]  ;;  %v6143_v34 = vld [vmem:[#allocation2 + $0xa] sm:$0xff]  ;;  %v6144_v51 = vld [vmem:[#allocation2 + $0x1a] sm:$0xff] }
 0x55e   :  { %v5323_v44 = vld [vmem:[#allocation2 + $0x319] sm:$0xff]  ;;  %v6206_v1 = vpack.c.bf16 %v6143_v34, %v6142_v7  ;;  %v6145_v54 = vld [vmem:[#allocation2 + $0x22] sm:$0xff]  ;;  %v6156_v21 = vld [vmem:[#allocation2 + $0xaa] sm:$0xff] }
 0x55f   :  { %v5225_v56 = vld [vmem:[#allocation2 + $0x318] sm:$0xff]  ;;  %v16628_v53 = vpack.c.bf16 %v6145_v54, %v6144_v51  ;;  %v16637_v12 = vld [vmem:[%s17313_s3 + $0x20] sm:$0xff]   ;;  %v6159_v2 = vld [vmem:[#allocation2 + $0xca] sm:$0xff] }
 0x560   :  { %v5324_v23 = vld [vmem:[#allocation2 + $0x321] sm:$0xff]  ;;  %v6146_v15 = vld [vmem:[#allocation2 + $0x32] sm:$0xff]  ;;  %v6167_v51 = vld [vmem:[#allocation2 + $0x12a] sm:$0xff] }
 0x561   :  { %v5356_v46 = vpack.c.bf16 %v5324_v23, %v5323_v44  ;;  %v16577_v44 = vpack.c.bf16 %v5204_v58, %v5203_v13  ;;  %v5206_v23 = vld [vmem:[#allocation2 + $0x230] sm:$0xff]  ;;  %v5226_v47 = vld [vmem:[#allocation2 + $0x320] sm:$0xff] }
 0x562   :  { %v6147_v3 = vld [vmem:[#allocation2 + $0x3a] sm:$0xff]  ;;  %v6148_v13 = vld [vmem:[#allocation2 + $0x4a] sm:$0xff]  ;;  %v6153_v40 = vld [vmem:[#allocation2 + $0x82] sm:$0xff] }
 0x563   :  { %12577 = vmatmul.mubr.msk.bf16.gmra.mrb[60].mxu1 %vm4988_vm2, %v5356_v46  ;;  %v5205_v46 = vld [vmem:[#allocation2 + $0x228] sm:$0xff]  ;;  %v16630_v58 = vpack.c.bf16 %v6147_v3, %v6146_v15  ;;  %v6160_v14 = vld [vmem:[#allocation2 + $0xda] sm:$0xff]  ;;  %v6162_v0 = vld [vmem:[#allocation2 + $0xf2] sm:$0xff] }
 0x564   :  { %12582 = vmatprep.mubr.msk.bf16.mxu1 %vm4988_vm2, %v5227_v45  ;;  %v5208_v45 = vld [vmem:[#allocation2 + $0x248] sm:$0xff]  ;;  %v16583_v18 = vpack.c.bf16 %v5206_v23, %v5205_v46  ;;  %v6149_v23 = vld [vmem:[#allocation2 + $0x52] sm:$0xff]  ;;  %v6163_v35 = vld [vmem:[#allocation2 + $0xfa] sm:$0xff] }
 0x565   :  { %v16585_v5 = vpack.c.bf16 %v5208_v45, %v5207_v31  ;;  %v6150_v45 = vld [vmem:[#allocation2 + $0x62] sm:$0xff]  ;;  %v6151_v46 = vld [vmem:[#allocation2 + $0x6a] sm:$0xff]  ;;  %v16643_v31 = vpack.c.bf16 %v6149_v23, %v6148_v13  ;;  %v16669_v34 = vpack.c.bf16 %v6163_v35, %v6162_v0  ;;  %v6168_v3 = vld [vmem:[#allocation2 + $0x13a] sm:$0xff] }
 0x566   :  { %v16645_v29 = vpack.c.bf16 %v6151_v46, %v6150_v45  ;;  %v6158_v22 = vld [vmem:[#allocation2 + $0xc2] sm:$0xff]  ;;  %v6170_v23 = vld [vmem:[#allocation2 + $0x152] sm:$0xff]  ;;  %v6171_v45 = vld [vmem:[#allocation2 + $0x15a] sm:$0xff] }
 0x567   :  { %v16661_v50 = vpack.c.bf16 %v6159_v2, %v6158_v22  ;;  %v6161_v32 = vld [vmem:[#allocation2 + $0xe2] sm:$0xff]  ;;  %v6176_v2 = vld [vmem:[#allocation2 + $0x1ca] sm:$0xff] }
 0x568   :  { %v16667_v7 = vpack.c.bf16 %v6161_v32, %v6160_v14  ;;  %v6169_v13 = vld [vmem:[#allocation2 + $0x142] sm:$0xff]  ;;  %v6177_v14 = vld [vmem:[#allocation2 + $0x1d2] sm:$0xff]  ;;  %v6179_v0 = vld [vmem:[#allocation2 + $0x1ea] sm:$0xff] }
 0x569   :  { %v16683_v46 = vpack.c.bf16 %v6169_v13, %v6168_v3  ;;  %v6178_v32 = vld [vmem:[#allocation2 + $0x1e2] sm:$0xff]  ;;  %v16696_v35 = vpack.c.bf16 %v6177_v14, %v6176_v2  ;;  %v6183_v3 = vld [vmem:[#allocation2 + $0x21a] sm:$0xff] }
 0x56a   :  { %v6188_v2 = vld [vmem:[#allocation2 + $0x25a] sm:$0xff]  ;;  %v6189_v14 = vld [vmem:[#allocation2 + $0x262] sm:$0xff] }
 0x56b   :  { %12583 = vmatmul.mubr.msk.bf16.vlgmr.msra.gmra.mrb[0].mxu1 %vm4988_vm2, %v16499_v8 }
 0x56c   :  { %12586 = vmatprep.mubr.msk.bf16.mxu1 %vm4988_vm2, %v16501_v59  ;;  %12647 = vmatpush3.bf16.msra.mxu1 %v16355_v43  ;;  %v16522_v43 = vpack.c.bf16 %v5174_v4, %v5173_v20  ;;  %v16593_v4 = vpack.c.bf16 %v5212_v61, %v5211_v60  ;;  %v5216_v20 = vld [vmem:[#allocation2 + $0x2a8] sm:$0xff]  ;;  %v6152_v61 = vld [vmem:[#allocation2 + $0x7a] sm:$0xff]  ;;  %v6154_v60 = vld [vmem:[#allocation2 + $0x92] sm:$0xff] }
 0x56d   :  { %12712 = vmatprep.subr.bf16.mxu1 %v16508_v38  ;;  %v16601_v63 = vpack.c.bf16 %v5216_v20, %v5215_v49  ;;  %v16651_v9 = vpack.c.bf16 %v6153_v40, %v6152_v61  ;;  %v6157_v49 = vld [vmem:[#allocation2 + $0xb2] sm:$0xff]  ;;  %v16685_v61 = vpack.c.bf16 %v6171_v45, %v6170_v23  ;;  %v6184_v45 = vld [vmem:[#allocation2 + $0x22a] sm:$0xff] }
 0x56e   :  { %v16659_v28 = vpack.c.bf16 %v6157_v49, %v6156_v21  ;;  %v6174_v40 = vld [vmem:[#allocation2 + $0x1b2] sm:$0xff] }
 0x56f   :  { %v6173_v21 = vld [vmem:[#allocation2 + $0x172] sm:$0xff] }
 0x573   :  { %12587 = vmatmul.mubr.msk.bf16.gmra.mrb[4].mxu1 %vm4988_vm2, %v16514_v27 }
 0x574   :  { %12590 = vmatprep.mubr.msk.bf16.mxu1 %vm4988_vm2, %v16516_v57 }
 0x57b   :  { %12591 = vmatmul.mubr.msk.bf16.gmra.mrb[8].mxu1 %vm4988_vm2, %v16522_v43 }
 0x57c   :  { %12594 = vmatprep.mubr.msk.bf16.mxu1 %vm4988_vm2, %v16524_v30 }
 0x583   :  { %12595 = vmatmul.mubr.msk.bf16.gmra.mrb[12].mxu1 %vm4988_vm2, %v16530_v17 }
 0x584   :  { %12598 = vmatprep.mubr.msk.bf16.mxu1 %vm4988_vm2, %v16532_v48 }
 0x58b   :  { %12599 = vmatmul.mubr.msk.bf16.gmra.mrb[16].mxu1 %vm4988_vm2, %v16538_v26 }
 0x58c   :  { %12602 = vmatprep.mubr.msk.bf16.mxu1 %vm4988_vm2, %v16540_v55 }
 0x593   :  { %12603 = vmatmul.mubr.msk.bf16.gmra.mrb[20].mxu1 %vm4988_vm2, %v16546_v52 }
 0x594   :  { %12606 = vmatprep.mubr.msk.bf16.mxu1 %vm4988_vm2, %v16548_v37 }
 0x59b   :  { %12607 = vmatmul.mubr.msk.bf16.gmra.mrb[24].mxu1 %vm4988_vm2, %v16554_v6 }
 0x59c   :  { %12610 = vmatprep.mubr.msk.bf16.mxu1 %vm4988_vm2, %v16556_v33 }
 0x5a3   :  { %12611 = vmatmul.mubr.msk.bf16.gmra.mrb[28].mxu1 %vm4988_vm2, %v16562_v24 }
 0x5a4   :  { %12614 = vmatprep.mubr.msk.bf16.mxu1 %vm4988_vm2, %v5243_v19  ;;  %v16623_v19 = vpack.c.bf16 %v5226_v47, %v5225_v56  ;;  %v6164_v47 = vld [vmem:[#allocation2 + $0x10a] sm:$0xff]  ;;  %v6165_v56 = vld [vmem:[#allocation2 + $0x112] sm:$0xff] }
 0x5a5   :  { %v16675_v54 = vpack.c.bf16 %v6165_v56, %v6164_v47  ;;  %v16698_v47 = vpack.c.bf16 %v6179_v0, %v6178_v32  ;;  %v6180_v56 = vld [vmem:[#allocation2 + $0x1fa] sm:$0xff]  ;;  %v6190_v32 = vld [vmem:[#allocation2 + $0x272] sm:$0xff] }
 0x5a6   :  { %v6191_v0 = vld [vmem:[#allocation2 + $0x27a] sm:$0xff] }
 0x5ab   :  { %12615 = vmatmul.mubr.msk.bf16.gmra.mrb[32].mxu1 %vm4988_vm2, %v16567_v16 }
 0x5ac   :  { %12618 = vmatprep.mubr.msk.bf16.mxu1 %vm4988_vm2, %v16569_v10 }
 0x5b3   :  { %12619 = vmatmul.mubr.msk.bf16.gmra.mrb[36].mxu1 %vm4988_vm2, %v16575_v39 }
 0x5b4   :  { %12622 = vmatprep.mubr.msk.bf16.mxu1 %vm4988_vm2, %v16577_v44 }
 0x5bb   :  { %12623 = vmatmul.mubr.msk.bf16.gmra.mrb[40].mxu1 %vm4988_vm2, %v16583_v18 }
 0x5bc   :  { %12626 = vmatprep.mubr.msk.bf16.mxu1 %vm4988_vm2, %v16585_v5 }
 0x5c3   :  { %12627 = vmatmul.mubr.msk.bf16.gmra.mrb[44].mxu1 %vm4988_vm2, %v16591_v36 }
 0x5c4   :  { %12630 = vmatprep.mubr.msk.bf16.mxu1 %vm4988_vm2, %v16593_v4 }
 0x5cb   :  { %12631 = vmatmul.mubr.msk.bf16.gmra.mrb[48].mxu1 %vm4988_vm2, %v16599_v41 }
 0x5cc   :  { %12634 = vmatprep.mubr.msk.bf16.mxu1 %vm4988_vm2, %v16601_v63 }
 0x5d3   :  { %12635 = vmatmul.mubr.msk.bf16.gmra.mrb[52].mxu1 %vm4988_vm2, %v16607_v25 }
 0x5d4   :  { %12638 = vmatprep.mubr.msk.bf16.mxu1 %vm4988_vm2, %v16609_v11 }
 0x5db   :  { %12639 = vmatmul.mubr.msk.bf16.gmra.mrb[56].mxu1 %vm4988_vm2, %v16615_v62 }
 0x5dc   :  { %12642 = vmatprep.mubr.msk.bf16.mxu1 %vm4988_vm2, %v16617_v42 }
 0x5e3   :  { %12643 = vmatmul.mubr.msk.bf16.gmra.mrb[60].mxu1 %vm4988_vm2, %v16623_v19 }
 0x5e4   :  { %12648 = vmatprep.mubr.msk.bf16.mxu1 %vm4988_vm2, %v6206_v1  ;;  %v6166_v1 = vld [vmem:[#allocation2 + $0x122] sm:$0xff] }
 0x5e5   :  { %v16677_v15 = vpack.c.bf16 %v6167_v51, %v6166_v1  ;;  %v6181_v1 = vld [vmem:[#allocation2 + $0x202] sm:$0xff]  ;;  %v6182_v51 = vld [vmem:[#allocation2 + $0x212] sm:$0xff] }
 0x5e6   :  { %v16704_v13 = vpack.c.bf16 %v6181_v1, %v6180_v56  ;;  %v16706_v23 = vpack.c.bf16 %v6183_v3, %v6182_v51  ;;  %v16720_v56 = vpack.c.bf16 %v6189_v14, %v6188_v2  ;;  %v16722_v1 = vpack.c.bf16 %v6191_v0, %v6190_v32  ;;  %v6192_v51 = vld [vmem:[#allocation2 + $0x28a] sm:$0xff]  ;;  %v6193_v3 = vld [vmem:[#allocation2 + $0x292] sm:$0xff]  ;;  %v6196_v2 = vld [vmem:[#allocation2 + $0x2ba] sm:$0xff] }
 0x5e7   :  { %v6197_v14 = vld [vmem:[#allocation2 + $0x2c2] sm:$0xff]  ;;  %v6198_v32 = vld [vmem:[#allocation2 + $0x2d2] sm:$0xff]  ;;  %v6199_v0 = vld [vmem:[#allocation2 + $0x2da] sm:$0xff] }
 0x5e8   :  { %17340 = vst [vmem:[#allocation4_spill] sm:$0xff] %v16720_v56  ;;  %17341 = vst [vmem:[#allocation5_spill] sm:$0xff] %v16722_v1 }
 0x5eb   :  { %12649 = vmatmul.mubr.msk.bf16.vlgmr.msra.gmra.mrb[0].mxu1 %vm4988_vm2, %v16628_v53 }
 0x5ec   :  { %12652 = vmatprep.mubr.msk.bf16.mxu1 %vm4988_vm2, %v16630_v58  ;;  %12713 = vmatpush3.bf16.msra.mxu1 %v16508_v38  ;;  %v6155_v38 = vld [vmem:[#allocation2 + $0x9a] sm:$0xff] }
 0x5ed   :  { %12778 = vmatprep.subr.bf16.mxu1 %v16637_v12  ;;  %v16653_v20 = vpack.c.bf16 %v6155_v38, %v6154_v60  ;;  %v6175_v60 = vld [vmem:[#allocation2 + $0x1ba] sm:$0xff]  ;;  %v6172_v38 = vld [vmem:[#allocation2 + $0x16a] sm:$0xff] }
 0x5ee   :  { %v6222_v49 = vpack.c.bf16 %v6175_v60, %v6174_v40  ;;  %v16691_v22 = vpack.c.bf16 %v6173_v21, %v6172_v38  ;;  %v6185_v40 = vld [vmem:[#allocation2 + $0x232] sm:$0xff]  ;;  %v6186_v60 = vld [vmem:[#allocation2 + $0x242] sm:$0xff]  ;;  %v6187_v38 = vld [vmem:[#allocation2 + $0x24a] sm:$0xff] }
 0x5ef   :  { %v16712_v21 = vpack.c.bf16 %v6185_v40, %v6184_v45  ;;  %v6194_v45 = vld [vmem:[#allocation2 + $0x2a2] sm:$0xff]  ;;  %v6195_v40 = vld [vmem:[#allocation2 + $0x2aa] sm:$0xff] }
 0x5f3   :  { %12653 = vmatmul.mubr.msk.bf16.gmra.mrb[4].mxu1 %vm4988_vm2, %v16643_v31 }
 0x5f4   :  { %12656 = vmatprep.mubr.msk.bf16.mxu1 %vm4988_vm2, %v16645_v29 }
 0x5fb   :  { %12657 = vmatmul.mubr.msk.bf16.gmra.mrb[8].mxu1 %vm4988_vm2, %v16651_v9 }
 0x5fc   :  { %12660 = vmatprep.mubr.msk.bf16.mxu1 %vm4988_vm2, %v16653_v20 }
 0x603   :  { %12661 = vmatmul.mubr.msk.bf16.gmra.mrb[12].mxu1 %vm4988_vm2, %v16659_v28 }
 0x604   :  { %12664 = vmatprep.mubr.msk.bf16.mxu1 %vm4988_vm2, %v16661_v50 }
 0x60b   :  { %12665 = vmatmul.mubr.msk.bf16.gmra.mrb[16].mxu1 %vm4988_vm2, %v16667_v7 }
 0x60c   :  { %12668 = vmatprep.mubr.msk.bf16.mxu1 %vm4988_vm2, %v16669_v34 }
 0x613   :  { %12669 = vmatmul.mubr.msk.bf16.gmra.mrb[20].mxu1 %vm4988_vm2, %v16675_v54 }
 0x614   :  { %12672 = vmatprep.mubr.msk.bf16.mxu1 %vm4988_vm2, %v16677_v15 }
 0x61b   :  { %12673 = vmatmul.mubr.msk.bf16.gmra.mrb[24].mxu1 %vm4988_vm2, %v16683_v46 }
 0x61c   :  { %12676 = vmatprep.mubr.msk.bf16.mxu1 %vm4988_vm2, %v16685_v61 }
 0x623   :  { %12677 = vmatmul.mubr.msk.bf16.gmra.mrb[28].mxu1 %vm4988_vm2, %v16691_v22 }
 0x624   :  { %12680 = vmatprep.mubr.msk.bf16.mxu1 %vm4988_vm2, %v6222_v49  ;;  %v16714_v49 = vpack.c.bf16 %v6187_v38, %v6186_v60  ;;  %v16728_v60 = vpack.c.bf16 %v6193_v3, %v6192_v51  ;;  %v16730_v38 = vpack.c.bf16 %v6195_v40, %v6194_v45  ;;  %v6200_v51 = vld [vmem:[#allocation2 + $0x2ea] sm:$0xff]  ;;  %v6201_v3 = vld [vmem:[#allocation2 + $0x2f2] sm:$0xff]  ;;  %v6202_v45 = vld [vmem:[#allocation2 + $0x302] sm:$0xff] }
 0x625   :  { %v6203_v40 = vld [vmem:[#allocation2 + $0x30a] sm:$0xff] }
 0x626   :  { %17342 = vst [vmem:[#allocation6_spill] sm:$0xff] %v16728_v60  ;;  %17343 = vst [vmem:[#allocation7_spill] sm:$0xff] %v16730_v38 }
 0x62b   :  { %12681 = vmatmul.mubr.msk.bf16.gmra.mrb[32].mxu1 %vm4988_vm2, %v16696_v35 }
 0x62c   :  { %12684 = vmatprep.mubr.msk.bf16.mxu1 %vm4988_vm2, %v16698_v47 }
 0x633   :  { %12685 = vmatmul.mubr.msk.bf16.gmra.mrb[36].mxu1 %vm4988_vm2, %v16704_v13 }
 0x634   :  { %12688 = vmatprep.mubr.msk.bf16.mxu1 %vm4988_vm2, %v16706_v23 }
 0x63b   :  { %12689 = vmatmul.mubr.msk.bf16.gmra.mrb[40].mxu1 %vm4988_vm2, %v16712_v21 }
 0x63c   :  { %12692 = vmatprep.mubr.msk.bf16.mxu1 %vm4988_vm2, %v16714_v49 }
 0x643   :  { %12693 = vmatmul.mubr.msk.bf16.gmra.mrb[44].mxu1 %vm4988_vm2, %v16720_v56  ;;  %v16736_v56 = vpack.c.bf16 %v6197_v14, %v6196_v2  ;;  %v6204_v2 = vld [vmem:[#allocation2 + $0x31a] sm:$0xff]  ;;  %v6205_v14 = vld [vmem:[#allocation2 + $0x322] sm:$0xff] }
 0x644   :  { %12696 = vmatprep.mubr.msk.bf16.mxu1 %vm4988_vm2, %v16722_v1  ;;  %v16738_v1 = vpack.c.bf16 %v6199_v0, %v6198_v32  ;;  %v16752_v32 = vpack.c.bf16 %v6205_v14, %v6204_v2  ;;  %v14147_v0 = vld [vmem:[%s17313_s3 + $0x28] sm:$0xff]   ;;  %v7271_v2 = vld [vmem:[#allocation2 + $0x111] sm:$0xff] }
 0x645   :  { %v7268_v14 = vld [vmem:[#allocation2 + $0xf1] sm:$0xff] }
 0x64b   :  { %12697 = vmatmul.mubr.msk.bf16.gmra.mrb[48].mxu1 %vm4988_vm2, %v16728_v60  ;;  %v16744_v60 = vpack.c.bf16 %v6201_v3, %v6200_v51  ;;  %v7266_v3 = vld [vmem:[#allocation2 + $0xd9] sm:$0xff] }
 0x64c   :  { %12700 = vmatprep.mubr.msk.bf16.mxu1 %vm4988_vm2, %v16730_v38  ;;  %v16746_v38 = vpack.c.bf16 %v6203_v40, %v6202_v45  ;;  %v7269_v40 = vld [vmem:[#allocation2 + $0xf9] sm:$0xff] }
 0x653   :  { %12701 = vmatmul.mubr.msk.bf16.gmra.mrb[52].mxu1 %vm4988_vm2, %v16736_v56 }
 0x654   :  { %12704 = vmatprep.mubr.msk.bf16.mxu1 %vm4988_vm2, %v16738_v1 }
 0x65b   :  { %12705 = vmatmul.mubr.msk.bf16.gmra.mrb[56].mxu1 %vm4988_vm2, %v16744_v60 }
 0x65c   :  { %12708 = vmatprep.mubr.msk.bf16.mxu1 %vm4988_vm2, %v16746_v38 }
 0x663   :  { %12709 = vmatmul.mubr.msk.bf16.gmra.mrb[60].mxu1 %vm4988_vm2, %v16752_v32 }
 0x664   :  { %12714 = vmatprep.mubr.msk.bf16.mxu1 %vm4988_vm2, %v16499_v8  ;;  %v6727_v8 = vld [vmem:[#allocation2 + $0x188] sm:$0xff] }
 0x66b   :  { %12715 = vmatmul.mubr.msk.bf16.vlgmr.msra.gmra.mrb[0].mxu1 %vm4988_vm2, %v16501_v59  ;;  %v6726_v59 = vld [vmem:[#allocation2 + $0x180] sm:$0xff] }
 0x66c   :  { %12718 = vmatprep.mubr.msk.bf16.mxu1 %vm4988_vm2, %v16514_v27  ;;  %12779 = vmatpush3.bf16.msra.mxu1 %v16637_v12  ;;  %v16790_v27 = vpack.c.bf16 %v6727_v8, %v6726_v59  ;;  %v7264_v12 = vld [vmem:[#allocation2 + $0xc1] sm:$0xff]  ;;  %v7270_v8 = vld [vmem:[#allocation2 + $0x109] sm:$0xff] }
 0x66d   :  { %12844 = vmatprep.subr.bf16.mxu1 %v14147_v0  ;;  %v16869_v59 = vpack.c.bf16 %v7271_v2, %v7270_v8  ;;  %v7286_v2 = vld [vmem:[#allocation2 + $0x1f9] sm:$0xff] }
 0x66e   :  { %v7289_v8 = vld [vmem:[#allocation2 + $0x219] sm:$0xff] }
 0x673   :  { %12719 = vmatmul.mubr.msk.bf16.gmra.mrb[4].mxu1 %vm4988_vm2, %v16516_v57  ;;  %v6759_v57 = vld [vmem:[#allocation2 + $0x338] sm:$0xff] }
 0x674   :  { %12722 = vmatprep.mubr.msk.bf16.mxu1 %vm4988_vm2, %v16522_v43  ;;  %v7251_v43 = vld [vmem:[#allocation2 + $0x21] sm:$0xff] }
 0x67b   :  { %12723 = vmatmul.mubr.msk.bf16.gmra.mrb[8].mxu1 %vm4988_vm2, %v16524_v30  ;;  %v6758_v30 = vld [vmem:[#allocation2 + $0x330] sm:$0xff] }
 0x67c   :  { %12726 = vmatprep.mubr.msk.bf16.mxu1 %vm4988_vm2, %v16530_v17  ;;  %v16824_v17 = vpack.c.bf16 %v6759_v57, %v6758_v30  ;;  %v7273_v57 = vld [vmem:[#allocation2 + $0x129] sm:$0xff]  ;;  %v7272_v30 = vld [vmem:[#allocation2 + $0x121] sm:$0xff] }
 0x683   :  { %12727 = vmatmul.mubr.msk.bf16.gmra.mrb[12].mxu1 %vm4988_vm2, %v16532_v48  ;;  %v7250_v48 = vld [vmem:[#allocation2 + $0x19] sm:$0xff] }
 0x684   :  { %12730 = vmatprep.mubr.msk.bf16.mxu1 %vm4988_vm2, %v16538_v26  ;;  %v7314_v26 = vpack.c.bf16 %v7251_v43, %v7250_v48  ;;  %v7275_v43 = vld [vmem:[#allocation2 + $0x141] sm:$0xff]  ;;  %v16875_v48 = vpack.c.bf16 %v7273_v57, %v7272_v30  ;;  %v7291_v57 = vld [vmem:[#allocation2 + $0x231] sm:$0xff] }
 0x68b   :  { %12731 = vmatmul.mubr.msk.bf16.gmra.mrb[16].mxu1 %vm4988_vm2, %v16540_v55  ;;  %v7253_v55 = vld [vmem:[#allocation2 + $0x39] sm:$0xff] }
 0x68c   :  { %12734 = vmatprep.mubr.msk.bf16.mxu1 %vm4988_vm2, %v16546_v52  ;;  %v7255_v52 = vld [vmem:[#allocation2 + $0x51] sm:$0xff] }
 0x693   :  { %12735 = vmatmul.mubr.msk.bf16.gmra.mrb[20].mxu1 %vm4988_vm2, %v16548_v37  ;;  %v7252_v37 = vld [vmem:[#allocation2 + $0x31] sm:$0xff] }
 0x694   :  { %12738 = vmatprep.mubr.msk.bf16.mxu1 %vm4988_vm2, %v16554_v6  ;;  %v16829_v6 = vpack.c.bf16 %v7253_v55, %v7252_v37  ;;  %v7279_v37 = vld [vmem:[#allocation2 + $0x171] sm:$0xff] }
 0x69b   :  { %12739 = vmatmul.mubr.msk.bf16.gmra.mrb[24].mxu1 %vm4988_vm2, %v16556_v33  ;;  %v7254_v33 = vld [vmem:[#allocation2 + $0x49] sm:$0xff] }
 0x69c   :  { %12742 = vmatprep.mubr.msk.bf16.mxu1 %vm4988_vm2, %v16562_v24  ;;  %v16831_v24 = vpack.c.bf16 %v7255_v52, %v7254_v33  ;;  %v7277_v52 = vld [vmem:[#allocation2 + $0x159] sm:$0xff]  ;;  %v7276_v33 = vld [vmem:[#allocation2 + $0x151] sm:$0xff] }
 0x6a3   :  { %12743 = vmatmul.mubr.msk.bf16.gmra.mrb[28].mxu1 %vm4988_vm2, %v16790_v27 }
 0x6a4   :  { %12746 = vmatprep.mubr.msk.bf16.mxu1 %vm4988_vm2, %v16567_v16  ;;  %v16838_v16 = vld [vmem:[%s17313_s3 + $0x30] sm:$0xff]  }
 0x6ab   :  { %12747 = vmatmul.mubr.msk.bf16.gmra.mrb[32].mxu1 %vm4988_vm2, %v16569_v10  ;;  %v7257_v10 = vld [vmem:[#allocation2 + $0x69] sm:$0xff] }
 0x6ac   :  { %12750 = vmatprep.mubr.msk.bf16.mxu1 %vm4988_vm2, %v16575_v39  ;;  %v7259_v39 = vld [vmem:[#allocation2 + $0x81] sm:$0xff] }
 0x6b3   :  { %12751 = vmatmul.mubr.msk.bf16.gmra.mrb[36].mxu1 %vm4988_vm2, %v16577_v44  ;;  %v7256_v44 = vld [vmem:[#allocation2 + $0x61] sm:$0xff] }
 0x6b4   :  { %12754 = vmatprep.mubr.msk.bf16.mxu1 %vm4988_vm2, %v16583_v18  ;;  %v16843_v18 = vpack.c.bf16 %v7257_v10, %v7256_v44  ;;  %v16883_v10 = vpack.c.bf16 %v7277_v52, %v7276_v33  ;;  %v7295_v33 = vld [vmem:[#allocation2 + $0x261] sm:$0xff] }
 0x6bb   :  { %12755 = vmatmul.mubr.msk.bf16.gmra.mrb[40].mxu1 %vm4988_vm2, %v16585_v5  ;;  %v7258_v5 = vld [vmem:[#allocation2 + $0x79] sm:$0xff] }
 0x6bc   :  { %12758 = vmatprep.mubr.msk.bf16.mxu1 %vm4988_vm2, %v16591_v36  ;;  %v16845_v36 = vpack.c.bf16 %v7259_v39, %v7258_v5  ;;  %v7278_v39 = vld [vmem:[#allocation2 + $0x169] sm:$0xff] }
 0x6bd   :  { %v16885_v44 = vpack.c.bf16 %v7279_v37, %v7278_v39  ;;  %v7281_v5 = vld [vmem:[#allocation2 + $0x189] sm:$0xff]  ;;  %v7292_v39 = vld [vmem:[#allocation2 + $0x241] sm:$0xff] }
 0x6be   :  { %v7293_v37 = vld [vmem:[#allocation2 + $0x249] sm:$0xff] }
 0x6c3   :  { %12759 = vmatmul.mubr.msk.bf16.gmra.mrb[44].mxu1 %vm4988_vm2, %v16593_v4  ;;  %v7261_v4 = vld [vmem:[#allocation2 + $0x99] sm:$0xff] }
 0x6c4   :  { %12762 = vmatprep.mubr.msk.bf16.mxu1 %vm4988_vm2, %v16599_v41  ;;  %v7263_v41 = vld [vmem:[#allocation2 + $0xb1] sm:$0xff] }
 0x6cb   :  { %12763 = vmatmul.mubr.msk.bf16.gmra.mrb[48].mxu1 %vm4988_vm2, %v16601_v63  ;;  %v7260_v63 = vld [vmem:[#allocation2 + $0x91] sm:$0xff] }
 0x6cc   :  { %12766 = vmatprep.mubr.msk.bf16.mxu1 %vm4988_vm2, %v16607_v25  ;;  %v16851_v25 = vpack.c.bf16 %v7261_v4, %v7260_v63  ;;  %v7283_v4 = vld [vmem:[#allocation2 + $0x1d1] sm:$0xff] }
 0x6d3   :  { %12767 = vmatmul.mubr.msk.bf16.gmra.mrb[52].mxu1 %vm4988_vm2, %v16609_v11  ;;  %v7262_v11 = vld [vmem:[#allocation2 + $0xa9] sm:$0xff] }
 0x6d4   :  { %12770 = vmatprep.mubr.msk.bf16.mxu1 %vm4988_vm2, %v16615_v62  ;;  %v16853_v62 = vpack.c.bf16 %v7263_v41, %v7262_v11  ;;  %v7280_v41 = vld [vmem:[#allocation2 + $0x181] sm:$0xff]  ;;  %v7282_v11 = vld [vmem:[#allocation2 + $0x1c9] sm:$0xff] }
 0x6d5   :  { %v16891_v63 = vpack.c.bf16 %v7281_v5, %v7280_v41  ;;  %v16912_v5 = vpack.c.bf16 %v7293_v37, %v7292_v39  ;;  %v7302_v37 = vld [vmem:[#allocation2 + $0x2b9] sm:$0xff] }
 0x6d6   :  { %v7305_v39 = vld [vmem:[#allocation2 + $0x2d9] sm:$0xff] }
 0x6db   :  { %12771 = vmatmul.mubr.msk.bf16.gmra.mrb[56].mxu1 %vm4988_vm2, %v16617_v42  ;;  %v7265_v42 = vld [vmem:[#allocation2 + $0xc9] sm:$0xff] }
 0x6dc   :  { %12774 = vmatprep.mubr.msk.bf16.mxu1 %vm4988_vm2, %v16623_v19  ;;  %v7267_v19 = vld [vmem:[#allocation2 + $0xe1] sm:$0xff]  ;;  %v16859_v51 = vpack.c.bf16 %v7265_v42, %v7264_v12  ;;  %v7330_v42 = vpack.c.bf16 %v7283_v4, %v7282_v11  ;;  %v7294_v4 = vld [vmem:[#allocation2 + $0x259] sm:$0xff] }
 0x6dd   :  { %v16861_v45 = vpack.c.bf16 %v7267_v19, %v7266_v3  ;;  %v7285_v19 = vld [vmem:[#allocation2 + $0x1e9] sm:$0xff]  ;;  %v7287_v12 = vld [vmem:[#allocation2 + $0x201] sm:$0xff]  ;;  %v16914_v41 = vpack.c.bf16 %v7295_v33, %v7294_v4  ;;  %v7297_v11 = vld [vmem:[#allocation2 + $0x279] sm:$0xff] }
 0x6de   :  { %v7284_v3 = vld [vmem:[#allocation2 + $0x1e1] sm:$0xff]  ;;  %v7307_v4 = vld [vmem:[#allocation2 + $0x2f1] sm:$0xff] }
 0x6e3   :  { %12775 = vmatmul.mubr.msk.bf16.gmra.mrb[60].mxu1 %vm4988_vm2, %v16824_v17 }
 0x6e4   :  { %12780 = vmatprep.mubr.msk.bf16.mxu1 %vm4988_vm2, %v7314_v26  ;;  %v7274_v26 = vld [vmem:[#allocation2 + $0x139] sm:$0xff] }
 0x6e5   :  { %v16877_v55 = vpack.c.bf16 %v7275_v43, %v7274_v26  ;;  %v7288_v43 = vld [vmem:[#allocation2 + $0x211] sm:$0xff]  ;;  %v7290_v26 = vld [vmem:[#allocation2 + $0x229] sm:$0xff] }
 0x6e6   :  { %v16904_v30 = vpack.c.bf16 %v7289_v8, %v7288_v43  ;;  %v16906_v52 = vpack.c.bf16 %v7291_v57, %v7290_v26  ;;  %v7301_v8 = vld [vmem:[#allocation2 + $0x2a9] sm:$0xff]  ;;  %v7303_v57 = vld [vmem:[#allocation2 + $0x2c1] sm:$0xff] }
 0x6e7   :  { %v7300_v43 = vld [vmem:[#allocation2 + $0x2a1] sm:$0xff]  ;;  %v16930_v33 = vpack.c.bf16 %v7303_v57, %v7302_v37 }
 0x6e8   :  { %v16928_v26 = vpack.c.bf16 %v7301_v8, %v7300_v43  ;;  %v7309_v8 = vld [vmem:[#allocation2 + $0x309] sm:$0xff]  ;;  %v7311_v57 = vld [vmem:[#allocation2 + $0x321] sm:$0xff] }
 0x6e9   :  { %17345 = vst [vmem:[#allocation9_spill] sm:$0xff] %v16930_v33  ;;  %v7308_v43 = vld [vmem:[#allocation2 + $0x301] sm:$0xff] }
 0x6ea   :  { %17344 = vst [vmem:[#allocation8_spill] sm:$0xff] %v16928_v26  ;;  %v16944_v37 = vpack.c.bf16 %v7309_v8, %v7308_v43  ;;  %v8369_v8 = vld [vmem:[#allocation2 + $0xa8] sm:$0xff]  ;;  %v8371_v43 = vld [vmem:[#allocation2 + $0xc0] sm:$0xff] }
 0x6eb   :  { %12781 = vmatmul.mubr.msk.bf16.vlgmr.msra.gmra.mrb[0].mxu1 %vm4988_vm2, %v16829_v6 }
 0x6ec   :  { %12784 = vmatprep.mubr.msk.bf16.mxu1 %vm4988_vm2, %v16831_v24  ;;  %12845 = vmatpush3.bf16.msra.mxu1 %v14147_v0  ;;  %v16867_v0 = vpack.c.bf16 %v7269_v40, %v7268_v14  ;;  %v16896_v40 = vpack.c.bf16 %v7285_v19, %v7284_v3  ;;  %v16898_v14 = vpack.c.bf16 %v7287_v12, %v7286_v2  ;;  %v7296_v19 = vld [vmem:[#allocation2 + $0x271] sm:$0xff]  ;;  %v7298_v3 = vld [vmem:[#allocation2 + $0x289] sm:$0xff] }
 0x6ed   :  { %12910 = vmatprep.subr.bf16.mxu1 %v16838_v16  ;;  %v16920_v12 = vpack.c.bf16 %v7297_v11, %v7296_v19  ;;  %v7304_v11 = vld [vmem:[#allocation2 + $0x2d1] sm:$0xff]  ;;  %v7306_v19 = vld [vmem:[#allocation2 + $0x2e9] sm:$0xff] }
 0x6f3   :  { %12785 = vmatmul.mubr.msk.bf16.gmra.mrb[4].mxu1 %vm4988_vm2, %v16843_v18 }
 0x6f4   :  { %12788 = vmatprep.mubr.msk.bf16.mxu1 %vm4988_vm2, %v16845_v36 }
 0x6fb   :  { %12789 = vmatmul.mubr.msk.bf16.gmra.mrb[8].mxu1 %vm4988_vm2, %v16851_v25 }
 0x6fc   :  { %12792 = vmatprep.mubr.msk.bf16.mxu1 %vm4988_vm2, %v16853_v62 }
 0x703   :  { %12793 = vmatmul.mubr.msk.bf16.gmra.mrb[12].mxu1 %vm4988_vm2, %v16859_v51 }
 0x704   :  { %12796 = vmatprep.mubr.msk.bf16.mxu1 %vm4988_vm2, %v16861_v45 }
 0x70b   :  { %12797 = vmatmul.mubr.msk.bf16.gmra.mrb[16].mxu1 %vm4988_vm2, %v16867_v0 }
 0x70c   :  { %12800 = vmatprep.mubr.msk.bf16.mxu1 %vm4988_vm2, %v16869_v59 }
 0x713   :  { %12801 = vmatmul.mubr.msk.bf16.gmra.mrb[20].mxu1 %vm4988_vm2, %v16875_v48 }
 0x714   :  { %12804 = vmatprep.mubr.msk.bf16.mxu1 %vm4988_vm2, %v16877_v55 }
 0x71b   :  { %12805 = vmatmul.mubr.msk.bf16.gmra.mrb[24].mxu1 %vm4988_vm2, %v16883_v10 }
 0x71c   :  { %12808 = vmatprep.mubr.msk.bf16.mxu1 %vm4988_vm2, %v16885_v44 }
 0x723   :  { %12809 = vmatmul.mubr.msk.bf16.gmra.mrb[28].mxu1 %vm4988_vm2, %v16891_v63 }
 0x724   :  { %12812 = vmatprep.mubr.msk.bf16.mxu1 %vm4988_vm2, %v7330_v42  ;;  %v7299_v42 = vld [vmem:[#allocation2 + $0x291] sm:$0xff] }
 0x725   :  { %v16922_v2 = vpack.c.bf16 %v7299_v42, %v7298_v3  ;;  %v16936_v42 = vpack.c.bf16 %v7305_v39, %v7304_v11  ;;  %v16938_v3 = vpack.c.bf16 %v7307_v4, %v7306_v19  ;;  %v7313_v39 = vld [vmem:[#allocation2 + $0x339] sm:$0xff]  ;;  %v7312_v4 = vld [vmem:[#allocation2 + $0x331] sm:$0xff]  ;;  %v8372_v19 = vld [vmem:[#allocation2 + $0xc8] sm:$0xff] }
 0x726   :  { %v16952_v11 = vpack.c.bf16 %v7313_v39, %v7312_v4  ;;  %v8429_v39 = vpack.c.bf16 %v8372_v19, %v8371_v43  ;;  %v8374_v4 = vld [vmem:[#allocation2 + $0xe0] sm:$0xff]  ;;  %v8393_v43 = vld [vmem:[#allocation2 + $0x1f8] sm:$0xff] }
 0x72b   :  { %12813 = vmatmul.mubr.msk.bf16.gmra.mrb[32].mxu1 %vm4988_vm2, %v16896_v40 }
 0x72c   :  { %12816 = vmatprep.mubr.msk.bf16.mxu1 %vm4988_vm2, %v16898_v14 }
 0x733   :  { %12817 = vmatmul.mubr.msk.bf16.gmra.mrb[36].mxu1 %vm4988_vm2, %v16904_v30 }
 0x734   :  { %12820 = vmatprep.mubr.msk.bf16.mxu1 %vm4988_vm2, %v16906_v52 }
 0x73b   :  { %12821 = vmatmul.mubr.msk.bf16.gmra.mrb[40].mxu1 %vm4988_vm2, %v16912_v5 }
 0x73c   :  { %12824 = vmatprep.mubr.msk.bf16.mxu1 %vm4988_vm2, %v16914_v41 }
 0x743   :  { %12825 = vmatmul.mubr.msk.bf16.gmra.mrb[44].mxu1 %vm4988_vm2, %v16920_v12 }
 0x744   :  { %12828 = vmatprep.mubr.msk.bf16.mxu1 %vm4988_vm2, %v16922_v2 }
 0x74b   :  { %12829 = vmatmul.mubr.msk.bf16.gmra.mrb[48].mxu1 %vm4988_vm2, %v16928_v26 }
 0x74c   :  { %12832 = vmatprep.mubr.msk.bf16.mxu1 %vm4988_vm2, %v16930_v33  ;;  %v7310_v33 = vld [vmem:[#allocation2 + $0x319] sm:$0xff] }
 0x74d   :  { %v16946_v26 = vpack.c.bf16 %v7311_v57, %v7310_v33  ;;  %v14149_v33 = vld [vmem:[%s17313_s3 + $0x38] sm:$0xff]  }
 0x753   :  { %12833 = vmatmul.mubr.msk.bf16.gmra.mrb[52].mxu1 %vm4988_vm2, %v16936_v42 }
 0x754   :  { %12836 = vmatprep.mubr.msk.bf16.mxu1 %vm4988_vm2, %v16938_v3 }
 0x75b   :  { %12837 = vmatmul.mubr.msk.bf16.gmra.mrb[56].mxu1 %vm4988_vm2, %v16944_v37 }
 0x75c   :  { %12840 = vmatprep.mubr.msk.bf16.mxu1 %vm4988_vm2, %v16946_v26 }
 0x763   :  { %12841 = vmatmul.mubr.msk.bf16.gmra.mrb[60].mxu1 %vm4988_vm2, %v16952_v11 }
 0x764   :  { %12846 = vmatprep.mubr.msk.bf16.mxu1 %vm4988_vm2, %v16628_v53  ;;  %v7834_v53 = vld [vmem:[#allocation2 + $0x182] sm:$0xff] }
 0x76b   :  { %12847 = vmatmul.mubr.msk.bf16.vlgmr.msra.gmra.mrb[0].mxu1 %vm4988_vm2, %v16630_v58  ;;  %v7835_v58 = vld [vmem:[#allocation2 + $0x18a] sm:$0xff] }
 0x76c   :  { %12850 = vmatprep.mubr.msk.bf16.mxu1 %vm4988_vm2, %v16643_v31  ;;  %12911 = vmatpush3.bf16.msra.mxu1 %v16838_v16  ;;  %v16990_v31 = vpack.c.bf16 %v7835_v58, %v7834_v53  ;;  %v8370_v16 = vld [vmem:[#allocation2 + $0xb0] sm:$0xff]  ;;  %v8373_v53 = vld [vmem:[#allocation2 + $0xd8] sm:$0xff] }
 0x76d   :  { %12976 = vmatprep.subr.bf16.mxu1 %v14149_v33  ;;  %v8428_v57 = vpack.c.bf16 %v8370_v16, %v8369_v8  ;;  %v8430_v58 = vpack.c.bf16 %v8374_v4, %v8373_v53  ;;  %v8391_v16 = vld [vmem:[#allocation2 + $0x1e0] sm:$0xff]  ;;  %v8395_v4 = vld [vmem:[#allocation2 + $0x210] sm:$0xff]  ;;  %v8400_v53 = vld [vmem:[#allocation2 + $0x248] sm:$0xff] }
 0x76e   :  { %v8394_v8 = vld [vmem:[#allocation2 + $0x200] sm:$0xff] }
 0x773   :  { %12851 = vmatmul.mubr.msk.bf16.gmra.mrb[4].mxu1 %vm4988_vm2, %v16645_v29  ;;  %v17346_v29 = vld [vmem:[#allocation4_spill] sm:$0xff] }
 0x774   :  { %12854 = vmatprep.mubr.msk.bf16.mxu1 %vm4988_vm2, %v16651_v9  ;;  %v17347_v9 = vld [vmem:[#allocation5_spill] sm:$0xff] }
 0x77b   :  { %12855 = vmatmul.mubr.msk.bf16.gmra.mrb[8].mxu1 %vm4988_vm2, %v16653_v20  ;;  %v17348_v20 = vld [vmem:[#allocation6_spill] sm:$0xff] }
 0x77c   :  { %12858 = vmatprep.mubr.msk.bf16.mxu1 %vm4988_vm2, %v16659_v28  ;;  %v17349_v28 = vld [vmem:[#allocation7_spill] sm:$0xff] }
 0x783   :  { %12859 = vmatmul.mubr.msk.bf16.gmra.mrb[12].mxu1 %vm4988_vm2, %v16661_v50  ;;  %v7866_v50 = vld [vmem:[#allocation2 + $0x332] sm:$0xff] }
 0x784   :  { %12862 = vmatprep.mubr.msk.bf16.mxu1 %vm4988_vm2, %v16667_v7  ;;  %v7867_v7 = vld [vmem:[#allocation2 + $0x33a] sm:$0xff] }
 0x78b   :  { %12863 = vmatmul.mubr.msk.bf16.gmra.mrb[16].mxu1 %vm4988_vm2, %v16669_v34  ;;  %v8360_v34 = vld [vmem:[#allocation2 + $0x38] sm:$0xff] }
 0x78c   :  { %12866 = vmatprep.mubr.msk.bf16.mxu1 %vm4988_vm2, %v16675_v54  ;;  %v17024_v54 = vpack.c.bf16 %v7867_v7, %v7866_v50  ;;  %v8377_v50 = vld [vmem:[#allocation2 + $0x108] sm:$0xff] }
 0x793   :  { %12867 = vmatmul.mubr.msk.bf16.gmra.mrb[20].mxu1 %vm4988_vm2, %v16677_v15  ;;  %v8359_v15 = vld [vmem:[#allocation2 + $0x30] sm:$0xff] }
 0x794   :  { %12870 = vmatprep.mubr.msk.bf16.mxu1 %vm4988_vm2, %v16683_v46  ;;  %v8423_v46 = vpack.c.bf16 %v8360_v34, %v8359_v15  ;;  %v8379_v34 = vld [vmem:[#allocation2 + $0x120] sm:$0xff] }
 0x79b   :  { %12871 = vmatmul.mubr.msk.bf16.gmra.mrb[24].mxu1 %vm4988_vm2, %v16685_v61  ;;  %v8362_v61 = vld [vmem:[#allocation2 + $0x50] sm:$0xff] }
 0x79c   :  { %12874 = vmatprep.mubr.msk.bf16.mxu1 %vm4988_vm2, %v16691_v22  ;;  %v8364_v22 = vld [vmem:[#allocation2 + $0x68] sm:$0xff] }
 0x7a3   :  { %12875 = vmatmul.mubr.msk.bf16.gmra.mrb[28].mxu1 %vm4988_vm2, %v16990_v31 }
 0x7a4   :  { %12878 = vmatprep.mubr.msk.bf16.mxu1 %vm4988_vm2, %v16696_v35  ;;  %v8361_v35 = vld [vmem:[#allocation2 + $0x48] sm:$0xff] }
 0x7ab   :  { %12879 = vmatmul.mubr.msk.bf16.gmra.mrb[32].mxu1 %vm4988_vm2, %v16698_v47  ;;  %v8424_v47 = vpack.c.bf16 %v8362_v61, %v8361_v35  ;;  %v8384_v61 = vld [vmem:[#allocation2 + $0x158] sm:$0xff] }
 0x7ac   :  { %12882 = vmatprep.mubr.msk.bf16.mxu1 %vm4988_vm2, %v16704_v13  ;;  %v8363_v13 = vld [vmem:[#allocation2 + $0x60] sm:$0xff] }
 0x7b3   :  { %12883 = vmatmul.mubr.msk.bf16.gmra.mrb[36].mxu1 %vm4988_vm2, %v16706_v23  ;;  %v8425_v23 = vpack.c.bf16 %v8364_v22, %v8363_v13  ;;  %v8381_v22 = vld [vmem:[#allocation2 + $0x138] sm:$0xff] }
 0x7b4   :  { %12886 = vmatprep.mubr.msk.bf16.mxu1 %vm4988_vm2, %v16712_v21  ;;  %v17033_v21 = vld [vmem:[%s17313_s3 + $0x40] sm:$0xff]  }
 0x7bb   :  { %12887 = vmatmul.mubr.msk.bf16.gmra.mrb[40].mxu1 %vm4988_vm2, %v16714_v49  ;;  %v8366_v49 = vld [vmem:[#allocation2 + $0x80] sm:$0xff] }
 0x7bc   :  { %12890 = vmatprep.mubr.msk.bf16.mxu1 %vm4988_vm2, %v17346_v29  ;;  %v8375_v29 = vld [vmem:[#allocation2 + $0xf0] sm:$0xff] }
 0x7c3   :  { %12891 = vmatmul.mubr.msk.bf16.gmra.mrb[44].mxu1 %vm4988_vm2, %v17347_v9 }
 0x7c4   :  { %12894 = vmatprep.mubr.msk.bf16.mxu1 %vm4988_vm2, %v17348_v20  ;;  %v8378_v20 = vld [vmem:[#allocation2 + $0x110] sm:$0xff] }
 0x7c5   :  { %v8432_v7 = vpack.c.bf16 %v8378_v20, %v8377_v50  ;;  %v8404_v50 = vld [vmem:[#allocation2 + $0x278] sm:$0xff] }
 0x7cb   :  { %12895 = vmatmul.mubr.msk.bf16.gmra.mrb[48].mxu1 %vm4988_vm2, %v17349_v28  ;;  %v8380_v28 = vld [vmem:[#allocation2 + $0x128] sm:$0xff] }
 0x7cc   :  { %12898 = vmatprep.mubr.msk.bf16.mxu1 %vm4988_vm2, %v16736_v56  ;;  %v8368_v56 = vld [vmem:[#allocation2 + $0x98] sm:$0xff]  ;;  %v8433_v15 = vpack.c.bf16 %v8380_v28, %v8379_v34  ;;  %v8402_v28 = vld [vmem:[#allocation2 + $0x260] sm:$0xff] }
 0x7d3   :  { %12899 = vmatmul.mubr.msk.bf16.gmra.mrb[52].mxu1 %vm4988_vm2, %v16738_v1  ;;  %v8365_v1 = vld [vmem:[#allocation2 + $0x78] sm:$0xff] }
 0x7d4   :  { %12902 = vmatprep.mubr.msk.bf16.mxu1 %vm4988_vm2, %v16744_v60  ;;  %v8426_v60 = vpack.c.bf16 %v8366_v49, %v8365_v1  ;;  %v8385_v49 = vld [vmem:[#allocation2 + $0x168] sm:$0xff]  ;;  %v8389_v1 = vld [vmem:[#allocation2 + $0x198] sm:$0xff] }
 0x7db   :  { %12903 = vmatmul.mubr.msk.bf16.gmra.mrb[56].mxu1 %vm4988_vm2, %v16746_v38  ;;  %v8367_v38 = vld [vmem:[#allocation2 + $0x90] sm:$0xff] }
 0x7dc   :  { %12906 = vmatprep.mubr.msk.bf16.mxu1 %vm4988_vm2, %v16752_v32  ;;  %v8427_v32 = vpack.c.bf16 %v8368_v56, %v8367_v38 }
 0x7e3   :  { %12907 = vmatmul.mubr.msk.bf16.gmra.mrb[60].mxu1 %vm4988_vm2, %v17024_v54 }
 0x7e4   :  { %12912 = vmatprep.mubr.msk.bf16.mxu1 %vm4988_vm2, %v8423_v46  ;;  %v8382_v46 = vld [vmem:[#allocation2 + $0x140] sm:$0xff] }
 0x7e5   :  { %v8434_v35 = vpack.c.bf16 %v8382_v46, %v8381_v22  ;;  %v8408_v22 = vld [vmem:[#allocation2 + $0x2a8] sm:$0xff] }
 0x7eb   :  { %12913 = vmatmul.mubr.msk.bf16.vlgmr.msra.gmra.mrb[0].mxu1 %vm4988_vm2, %v8424_v47  ;;  %v8383_v47 = vld [vmem:[#allocation2 + $0x150] sm:$0xff] }
 0x7ec   :  { %12916 = vmatprep.mubr.msk.bf16.mxu1 %vm4988_vm2, %v8425_v23  ;;  %12977 = vmatpush3.bf16.msra.mxu1 %v14149_v33  ;;  %v8376_v33 = vld [vmem:[#allocation2 + $0xf8] sm:$0xff]  ;;  %v8435_v13 = vpack.c.bf16 %v8384_v61, %v8383_v47  ;;  %v8386_v23 = vld [vmem:[#allocation2 + $0x170] sm:$0xff] }
 0x7ed   :  { %13042 = vmatprep.subr.bf16.mxu1 %v17033_v21  ;;  %v8431_v9 = vpack.c.bf16 %v8376_v33, %v8375_v29  ;;  %v8436_v56 = vpack.c.bf16 %v8386_v23, %v8385_v49  ;;  %v8406_v61 = vld [vmem:[#allocation2 + $0x290] sm:$0xff]  ;;  %v8410_v49 = vld [vmem:[#allocation2 + $0x2c0] sm:$0xff] }
 0x7f3   :  { %12917 = vmatmul.mubr.msk.bf16.gmra.mrb[4].mxu1 %vm4988_vm2, %v8426_v60  ;;  %v8390_v60 = vld [vmem:[#allocation2 + $0x1a0] sm:$0xff] }
 0x7f4   :  { %12920 = vmatprep.mubr.msk.bf16.mxu1 %vm4988_vm2, %v8427_v32  ;;  %v8438_v38 = vpack.c.bf16 %v8390_v60, %v8389_v1  ;;  %v8392_v32 = vld [vmem:[#allocation2 + $0x1e8] sm:$0xff]  ;;  %v8409_v1 = vld [vmem:[#allocation2 + $0x2b8] sm:$0xff] }
 0x7f5   :  { %v8439_v19 = vpack.c.bf16 %v8392_v32, %v8391_v16  ;;  %v8448_v60 = vpack.c.bf16 %v8410_v49, %v8409_v1  ;;  %v8414_v16 = vld [vmem:[#allocation2 + $0x2f0] sm:$0xff]  ;;  %v9492_v49 = vld [vmem:[#allocation2 + $0x15a] sm:$0xff] }
 0x7fb   :  { %12921 = vmatmul.mubr.msk.bf16.gmra.mrb[8].mxu1 %vm4988_vm2, %v8428_v57  ;;  %v8396_v57 = vld [vmem:[#allocation2 + $0x218] sm:$0xff] }
 0x7fc   :  { %12924 = vmatprep.mubr.msk.bf16.mxu1 %vm4988_vm2, %v8429_v39  ;;  %v8440_v39 = vpack.c.bf16 %v8394_v8, %v8393_v43  ;;  %v8441_v33 = vpack.c.bf16 %v8396_v57, %v8395_v4  ;;  %v8413_v8 = vld [vmem:[#allocation2 + $0x2e8] sm:$0xff]  ;;  %v8415_v43 = vld [vmem:[#allocation2 + $0x300] sm:$0xff] }
 0x7fd   :  { %v8450_v57 = vpack.c.bf16 %v8414_v16, %v8413_v8  ;;  %v8418_v4 = vld [vmem:[#allocation2 + $0x320] sm:$0xff] }
 0x7fe   :  { %v9497_v16 = vld [vmem:[#allocation2 + $0x19a] sm:$0xff] }
 0x803   :  { %12925 = vmatmul.mubr.msk.bf16.gmra.mrb[12].mxu1 %vm4988_vm2, %v8430_v58  ;;  %v8397_v58 = vld [vmem:[#allocation2 + $0x228] sm:$0xff] }
 0x804   :  { %12928 = vmatprep.mubr.msk.bf16.mxu1 %vm4988_vm2, %v8431_v9  ;;  %v8399_v9 = vld [vmem:[#allocation2 + $0x240] sm:$0xff] }
 0x805   :  { %v8443_v20 = vpack.c.bf16 %v8400_v53, %v8399_v9  ;;  %v8421_v53 = vld [vmem:[#allocation2 + $0x348] sm:$0xff] }
 0x806   :  { %v9482_v9 = vld [vmem:[#allocation2 + $0xe2] sm:$0xff] }
 0x80b   :  { %12929 = vmatmul.mubr.msk.bf16.gmra.mrb[16].mxu1 %vm4988_vm2, %v8432_v7  ;;  %v8401_v7 = vld [vmem:[#allocation2 + $0x258] sm:$0xff] }
 0x80c   :  { %12932 = vmatprep.mubr.msk.bf16.mxu1 %vm4988_vm2, %v8433_v15  ;;  %v8444_v34 = vpack.c.bf16 %v8402_v28, %v8401_v7  ;;  %v8403_v15 = vld [vmem:[#allocation2 + $0x270] sm:$0xff]  ;;  %v9484_v28 = vld [vmem:[#allocation2 + $0xfa] sm:$0xff] }
 0x80d   :  { %v8445_v46 = vpack.c.bf16 %v8404_v50, %v8403_v15  ;;  %v9486_v15 = vld [vmem:[#allocation2 + $0x112] sm:$0xff] }
 0x813   :  { %12933 = vmatmul.mubr.msk.bf16.gmra.mrb[20].mxu1 %vm4988_vm2, %v8434_v35  ;;  %v8405_v35 = vld [vmem:[#allocation2 + $0x288] sm:$0xff] }
 0x814   :  { %12936 = vmatprep.mubr.msk.bf16.mxu1 %vm4988_vm2, %v8435_v13  ;;  %v8446_v47 = vpack.c.bf16 %v8406_v61, %v8405_v35  ;;  %v8407_v13 = vld [vmem:[#allocation2 + $0x2a0] sm:$0xff]  ;;  %v9488_v61 = vld [vmem:[#allocation2 + $0x12a] sm:$0xff] }
 0x815   :  { %v8447_v23 = vpack.c.bf16 %v8408_v22, %v8407_v13  ;;  %v9490_v13 = vld [vmem:[#allocation2 + $0x142] sm:$0xff] }
 0x81b   :  { %12937 = vmatmul.mubr.msk.bf16.gmra.mrb[24].mxu1 %vm4988_vm2, %v8436_v56  ;;  %v8412_v56 = vld [vmem:[#allocation2 + $0x2d8] sm:$0xff] }
 0x81c   :  { %12940 = vmatprep.mubr.msk.bf16.mxu1 %vm4988_vm2, %v16790_v27  ;;  %v8398_v27 = vld [vmem:[#allocation2 + $0x230] sm:$0xff] }
 0x81d   :  { %v8442_v29 = vpack.c.bf16 %v8398_v27, %v8397_v58  ;;  %v8422_v58 = vld [vmem:[#allocation2 + $0x350] sm:$0xff] }
 0x823   :  { %12941 = vmatmul.mubr.msk.bf16.gmra.mrb[28].mxu1 %vm4988_vm2, %v8438_v38  ;;  %v8411_v38 = vld [vmem:[#allocation2 + $0x2d0] sm:$0xff] }
 0x824   :  { %12944 = vmatprep.mubr.msk.bf16.mxu1 %vm4988_vm2, %v8439_v19  ;;  %v8449_v32 = vpack.c.bf16 %v8412_v56, %v8411_v38  ;;  %v8416_v19 = vld [vmem:[#allocation2 + $0x308] sm:$0xff]  ;;  %v9494_v38 = vld [vmem:[#allocation2 + $0x172] sm:$0xff] }
 0x82b   :  { %12945 = vmatmul.mubr.msk.bf16.gmra.mrb[32].mxu1 %vm4988_vm2, %v8440_v39  ;;  %v8451_v39 = vpack.c.bf16 %v8416_v19, %v8415_v43  ;;  %v9498_v19 = vld [vmem:[#allocation2 + $0x1a2] sm:$0xff]  ;;  %v9500_v43 = vld [vmem:[#allocation2 + $0x1ea] sm:$0xff] }
 0x82c   :  { %12948 = vmatprep.mubr.msk.bf16.mxu1 %vm4988_vm2, %v8441_v33  ;;  %v8417_v33 = vld [vmem:[#allocation2 + $0x318] sm:$0xff]  ;;  %v9546_v8 = vpack.c.bf16 %v9498_v19, %v9497_v16 }
 0x82d   :  { %v8452_v27 = vpack.c.bf16 %v8418_v4, %v8417_v33  ;;  %v9501_v4 = vld [vmem:[#allocation2 + $0x1fa] sm:$0xff]  ;;  %v9502_v33 = vld [vmem:[#allocation2 + $0x202] sm:$0xff] }
 0x833   :  { %12949 = vmatmul.mubr.msk.bf16.gmra.mrb[36].mxu1 %vm4988_vm2, %v8442_v29  ;;  %v8454_v29 = vpack.c.bf16 %v8422_v58, %v8421_v53  ;;  %v9504_v53 = vld [vmem:[#allocation2 + $0x21a] sm:$0xff]  ;;  %v9548_v58 = vpack.c.bf16 %v9502_v33, %v9501_v4 }
 0x834   :  { %12952 = vmatprep.mubr.msk.bf16.mxu1 %vm4988_vm2, %v8443_v20  ;;  %v9483_v20 = vld [vmem:[#allocation2 + $0xf2] sm:$0xff] }
 0x835   :  { %v9539_v7 = vpack.c.bf16 %v9484_v28, %v9483_v20  ;;  %v9529_v28 = vld [vmem:[#allocation2 + $0x34a] sm:$0xff] }
 0x83b   :  { %12953 = vmatmul.mubr.msk.bf16.gmra.mrb[40].mxu1 %vm4988_vm2, %v8444_v34  ;;  %v9485_v34 = vld [vmem:[#allocation2 + $0x10a] sm:$0xff] }
 0x83c   :  { %12956 = vmatprep.mubr.msk.bf16.mxu1 %vm4988_vm2, %v8445_v46  ;;  %v9487_v46 = vld [vmem:[#allocation2 + $0x122] sm:$0xff]  ;;  %v9540_v22 = vpack.c.bf16 %v9486_v15, %v9485_v34  ;;  %v17168_v34 = vld [vmem:[%s17315_s4] ss:$0 sm:$0xff] }
 0x83d   :  { %v9541_v35 = vpack.c.bf16 %v9488_v61, %v9487_v46 }
 0x843   :  { %12957 = vmatmul.mubr.msk.bf16.gmra.mrb[44].mxu1 %vm4988_vm2, %v8446_v47  ;;  %v9489_v47 = vld [vmem:[#allocation2 + $0x13a] sm:$0xff] }
 0x844   :  { %12960 = vmatprep.mubr.msk.bf16.mxu1 %vm4988_vm2, %v8447_v23  ;;  %v9491_v23 = vld [vmem:[#allocation2 + $0x152] sm:$0xff]  ;;  %v9542_v56 = vpack.c.bf16 %v9490_v13, %v9489_v47 }
 0x845   :  { %v9543_v1 = vpack.c.bf16 %v9492_v49, %v9491_v23 }
 0x84b   :  { %12961 = vmatmul.mubr.msk.bf16.gmra.mrb[48].mxu1 %vm4988_vm2, %v8448_v60  ;;  %v9493_v60 = vld [vmem:[#allocation2 + $0x16a] sm:$0xff] }
 0x84c   :  { %12964 = vmatprep.mubr.msk.bf16.mxu1 %vm4988_vm2, %v8449_v32  ;;  %v9544_v32 = vpack.c.bf16 %v9494_v38, %v9493_v60 }
 0x853   :  { %12965 = vmatmul.mubr.msk.bf16.gmra.mrb[52].mxu1 %vm4988_vm2, %v8450_v57  ;;  %v9499_v57 = vld [vmem:[#allocation2 + $0x1e2] sm:$0xff] }
 0x854   :  { %12968 = vmatprep.mubr.msk.bf16.mxu1 %vm4988_vm2, %v8451_v39  ;;  %v9547_v39 = vpack.c.bf16 %v9500_v43, %v9499_v57 }
 0x85b   :  { %12969 = vmatmul.mubr.msk.bf16.gmra.mrb[56].mxu1 %vm4988_vm2, %v8452_v27  ;;  %v9503_v27 = vld [vmem:[#allocation2 + $0x212] sm:$0xff] }
 0x85c   :  { %12972 = vmatprep.mubr.msk.bf16.mxu1 %vm4988_vm2, %v16824_v17  ;;  %v8943_v17 = vld [vmem:[#allocation2 + $0x199] sm:$0xff] }
 0x863   :  { %12973 = vmatmul.mubr.msk.bf16.gmra.mrb[60].mxu1 %vm4988_vm2, %v8454_v29  ;;  %v9549_v29 = vpack.c.bf16 %v9504_v53, %v9503_v27 }
 0x864   :  { %12978 = vmatprep.mubr.msk.bf16.mxu1 %vm4988_vm2, %v16829_v6  ;;  %v8944_v6 = vld [vmem:[#allocation2 + $0x1a1] sm:$0xff] }
 0x86b   :  { %12979 = vmatmul.mubr.msk.bf16.vlgmr.msra.gmra.mrb[0].mxu1 %vm4988_vm2, %v16831_v24  ;;  %v8992_v24 = vpack.c.bf16 %v8944_v6, %v8943_v17  ;;  %v9506_v17 = vld [vmem:[#allocation2 + $0x232] sm:$0xff]  ;;  %v9507_v6 = vld [vmem:[#allocation2 + $0x242] sm:$0xff] }
 0x86c   :  { %12982 = vmatprep.mubr.msk.bf16.mxu1 %vm4988_vm2, %v16843_v18  ;;  %13043 = vmatpush3.bf16.msra.mxu1 %v17033_v21  ;;  %v17350_v18 = vld [vmem:[#allocation8_spill] sm:$0xff] }
 0x86d   :  { %v9481_v21 = vld [vmem:[#allocation2 + $0xda] sm:$0xff] }
 0x86e   :  { %v9538_v50 = vpack.c.bf16 %v9482_v9, %v9481_v21  ;;  %v9525_v21 = vld [vmem:[#allocation2 + $0x31a] sm:$0xff]  ;;  %v9526_v9 = vld [vmem:[#allocation2 + $0x322] sm:$0xff] }
 0x86f   :  { %v9560_v20 = vpack.c.bf16 %v9526_v9, %v9525_v21 }
 0x873   :  { %12983 = vmatmul.mubr.msk.bf16.gmra.mrb[4].mxu1 %vm4988_vm2, %v16845_v36  ;;  %v17351_v36 = vld [vmem:[#allocation9_spill] sm:$0xff] }
 0x874   :  { %12986 = vmatprep.mubr.msk.bf16.mxu1 %vm4988_vm2, %v16851_v25  ;;  %v8975_v25 = vld [vmem:[#allocation2 + $0x349] sm:$0xff] }
 0x87b   :  { %12987 = vmatmul.mubr.msk.bf16.gmra.mrb[8].mxu1 %vm4988_vm2, %v16853_v62  ;;  %v8976_v62 = vld [vmem:[#allocation2 + $0x351] sm:$0xff] }
 0x87c   :  { %12990 = vmatprep.mubr.msk.bf16.mxu1 %vm4988_vm2, %v16859_v51  ;;  %v9008_v51 = vpack.c.bf16 %v8976_v62, %v8975_v25  ;;  %v9509_v25 = vld [vmem:[#allocation2 + $0x25a] sm:$0xff]  ;;  %v9510_v62 = vld [vmem:[#allocation2 + $0x262] sm:$0xff] }
 0x883   :  { %12991 = vmatmul.mubr.msk.bf16.gmra.mrb[12].mxu1 %vm4988_vm2, %v16861_v45  ;;  %v9467_v45 = vld [vmem:[#allocation2 + $0x32] sm:$0xff] }
 0x884   :  { %12994 = vmatprep.mubr.msk.bf16.mxu1 %vm4988_vm2, %v16867_v0  ;;  %v9468_v0 = vld [vmem:[#allocation2 + $0x3a] sm:$0xff] }
 0x88b   :  { %12995 = vmatmul.mubr.msk.bf16.gmra.mrb[16].mxu1 %vm4988_vm2, %v16869_v59  ;;  %v9531_v59 = vpack.c.bf16 %v9468_v0, %v9467_v45  ;;  %v9512_v45 = vld [vmem:[#allocation2 + $0x27a] sm:$0xff]  ;;  %v9552_v0 = vpack.c.bf16 %v9510_v62, %v9509_v25 }
 0x88c   :  { %12998 = vmatprep.mubr.msk.bf16.mxu1 %vm4988_vm2, %v16875_v48  ;;  %v9469_v48 = vld [vmem:[#allocation2 + $0x4a] sm:$0xff] }
 0x893   :  { %12999 = vmatmul.mubr.msk.bf16.gmra.mrb[20].mxu1 %vm4988_vm2, %v16877_v55  ;;  %v9470_v55 = vld [vmem:[#allocation2 + $0x52] sm:$0xff] }
 0x894   :  { %13002 = vmatprep.mubr.msk.bf16.mxu1 %vm4988_vm2, %v16883_v10  ;;  %v9471_v10 = vld [vmem:[#allocation2 + $0x62] sm:$0xff] }
 0x89b   :  { %13003 = vmatmul.mubr.msk.bf16.gmra.mrb[24].mxu1 %vm4988_vm2, %v16885_v44  ;;  %v9472_v44 = vld [vmem:[#allocation2 + $0x6a] sm:$0xff] }
 0x89c   :  { %13006 = vmatprep.mubr.msk.bf16.mxu1 %vm4988_vm2, %v16891_v63  ;;  %v9532_v63 = vpack.c.bf16 %v9470_v55, %v9469_v48  ;;  %v9513_v48 = vld [vmem:[#allocation2 + $0x28a] sm:$0xff]  ;;  %v9514_v55 = vld [vmem:[#allocation2 + $0x292] sm:$0xff] }
 0x8a3   :  { %13007 = vmatmul.mubr.msk.bf16.gmra.mrb[28].mxu1 %vm4988_vm2, %v8992_v24  ;;  %v9508_v24 = vld [vmem:[#allocation2 + $0x24a] sm:$0xff] }
 0x8a4   :  { %13010 = vmatprep.mubr.msk.bf16.mxu1 %vm4988_vm2, %v16896_v40  ;;  %v9533_v40 = vpack.c.bf16 %v9472_v44, %v9471_v10  ;;  %v9515_v10 = vld [vmem:[#allocation2 + $0x2a2] sm:$0xff]  ;;  %v9516_v44 = vld [vmem:[#allocation2 + $0x2aa] sm:$0xff] }
 0x8ab   :  { %13011 = vmatmul.mubr.msk.bf16.gmra.mrb[32].mxu1 %vm4988_vm2, %v16898_v14  ;;  %v9473_v14 = vld [vmem:[#allocation2 + $0x7a] sm:$0xff] }
 0x8ac   :  { %13014 = vmatprep.mubr.msk.bf16.mxu1 %vm4988_vm2, %v16904_v30  ;;  %v9474_v30 = vld [vmem:[#allocation2 + $0x82] sm:$0xff] }
 0x8b3   :  { %13015 = vmatmul.mubr.msk.bf16.gmra.mrb[36].mxu1 %vm4988_vm2, %v16906_v52  ;;  %v9475_v52 = vld [vmem:[#allocation2 + $0x92] sm:$0xff] }
 0x8b4   :  { %13018 = vmatprep.mubr.msk.bf16.mxu1 %vm4988_vm2, %v16912_v5  ;;  %v9476_v5 = vld [vmem:[#allocation2 + $0x9a] sm:$0xff] }
 0x8bb   :  { %13019 = vmatmul.mubr.msk.bf16.gmra.mrb[40].mxu1 %vm4988_vm2, %v16914_v41  ;;  %v9534_v41 = vpack.c.bf16 %v9474_v30, %v9473_v14  ;;  %v9517_v14 = vld [vmem:[#allocation2 + $0x2ba] sm:$0xff]  ;;  %v9518_v30 = vld [vmem:[#allocation2 + $0x2c2] sm:$0xff] }
 0x8bc   :  { %13022 = vmatprep.mubr.msk.bf16.mxu1 %vm4988_vm2, %v16920_v12  ;;  %v9535_v12 = vpack.c.bf16 %v9476_v5, %v9475_v52  ;;  %v9519_v52 = vld [vmem:[#allocation2 + $0x2d2] sm:$0xff]  ;;  %v9520_v5 = vld [vmem:[#allocation2 + $0x2da] sm:$0xff] }
 0x8c3   :  { %13023 = vmatmul.mubr.msk.bf16.gmra.mrb[44].mxu1 %vm4988_vm2, %v16922_v2  ;;  %v9477_v2 = vld [vmem:[#allocation2 + $0xaa] sm:$0xff] }
 0x8c4   :  { %13026 = vmatprep.mubr.msk.bf16.mxu1 %vm4988_vm2, %v17350_v18 }
 0x8cb   :  { %13027 = vmatmul.mubr.msk.bf16.gmra.mrb[48].mxu1 %vm4988_vm2, %v17351_v36  ;;  %v9551_v36 = vpack.c.bf16 %v9508_v24, %v9507_v6 }
 0x8cc   :  { %13030 = vmatprep.mubr.msk.bf16.mxu1 %vm4988_vm2, %v16936_v42  ;;  %v9479_v42 = vld [vmem:[#allocation2 + $0xc2] sm:$0xff] }
 0x8d3   :  { %13031 = vmatmul.mubr.msk.bf16.gmra.mrb[52].mxu1 %vm4988_vm2, %v16938_v3  ;;  %v9480_v3 = vld [vmem:[#allocation2 + $0xca] sm:$0xff] }
 0x8d4   :  { %13034 = vmatprep.mubr.msk.bf16.mxu1 %vm4988_vm2, %v16944_v37 }
 0x8db   :  { %13035 = vmatmul.mubr.msk.bf16.gmra.mrb[56].mxu1 %vm4988_vm2, %v16946_v26  ;;  %v9478_v26 = vld [vmem:[#allocation2 + $0xb2] sm:$0xff] }
 0x8dc   :  { %13038 = vmatprep.mubr.msk.bf16.mxu1 %vm4988_vm2, %v16952_v11  ;;  %v9536_v37 = vpack.c.bf16 %v9478_v26, %v9477_v2  ;;  %v9537_v11 = vpack.c.bf16 %v9480_v3, %v9479_v42  ;;  %v9521_v2 = vld [vmem:[#allocation2 + $0x2ea] sm:$0xff]  ;;  %v9522_v26 = vld [vmem:[#allocation2 + $0x2f2] sm:$0xff]  ;;  %v9523_v42 = vld [vmem:[#allocation2 + $0x302] sm:$0xff] }
 0x8dd   :  { %v9524_v3 = vld [vmem:[#allocation2 + $0x30a] sm:$0xff] }
 0x8e3   :  { %13039 = vmatmul.mubr.msk.bf16.gmra.mrb[60].mxu1 %vm4988_vm2, %v9008_v51  ;;  %v9511_v51 = vld [vmem:[#allocation2 + $0x272] sm:$0xff] }
 0x8e4   :  { %13044 = vmatprep.mubr.msk.bf16.mxu1 %vm4988_vm2, %v9531_v59  ;;  %v9553_v59 = vpack.c.bf16 %v9512_v45, %v9511_v51 }
 0x8eb   :  { %13045 = vmatmul.mubr.msk.bf16.vlgmr.msra.gmra.mrb[0].mxu1 %vm4988_vm2, %v9532_v63  ;;  %v9554_v63 = vpack.c.bf16 %v9514_v55, %v9513_v48 }
 0x8ec   :  { %13048 = vmatprep.mubr.msk.bf16.mxu1 %vm4988_vm2, %v9533_v40  ;;  %v9555_v40 = vpack.c.bf16 %v9516_v44, %v9515_v10 }
 0x8f3   :  { %13049 = vmatmul.mubr.msk.bf16.gmra.mrb[4].mxu1 %vm4988_vm2, %v9534_v41  ;;  %v9556_v41 = vpack.c.bf16 %v9518_v30, %v9517_v14 }
 0x8f4   :  { %13052 = vmatprep.mubr.msk.bf16.mxu1 %vm4988_vm2, %v9535_v12  ;;  %v9557_v12 = vpack.c.bf16 %v9520_v5, %v9519_v52 }
 0x8fb   :  { %13053 = vmatmul.mubr.msk.bf16.gmra.mrb[8].mxu1 %vm4988_vm2, %v9536_v37  ;;  %v9558_v37 = vpack.c.bf16 %v9522_v26, %v9521_v2 }
 0x8fc   :  { %13056 = vmatprep.mubr.msk.bf16.mxu1 %vm4988_vm2, %v9537_v11  ;;  %v9559_v11 = vpack.c.bf16 %v9524_v3, %v9523_v42 }
 0x903   :  { %13057 = vmatmul.mubr.msk.bf16.gmra.mrb[12].mxu1 %vm4988_vm2, %v9538_v50  ;;  %v9530_v50 = vld [vmem:[#allocation2 + $0x352] sm:$0xff] }
 0x904   :  { %13060 = vmatprep.mubr.msk.bf16.mxu1 %vm4988_vm2, %v9539_v7  ;;  %v9562_v7 = vpack.c.bf16 %v9530_v50, %v9529_v28 }
 0x90b   :  { %13061 = vmatmul.mubr.msk.bf16.gmra.mrb[16].mxu1 %vm4988_vm2, %v9540_v22 }
 0x90c   :  { %13064 = vmatprep.mubr.msk.bf16.mxu1 %vm4988_vm2, %v9541_v35 }
 0x913   :  { %13065 = vmatmul.mubr.msk.bf16.gmra.mrb[20].mxu1 %vm4988_vm2, %v9542_v56 }
 0x914   :  { %13068 = vmatprep.mubr.msk.bf16.mxu1 %vm4988_vm2, %v9543_v1 }
 0x91b   :  { %13069 = vmatmul.mubr.msk.bf16.gmra.mrb[24].mxu1 %vm4988_vm2, %v9544_v32 }
 0x91c   :  { %13072 = vmatprep.mubr.msk.bf16.mxu1 %vm4988_vm2, %v16990_v31  ;;  %v9505_v31 = vld [vmem:[#allocation2 + $0x22a] sm:$0xff] }
 0x91d   :  { %v9550_v18 = vpack.c.bf16 %v9506_v17, %v9505_v31 }
 0x923   :  { %13073 = vmatmul.mubr.msk.bf16.gmra.mrb[28].mxu1 %vm4988_vm2, %v9546_v8 }
 0x924   :  { %13076 = vmatprep.mubr.msk.bf16.mxu1 %vm4988_vm2, %v9547_v39 }
 0x92b   :  { %13077 = vmatmul.mubr.msk.bf16.gmra.mrb[32].mxu1 %vm4988_vm2, %v9548_v58 }
 0x92c   :  { %13080 = vmatprep.mubr.msk.bf16.mxu1 %vm4988_vm2, %v9549_v29 }
 0x933   :  { %13081 = vmatmul.mubr.msk.bf16.gmra.mrb[36].mxu1 %vm4988_vm2, %v9550_v18 }
 0x934   :  { %13084 = vmatprep.mubr.msk.bf16.mxu1 %vm4988_vm2, %v9551_v36 }
 0x93b   :  { %13085 = vmatmul.mubr.msk.bf16.gmra.mrb[40].mxu1 %vm4988_vm2, %v9552_v0 }
 0x93c   :  { %13088 = vmatprep.mubr.msk.bf16.mxu1 %vm4988_vm2, %v9553_v59 }
 0x943   :  { %13089 = vmatmul.mubr.msk.bf16.gmra.mrb[44].mxu1 %vm4988_vm2, %v9554_v63 }
 0x944   :  { %13092 = vmatprep.mubr.msk.bf16.mxu1 %vm4988_vm2, %v9555_v40 }
 0x94b   :  { %13093 = vmatmul.mubr.msk.bf16.gmra.mrb[48].mxu1 %vm4988_vm2, %v9556_v41 }
 0x94c   :  { %13096 = vmatprep.mubr.msk.bf16.mxu1 %vm4988_vm2, %v9557_v12 }
 0x953   :  { %13097 = vmatmul.mubr.msk.bf16.gmra.mrb[52].mxu1 %vm4988_vm2, %v9558_v37 }
 0x954   :  { %13100 = vmatprep.mubr.msk.bf16.mxu1 %vm4988_vm2, %v9559_v11 }
 0x95b   :  { %13101 = vmatmul.mubr.msk.bf16.gmra.mrb[56].mxu1 %vm4988_vm2, %v9560_v20 }
 0x95c   :  { %13104 = vmatprep.mubr.msk.bf16.mxu1 %vm4988_vm2, %v17024_v54 }
 0x963   :  { %13105 = vmatmul.mubr.msk.bf16.gmra.mrb[60].mxu1 %vm4988_vm2, %v9562_v7 }
 0x9be   :  { %v13046_v15 = vpop.f32.mrb[0].mxu1 }
 0x9bf   :  { %v9702_v46 = vpop.f32.mrb[1].mxu1  ;;  %v10030_v61 = vadd.f32 %v13046_v15, %v17168_v34 }
 0x9c0   :  { %v10028_v22 = vadd.f32 %v17168_v34, %v9702_v46  ;;  %v13047_v35 = vpop.f32.mrb[2].mxu1 }
 0x9c1   :  { %v9705_v47 = vpop.f32.mrb[3].mxu1  ;;  %v10031_v54 = vadd.f32 %v13047_v35, %v17168_v34  ;;  %v10094_v49 = vmax.f32 %v10030_v61, 0.0 }
 0x9c2   :  { %v10092_v13 = vmax.f32 %v10028_v22, 0.0  ;;  %v10029_v23 = vadd.f32 %v17168_v34, %v9705_v47 }
 0x9c3   :  { %v10095_v60 = vmax.f32 %v10031_v54, 0.0  ;;  %v10160_v8 = vsel %vm10156_vm4, %v10094_v49, 0.0 }
 0x9c4   :  { %v10093_v56 = vmax.f32 %v10029_v23, 0.0  ;;  %v10157_v1 = vsel %vm10156_vm4, %v10092_v13, 0.0 }
 0x9c5   :  { %v10162_v27 = vsel %vm10156_vm4, %v10095_v60, 0.0 }
 0x9c6   :  { %v10158_v38 = vsel %vm10156_vm4, %v10093_v56, 0.0  ;;  %v13050_v32 = vpop.f32.mrb[4].mxu1 }
 0x9c7   :  { %v10159_v16 = vadd.f32 %v10158_v38, %v10157_v1  ;;  %v9718_v19 = vpop.f32.mrb[5].mxu1  ;;  %v10034_v57 = vadd.f32 %v13050_v32, %v17168_v34 }
 0x9c8   :  { %v10032_v43 = vadd.f32 %v17168_v34, %v9718_v19  ;;  %v13051_v39 = vpop.f32.mrb[6].mxu1 }
 0x9c9   :  { %v10161_v4 = vadd.f32 %v10160_v8, %v10159_v16  ;;  %v9721_v33 = vpop.f32.mrb[7].mxu1  ;;  %v10035_v58 = vadd.f32 %v13051_v39, %v17168_v34  ;;  %v10098_v17 = vmax.f32 %v10034_v57, 0.0 }
 0x9ca   :  { %v10096_v53 = vmax.f32 %v10032_v43, 0.0  ;;  %v10033_v29 = vadd.f32 %v17168_v34, %v9721_v33 }
 0x9cb   :  { %v10163_v31 = vadd.f32 %v10162_v27, %v10161_v4  ;;  %v10099_v36 = vmax.f32 %v10035_v58, 0.0  ;;  %v10168_v0 = vsel %vm10156_vm4, %v10098_v17, 0.0 }
 0x9cc   :  { %v10164_v6 = vsel %vm10156_vm4, %v10096_v53, 0.0  ;;  %v10097_v24 = vmax.f32 %v10033_v29, 0.0 }
 0x9cd   :  { %v10165_v18 = vadd.f32 %v10164_v6, %v10163_v31  ;;  %v10170_v63 = vsel %vm10156_vm4, %v10099_v36, 0.0 }
 0x9ce   :  { %v10166_v25 = vsel %vm10156_vm4, %v10097_v24, 0.0  ;;  %v13054_v62 = vpop.f32.mrb[8].mxu1 }
 0x9cf   :  { %v10167_v51 = vadd.f32 %v10166_v25, %v10165_v18  ;;  %v9734_v45 = vpop.f32.mrb[9].mxu1  ;;  %v10038_v59 = vadd.f32 %v13054_v62, %v17168_v34 }
 0x9d0   :  { %v10036_v48 = vadd.f32 %v17168_v34, %v9734_v45  ;;  %v13055_v55 = vpop.f32.mrb[10].mxu1 }
 0x9d1   :  { %v10169_v10 = vadd.f32 %v10168_v0, %v10167_v51  ;;  %v9737_v44 = vpop.f32.mrb[11].mxu1  ;;  %v10039_v14 = vadd.f32 %v13055_v55, %v17168_v34  ;;  %v10102_v5 = vmax.f32 %v10038_v59, 0.0 }
 0x9d2   :  { %v10100_v40 = vmax.f32 %v10036_v48, 0.0  ;;  %v10037_v30 = vadd.f32 %v17168_v34, %v9737_v44 }
 0x9d3   :  { %v10171_v52 = vadd.f32 %v10170_v63, %v10169_v10  ;;  %v10103_v26 = vmax.f32 %v10039_v14, 0.0  ;;  %v10176_v21 = vsel %vm10156_vm4, %v10102_v5, 0.0 }
 0x9d4   :  { %v10172_v41 = vsel %vm10156_vm4, %v10100_v40, 0.0  ;;  %v10101_v12 = vmax.f32 %v10037_v30, 0.0 }
 0x9d5   :  { %v10173_v2 = vadd.f32 %v10172_v41, %v10171_v52  ;;  %v10178_v15 = vsel %vm10156_vm4, %v10103_v26, 0.0 }
 0x9d6   :  { %v10174_v42 = vsel %vm10156_vm4, %v10101_v12, 0.0  ;;  %v13058_v3 = vpop.f32.mrb[12].mxu1 }
 0x9d7   :  { %v10175_v37 = vadd.f32 %v10174_v42, %v10173_v2  ;;  %v9750_v11 = vpop.f32.mrb[13].mxu1  ;;  %v10042_v9 = vadd.f32 %v13058_v3, %v17168_v34 }
 0x9d8   :  { %v10040_v20 = vadd.f32 %v17168_v34, %v9750_v11  ;;  %v13059_v28 = vpop.f32.mrb[14].mxu1 }
 0x9d9   :  { %v10177_v50 = vadd.f32 %v10176_v21, %v10175_v37  ;;  %v9753_v7 = vpop.f32.mrb[15].mxu1  ;;  %v10043_v61 = vadd.f32 %v13059_v28, %v17168_v34  ;;  %v10106_v47 = vmax.f32 %v10042_v9, 0.0 }
 0x9da   :  { %v10104_v46 = vmax.f32 %v10040_v20, 0.0  ;;  %v10041_v22 = vadd.f32 %v17168_v34, %v9753_v7 }
 0x9db   :  { %v10179_v35 = vadd.f32 %v10178_v15, %v10177_v50  ;;  %v10107_v49 = vmax.f32 %v10043_v61, 0.0  ;;  %v10184_v32 = vsel %vm10156_vm4, %v10106_v47, 0.0 }
 0x9dc   :  { %v10180_v13 = vsel %vm10156_vm4, %v10104_v46, 0.0  ;;  %v10105_v54 = vmax.f32 %v10041_v22, 0.0 }
 0x9dd   :  { %v10181_v23 = vadd.f32 %v10180_v13, %v10179_v35  ;;  %v10186_v39 = vsel %vm10156_vm4, %v10107_v49, 0.0 }
 0x9de   :  { %v10182_v56 = vsel %vm10156_vm4, %v10105_v54, 0.0  ;;  %v13062_v1 = vpop.f32.mrb[16].mxu1 }
 0x9df   :  { %v10183_v60 = vadd.f32 %v10182_v56, %v10181_v23  ;;  %v9766_v38 = vpop.f32.mrb[17].mxu1  ;;  %v10046_v16 = vadd.f32 %v13062_v1, %v17168_v34 }
 0x9e0   :  { %v10044_v19 = vadd.f32 %v17168_v34, %v9766_v38  ;;  %v13063_v8 = vpop.f32.mrb[18].mxu1 }
 0x9e1   :  { %v10185_v57 = vadd.f32 %v10184_v32, %v10183_v60  ;;  %v9769_v43 = vpop.f32.mrb[19].mxu1  ;;  %v10047_v33 = vadd.f32 %v13063_v8, %v17168_v34  ;;  %v10110_v58 = vmax.f32 %v10046_v16, 0.0 }
 0x9e2   :  { %v10108_v4 = vmax.f32 %v10044_v19, 0.0  ;;  %v10045_v27 = vadd.f32 %v17168_v34, %v9769_v43 }
 0x9e3   :  { %v10187_v53 = vadd.f32 %v10186_v39, %v10185_v57  ;;  %v10111_v6 = vmax.f32 %v10047_v33, 0.0  ;;  %v10192_v62 = vsel %vm10156_vm4, %v10110_v58, 0.0 }
 0x9e4   :  { %v10188_v29 = vsel %vm10156_vm4, %v10108_v4, 0.0  ;;  %v10109_v31 = vmax.f32 %v10045_v27, 0.0 }
 0x9e5   :  { %v10189_v17 = vadd.f32 %v10188_v29, %v10187_v53  ;;  %v10194_v55 = vsel %vm10156_vm4, %v10111_v6, 0.0 }
 0x9e6   :  { %v10190_v24 = vsel %vm10156_vm4, %v10109_v31, 0.0  ;;  %v13066_v18 = vpop.f32.mrb[20].mxu1 }
 0x9e7   :  { %v10191_v36 = vadd.f32 %v10190_v24, %v10189_v17  ;;  %v9782_v25 = vpop.f32.mrb[21].mxu1  ;;  %v10050_v51 = vadd.f32 %v13066_v18, %v17168_v34 }
 0x9e8   :  { %v10048_v45 = vadd.f32 %v17168_v34, %v9782_v25  ;;  %v13067_v0 = vpop.f32.mrb[22].mxu1 }
 0x9e9   :  { %v10193_v59 = vadd.f32 %v10192_v62, %v10191_v36  ;;  %v9785_v48 = vpop.f32.mrb[23].mxu1  ;;  %v10051_v44 = vadd.f32 %v13067_v0, %v17168_v34  ;;  %v10114_v14 = vmax.f32 %v10050_v51, 0.0 }
 0x9ea   :  { %v10112_v10 = vmax.f32 %v10048_v45, 0.0  ;;  %v10049_v63 = vadd.f32 %v17168_v34, %v9785_v48 }
 0x9eb   :  { %v10195_v40 = vadd.f32 %v10194_v55, %v10193_v59  ;;  %v10115_v41 = vmax.f32 %v10051_v44, 0.0  ;;  %v10200_v3 = vsel %vm10156_vm4, %v10114_v14, 0.0 }
 0x9ec   :  { %v10196_v30 = vsel %vm10156_vm4, %v10112_v10, 0.0  ;;  %v10113_v52 = vmax.f32 %v10049_v63, 0.0 }
 0x9ed   :  { %v10197_v5 = vadd.f32 %v10196_v30, %v10195_v40  ;;  %v10202_v28 = vsel %vm10156_vm4, %v10115_v41, 0.0 }
 0x9ee   :  { %v10198_v12 = vsel %vm10156_vm4, %v10113_v52, 0.0  ;;  %v13070_v2 = vpop.f32.mrb[24].mxu1 }
 0x9ef   :  { %v10199_v26 = vadd.f32 %v10198_v12, %v10197_v5  ;;  %v9798_v42 = vpop.f32.mrb[25].mxu1  ;;  %v10054_v37 = vadd.f32 %v13070_v2, %v17168_v34 }
 0x9f0   :  { %v10052_v11 = vadd.f32 %v17168_v34, %v9798_v42  ;;  %v13071_v21 = vpop.f32.mrb[26].mxu1 }
 0x9f1   :  { %v10201_v9 = vadd.f32 %v10200_v3, %v10199_v26  ;;  %v9801_v20 = vpop.f32.mrb[27].mxu1  ;;  %v10055_v7 = vadd.f32 %v13071_v21, %v17168_v34  ;;  %v10118_v61 = vmax.f32 %v10054_v37, 0.0 }
 0x9f2   :  { %v10116_v50 = vmax.f32 %v10052_v11, 0.0  ;;  %v10053_v15 = vadd.f32 %v17168_v34, %v9801_v20 }
 0x9f3   :  { %v10203_v46 = vadd.f32 %v10202_v28, %v10201_v9  ;;  %v10119_v13 = vmax.f32 %v10055_v7, 0.0  ;;  %v10208_v1 = vsel %vm10156_vm4, %v10118_v61, 0.0 }
 0x9f4   :  { %v10204_v22 = vsel %vm10156_vm4, %v10116_v50, 0.0  ;;  %v10117_v35 = vmax.f32 %v10053_v15, 0.0 }
 0x9f5   :  { %v10205_v47 = vadd.f32 %v10204_v22, %v10203_v46  ;;  %v10210_v8 = vsel %vm10156_vm4, %v10119_v13, 0.0 }
 0x9f6   :  { %v10206_v54 = vsel %vm10156_vm4, %v10117_v35, 0.0  ;;  %v13074_v23 = vpop.f32.mrb[28].mxu1 }
 0x9f7   :  { %v10207_v49 = vadd.f32 %v10206_v54, %v10205_v47  ;;  %v9814_v56 = vpop.f32.mrb[29].mxu1  ;;  %v10058_v60 = vadd.f32 %v13074_v23, %v17168_v34 }
 0x9f8   :  { %v10056_v38 = vadd.f32 %v17168_v34, %v9814_v56  ;;  %v13075_v32 = vpop.f32.mrb[30].mxu1 }
 0x9f9   :  { %v10209_v16 = vadd.f32 %v10208_v1, %v10207_v49  ;;  %v9817_v19 = vpop.f32.mrb[31].mxu1  ;;  %v10059_v43 = vadd.f32 %v13075_v32, %v17168_v34  ;;  %v10122_v33 = vmax.f32 %v10058_v60, 0.0 }
 0x9fa   :  { %v10120_v57 = vmax.f32 %v10056_v38, 0.0  ;;  %v10057_v39 = vadd.f32 %v17168_v34, %v9817_v19 }
 0x9fb   :  { %v10211_v4 = vadd.f32 %v10210_v8, %v10209_v16  ;;  %v10123_v29 = vmax.f32 %v10059_v43, 0.0  ;;  %v10216_v18 = vsel %vm10156_vm4, %v10122_v33, 0.0 }
 0x9fc   :  { %v10212_v27 = vsel %vm10156_vm4, %v10120_v57, 0.0  ;;  %v10121_v53 = vmax.f32 %v10057_v39, 0.0 }
 0x9fd   :  { %v10213_v58 = vadd.f32 %v10212_v27, %v10211_v4  ;;  %v10218_v0 = vsel %vm10156_vm4, %v10123_v29, 0.0 }
 0x9fe   :  { %v10214_v31 = vsel %vm10156_vm4, %v10121_v53, 0.0  ;;  %v13078_v17 = vpop.f32.mrb[32].mxu1 }
 0x9ff   :  { %v10215_v6 = vadd.f32 %v10214_v31, %v10213_v58  ;;  %v9830_v24 = vpop.f32.mrb[33].mxu1  ;;  %v10062_v36 = vadd.f32 %v13078_v17, %v17168_v34 }
 0xa00   :  { %v10060_v25 = vadd.f32 %v17168_v34, %v9830_v24  ;;  %v13079_v62 = vpop.f32.mrb[34].mxu1 }
 0xa01   :  { %v10217_v51 = vadd.f32 %v10216_v18, %v10215_v6  ;;  %v9833_v45 = vpop.f32.mrb[35].mxu1  ;;  %v10063_v48 = vadd.f32 %v13079_v62, %v17168_v34  ;;  %v10126_v44 = vmax.f32 %v10062_v36, 0.0 }
 0xa02   :  { %v10124_v59 = vmax.f32 %v10060_v25, 0.0  ;;  %v10061_v55 = vadd.f32 %v17168_v34, %v9833_v45 }
 0xa03   :  { %v17238_v10 = vadd.f32 %v10218_v0, %v10217_v51  ;;  %v10127_v14 = vmax.f32 %v10063_v48, 0.0  ;;  %v10229_v12 = vsel %vm10156_vm4, %v10126_v44, 0.0 }
 0xa04   :  { %v10125_v63 = vmax.f32 %v10061_v55, 0.0  ;;  %v10226_v40 = vsel %vm10156_vm4, %v10124_v59, 0.0 }
 0xa05   :  { %v10231_v11 = vsel %vm10156_vm4, %v10127_v14, 0.0 }
 0xa06   :  { %v10227_v30 = vsel %vm10156_vm4, %v10125_v63, 0.0  ;;  %v13082_v52 = vpop.f32.mrb[36].mxu1 }
 0xa07   :  { %v10228_v5 = vadd.f32 %v10227_v30, %v10226_v40  ;;  %v9846_v41 = vpop.f32.mrb[37].mxu1  ;;  %v10066_v2 = vadd.f32 %v13082_v52, %v17168_v34 }
 0xa08   :  { %v10064_v26 = vadd.f32 %v17168_v34, %v9846_v41  ;;  %v13083_v42 = vpop.f32.mrb[38].mxu1 }
 0xa09   :  { %v10230_v3 = vadd.f32 %v10229_v12, %v10228_v5  ;;  %v9849_v37 = vpop.f32.mrb[39].mxu1  ;;  %v10067_v9 = vadd.f32 %v13083_v42, %v17168_v34  ;;  %v10130_v50 = vmax.f32 %v10066_v2, 0.0 }
 0xa0a   :  { %v10128_v21 = vmax.f32 %v10064_v26, 0.0  ;;  %v10065_v20 = vadd.f32 %v17168_v34, %v9849_v37 }
 0xa0b   :  { %v10232_v28 = vadd.f32 %v10231_v11, %v10230_v3  ;;  %v10131_v61 = vmax.f32 %v10067_v9, 0.0  ;;  %v10237_v54 = vsel %vm10156_vm4, %v10130_v50, 0.0 }
 0xa0c   :  { %v10233_v7 = vsel %vm10156_vm4, %v10128_v21, 0.0  ;;  %v10129_v15 = vmax.f32 %v10065_v20, 0.0 }
 0xa0d   :  { %v10234_v46 = vadd.f32 %v10233_v7, %v10232_v28  ;;  %v10239_v38 = vsel %vm10156_vm4, %v10131_v61, 0.0 }
 0xa0e   :  { %v10235_v22 = vsel %vm10156_vm4, %v10129_v15, 0.0  ;;  %v13086_v35 = vpop.f32.mrb[40].mxu1 }
 0xa0f   :  { %v10236_v47 = vadd.f32 %v10235_v22, %v10234_v46  ;;  %v9862_v13 = vpop.f32.mrb[41].mxu1  ;;  %v10070_v23 = vadd.f32 %v13086_v35, %v17168_v34 }
 0xa10   :  { %v10068_v49 = vadd.f32 %v17168_v34, %v9862_v13  ;;  %v13087_v56 = vpop.f32.mrb[42].mxu1 }
 0xa11   :  { %v10238_v1 = vadd.f32 %v10237_v54, %v10236_v47  ;;  %v9865_v60 = vpop.f32.mrb[43].mxu1  ;;  %v10071_v16 = vadd.f32 %v13087_v56, %v17168_v34  ;;  %v10134_v57 = vmax.f32 %v10070_v23, 0.0 }
 0xa12   :  { %v10132_v32 = vmax.f32 %v10068_v49, 0.0  ;;  %v10069_v19 = vadd.f32 %v17168_v34, %v9865_v60 }
 0xa13   :  { %v10240_v8 = vadd.f32 %v10239_v38, %v10238_v1  ;;  %v10135_v33 = vmax.f32 %v10071_v16, 0.0  ;;  %v10245_v31 = vsel %vm10156_vm4, %v10134_v57, 0.0 }
 0xa14   :  { %v10241_v43 = vsel %vm10156_vm4, %v10132_v32, 0.0  ;;  %v10133_v39 = vmax.f32 %v10069_v19, 0.0 }
 0xa15   :  { %v10242_v4 = vadd.f32 %v10241_v43, %v10240_v8  ;;  %v10247_v25 = vsel %vm10156_vm4, %v10135_v33, 0.0 }
 0xa16   :  { %v10243_v27 = vsel %vm10156_vm4, %v10133_v39, 0.0  ;;  %v13090_v53 = vpop.f32.mrb[44].mxu1 }
 0xa17   :  { %v10244_v58 = vadd.f32 %v10243_v27, %v10242_v4  ;;  %v9878_v29 = vpop.f32.mrb[45].mxu1  ;;  %v10074_v17 = vadd.f32 %v13090_v53, %v17168_v34 }
 0xa18   :  { %v10072_v6 = vadd.f32 %v17168_v34, %v9878_v29  ;;  %v13091_v24 = vpop.f32.mrb[46].mxu1 }
 0xa19   :  { %v10246_v18 = vadd.f32 %v10245_v31, %v10244_v58  ;;  %v9881_v36 = vpop.f32.mrb[47].mxu1  ;;  %v10075_v51 = vadd.f32 %v13091_v24, %v17168_v34  ;;  %v10138_v59 = vmax.f32 %v10074_v17, 0.0 }
 0xa1a   :  { %v10136_v62 = vmax.f32 %v10072_v6, 0.0  ;;  %v10073_v45 = vadd.f32 %v17168_v34, %v9881_v36 }
 0xa1b   :  { %v10248_v0 = vadd.f32 %v10247_v25, %v10246_v18  ;;  %v10139_v63 = vmax.f32 %v10075_v51, 0.0  ;;  %v10253_v5 = vsel %vm10156_vm4, %v10138_v59, 0.0 }
 0xa1c   :  { %v10249_v48 = vsel %vm10156_vm4, %v10136_v62, 0.0  ;;  %v10137_v55 = vmax.f32 %v10073_v45, 0.0 }
 0xa1d   :  { %v10250_v44 = vadd.f32 %v10249_v48, %v10248_v0  ;;  %v10255_v3 = vsel %vm10156_vm4, %v10139_v63, 0.0 }
 0xa1e   :  { %v10251_v40 = vsel %vm10156_vm4, %v10137_v55, 0.0  ;;  %v13094_v14 = vpop.f32.mrb[48].mxu1 }
 0xa1f   :  { %v10252_v30 = vadd.f32 %v10251_v40, %v10250_v44  ;;  %v9894_v52 = vpop.f32.mrb[49].mxu1  ;;  %v10078_v41 = vadd.f32 %v13094_v14, %v17168_v34 }
 0xa20   :  { %v10076_v12 = vadd.f32 %v17168_v34, %v9894_v52  ;;  %v13095_v2 = vpop.f32.mrb[50].mxu1 }
 0xa21   :  { %v10254_v26 = vadd.f32 %v10253_v5, %v10252_v30  ;;  %v9897_v42 = vpop.f32.mrb[51].mxu1  ;;  %v10079_v11 = vadd.f32 %v13095_v2, %v17168_v34  ;;  %v10142_v20 = vmax.f32 %v10078_v41, 0.0 }
 0xa22   :  { %v10140_v37 = vmax.f32 %v10076_v12, 0.0  ;;  %v10077_v21 = vadd.f32 %v17168_v34, %v9897_v42  ;;  %v10220_v12 = vrot.slane %v17238_v10, 4 }
 0xa23   :  { %v10256_v9 = vadd.f32 %v10255_v3, %v10254_v26  ;;  %v10143_v15 = vmax.f32 %v10079_v11, 0.0  ;;  %v10261_v47 = vsel %vm10156_vm4, %v10142_v20, 0.0 }
 0xa24   :  { %v10257_v28 = vsel %vm10156_vm4, %v10140_v37, 0.0  ;;  %v10141_v50 = vmax.f32 %v10077_v21, 0.0 }
 0xa25   :  { %v10258_v7 = vadd.f32 %v10257_v28, %v10256_v9  ;;  %v10263_v1 = vsel %vm10156_vm4, %v10143_v15, 0.0 }
 0xa26   :  { %v10259_v46 = vsel %vm10156_vm4, %v10141_v50, 0.0  ;;  %v13098_v61 = vpop.f32.mrb[52].mxu1  ;;  %v10221_v50 = vadd.f32 %v10220_v12, %v17238_v10 }
 0xa27   :  { %v10260_v22 = vadd.f32 %v10259_v46, %v10258_v7  ;;  %v9910_v35 = vpop.f32.mrb[53].mxu1  ;;  %v10082_v13 = vadd.f32 %v13098_v61, %v17168_v34 }
 0xa28   :  { %v10080_v54 = vadd.f32 %v17168_v34, %v9910_v35  ;;  %v13099_v23 = vpop.f32.mrb[54].mxu1 }
 0xa29   :  { %v10262_v49 = vadd.f32 %v10261_v47, %v10260_v22  ;;  %v9913_v56 = vpop.f32.mrb[55].mxu1  ;;  %v10083_v38 = vadd.f32 %v13099_v23, %v17168_v34  ;;  %v10146_v19 = vmax.f32 %v10082_v13, 0.0  ;;  %v10222_v47 = vrot.slane %v10221_v50, 2 }
 0xa2a   :  { %v10144_v60 = vmax.f32 %v10080_v54, 0.0  ;;  %v10081_v32 = vadd.f32 %v17168_v34, %v9913_v56 }
 0xa2b   :  { %v10264_v16 = vadd.f32 %v10263_v1, %v10262_v49  ;;  %v10147_v39 = vmax.f32 %v10083_v38, 0.0  ;;  %v10269_v58 = vsel %vm10156_vm4, %v10146_v19, 0.0  ;;  %v10223_v23 = vadd.f32 %v10222_v47, %v10221_v50 }
 0xa2c   :  { %v10265_v8 = vsel %vm10156_vm4, %v10144_v60, 0.0  ;;  %v10145_v57 = vmax.f32 %v10081_v32, 0.0 }
 0xa2d   :  { %v10266_v43 = vadd.f32 %v10265_v8, %v10264_v16  ;;  %v10271_v18 = vsel %vm10156_vm4, %v10147_v39, 0.0  ;;  %v10224_v1 = vrot.slane %v10223_v23, 1  ;;  %v11325_v8 = vld [vmem:[%s17316_s5] ss:$0 sm:$0xff] }
 0xa2e   :  { %v10267_v4 = vsel %vm10156_vm4, %v10145_v57, 0.0  ;;  %v13102_v33 = vpop.f32.mrb[56].mxu1 }
 0xa2f   :  { %v10268_v27 = vadd.f32 %v10267_v4, %v10266_v43  ;;  %v9926_v53 = vpop.f32.mrb[57].mxu1  ;;  %v10086_v29 = vadd.f32 %v13102_v33, %v17168_v34  ;;  %v10225_v38 = vadd.f32 %v10224_v1, %v10223_v23 }
 0xa30   :  { %v10084_v31 = vadd.f32 %v17168_v34, %v9926_v53  ;;  %v13103_v17 = vpop.f32.mrb[58].mxu1 }
 0xa31   :  { %v10270_v6 = vadd.f32 %v10269_v58, %v10268_v27  ;;  %v9929_v24 = vpop.f32.mrb[59].mxu1  ;;  %v10087_v25 = vadd.f32 %v13103_v17, %v17168_v34  ;;  %v10150_v45 = vmax.f32 %v10086_v29, 0.0  ;;  %v10296_v16 = vmul.f32 0.00390625, %v10225_v38 }
 0xa32   :  { %v10148_v36 = vmax.f32 %v10084_v31, 0.0  ;;  %v10085_v62 = vadd.f32 %v17168_v34, %v9929_v24  ;;  %v10318_v27 = vstv %s17317_s6 }
 0xa33   :  { %v10272_v51 = vadd.f32 %v10271_v18, %v10270_v6  ;;  %v10151_v55 = vmax.f32 %v10087_v25, 0.0  ;;  %v10277_v30 = vsel %vm10156_vm4, %v10150_v45, 0.0  ;;  %v10305_v43 = vmul.f32 %v11325_v8, %v10296_v16 }
 0xa34   :  { %v10273_v0 = vsel %vm10156_vm4, %v10148_v36, 0.0  ;;  %v10149_v59 = vmax.f32 %v10085_v62, 0.0 }
 0xa35   :  { %v10274_v48 = vadd.f32 %v10273_v0, %v10272_v51  ;;  %v10279_v42 = vsel %vm10156_vm4, %v10151_v55, 0.0 }
 0xa36   :  { %v10275_v44 = vsel %vm10156_vm4, %v10149_v59, 0.0  ;;  %v13106_v63 = vpop.f32.mrb[60].mxu1 }
 0xa37   :  { %v10276_v40 = vadd.f32 %v10275_v44, %v10274_v48  ;;  %v9942_v14 = vpop.f32.mrb[61].mxu1  ;;  %v10090_v52 = vadd.f32 %v13106_v63, %v17168_v34 }
 0xa38   :  { %v10088_v5 = vadd.f32 %v17168_v34, %v9942_v14  ;;  %v13107_v41 = vpop.f32.mrb[62].mxu1 }
 0xa39   :  { %v10278_v2 = vadd.f32 %v10277_v30, %v10276_v40  ;;  %v9945_v26 = vpop.f32.mrb[63].mxu1  ;;  %v10091_v37 = vadd.f32 %v13107_v41, %v17168_v34  ;;  %v10154_v9 = vmax.f32 %v10090_v52, 0.0 }
 0xa3a   :  { %v10152_v3 = vmax.f32 %v10088_v5, 0.0  ;;  %v10089_v11 = vadd.f32 %v17168_v34, %v9945_v26 }
 0xa3b   :  { %v10280_v21 = vadd.f32 %v10279_v42, %v10278_v2  ;;  %v10155_v15 = vmax.f32 %v10091_v37, 0.0  ;;  %v10285_v22 = vsel %vm10156_vm4, %v10154_v9, 0.0 }
 0xa3c   :  { %v10281_v20 = vsel %vm10156_vm4, %v10152_v3, 0.0  ;;  %v10153_v28 = vmax.f32 %v10089_v11, 0.0 }
 0xa3d   :  { %v10282_v7 = vadd.f32 %v10281_v20, %v10280_v21  ;;  %v10287_v13 = vsel %vm10156_vm4, %v10155_v15, 0.0 }
 0xa3e   :  { %v10283_v46 = vsel %vm10156_vm4, %v10153_v28, 0.0 }
 0xa3f   :  { %v10284_v61 = vadd.f32 %v10283_v46, %v10282_v7 }
 0xa41   :  { %v10286_v35 = vadd.f32 %v10285_v22, %v10284_v61 }
 0xa43   :  { %v10288_v54 = vadd.f32 %v10287_v13, %v10286_v35 }
 0xa45   :  { %v10289_v34 = vrot.slane %v10288_v54, 4 }
 0xa47   :  { %v10290_v49 = vadd.f32 %v10289_v34, %v10288_v54 }
 0xa49   :  { %v10291_v56 = vrot.slane %v10290_v49, 2 }
 0xa4b   :  { %v10292_v60 = vadd.f32 %v10291_v56, %v10290_v49 }
 0xa4d   :  { %v10293_v10 = vrot.slane %v10292_v60, 1 }
 0xa4f   :  { %v10294_v32 = vadd.f32 %v10293_v10, %v10292_v60 }
 0xa51   :  { %v10297_v19 = vmul.f32 0.00390625, %v10294_v32 }
 0xa53   :  { %v10306_v57 = vmul.f32 %v11325_v8, %v10297_v19 }
 0xa55   :  { %v10309_v39 = vrot.slane %v10306_v57, 7 }
 0xa57   :  { %v10311_v4 = vsel %vm10310_vm5, %v10309_v39, %v10305_v43 }
 0xa58   :  { %v10314_v33 = vsel %vm10313_vm6, %v10311_v4, 0.0 }
 0xa59   :  { %10315 = vadd.xlane.f32.xlu0 %v10314_v33 }
 0xae6   :  { %v10316_v53 = vpop.xlane.xlu0 %10315 }
 0xae7   :  { %v10319_v58 = vadd.f32 %v10318_v27, %v10316_v53 }
 0xae9   :  { %v10320_v29 = vmul.f32 0.5, %v10319_v58 }
 0xaeb   :  { %14151 = vtanh.f32 %v10320_v29 }
 0xaf5   :  { %v14152_v31 = vpop.eup %14151 }
 0xaf6   :  { %v10322_v17 = vadd.f32 1.0, %v14152_v31 }
 0xaf8   :  { %v10323_v6 = vmul.f32 0.5, %v10322_v17 }
 0xafa   :  { %10325 = vst.msk [vmem:[%s17318_s7] sm:$0x3] %vm10324_vm7, %v10323_v6 }

</bundles_post_ra>
